<compile_context>
chip_gen: v7x
topology: tpu7x:2x2x1
jax: 0.10.0
libtpu: 0.0.40
codegen_flags: <defaults>
</compile_context>

<pallas_src>
import functools

import jax
import jax.numpy as jnp
from jax import lax
from jax.experimental import pallas as pl
from jax.experimental.pallas import tpu as pltpu

# --- Model hyper-parameters (match TransformerTabular defaults) ---------------
D_MODEL = 64
NHEAD = 4            # irrelevant at seq_len == 1 (attention weights are exactly 1)
NUM_LAYERS = 2
DIM_FF = 2048        # nn.TransformerEncoderLayer default dim_feedforward
NUM_CLASSES = 10
OUT_PAD = 128        # lane-dense padded output width
LN_EPS = 1e-5        # PyTorch LayerNorm default eps

_MiB = 1024 * 1024


def _round_up(x, m):
    return ((x + m - 1) // m) * m


def _normalize(x):
    # One-pass LayerNorm stats: sum(x) and sum(x*x) are independent reductions,
    # var = E[x^2] - mu^2 (f32, d=64 -> numerically fine). No affine here.
    mu = jnp.mean(x, axis=-1, keepdims=True)
    m2 = jnp.mean(x * x, axis=-1, keepdims=True)
    var = m2 - mu * mu
    return (x - mu) * lax.rsqrt(var + LN_EPS)


def _tpu_config():
    """Generation-aware tiling / VMEM / precision config with safe fallbacks."""
    vmem_cap = 128 * _MiB
    kind = ""
    try:
        kind = jax.devices()[0].device_kind.lower()
    except Exception:
        pass
    try:
        info = pltpu.get_tpu_info()
        vmem_cap = int(getattr(info, "vmem_capacity_bytes", vmem_cap))
    except Exception:
        pass
    small_vmem = (vmem_cap <= 64 * _MiB) or ("v7" in kind) or ("7x" in kind)
    if small_vmem:                      # v7x-like: 64 MiB VMEM, 2 TensorCores/chip
        num_cores = 2
        vmem_limit = 40 * _MiB
        tb_cap = 1024
    else:                               # v5e / v6e: 128 MiB VMEM, 1 TensorCore
        num_cores = 1
        vmem_limit = 64 * _MiB
        tb_cap = 2048
    # bf16 elementwise epilogue only where the VPU has bf16 (v6e / v7x); v5e stays f32.
    epilogue_bf16 = small_vmem or ("v6" in kind)
    return dict(num_cores=num_cores, vmem_limit=vmem_limit,
                tb_cap=tb_cap, epilogue_bf16=epilogue_bf16)


def transformer_tabular_kernel(
    xin_ref,                        # (TB, F_in)          bf16
    win_ref, bin_ref,               # (F_in, d) bf16, (1, d) f32
    wattn_ref, battn_ref,           # (L, d, d) bf16, (L, 1, d) f32
    ln1g_ref, ln1b_ref,             # (L, 1, d) f32
    w1_ref, b1_ref,                 # (L, d, FF) bf16, (L, 1, FF) f32|bf16
    w2_ref, b2_ref,                 # (L, FF, d) bf16, (L, 1, d) f32
    ln2g_ref, ln2b_ref,             # (L, 1, d) f32  (last row unused: folded into fc1)
    wfc1_ref, bfc1_ref,             # (d, 128) bf16, (1, 128) f32|bf16
    wfc2_ref, bfc2_ref,             # (128, OUT_PAD) bf16, (1, OUT_PAD) f32
    out_ref,                        # (TB, OUT_PAD)        f32
    *, epilogue_bf16):
    f32 = jnp.float32
    bf16 = jnp.bfloat16

    # Fused front-end: h = [cat_embs | x_num] @ W_in + b_in.
    h = (jnp.dot(xin_ref[...], win_ref[...], preferred_element_type=f32)
         + bin_ref[...])                                       # (TB, d) f32

    # TransformerEncoder: post-norm layers, relu FFN, seq_len == 1.
    for l in range(NUM_LAYERS):
        # Single-token self-attention == fused out_proj(v_proj(h)).
        attn = (jnp.dot(h.astype(bf16), wattn_ref[l], preferred_element_type=f32)
                + battn_ref[l])
        h = _normalize(h + attn) * ln1g_ref[l] + ln1b_ref[l]

        acc = jnp.dot(h.astype(bf16), w1_ref[l], preferred_element_type=f32)
        if epilogue_bf16:
            # bias-add + ReLU on the (TB, FF) intermediate in bf16 (v6e/v7x bf16 VALU).
            ff = jnp.maximum(acc.astype(bf16) + b1_ref[l], 0)
        else:
            ff = jnp.maximum(acc + b1_ref[l], 0.0).astype(bf16)
        ff = (jnp.dot(ff, w2_ref[l], preferred_element_type=f32)
              + b2_ref[l])
        h = _normalize(h + ff)
        if l < NUM_LAYERS - 1:
            h = h * ln2g_ref[l] + ln2b_ref[l]
        # else: final ln2 affine was folded into wfc1/bfc1 by fuse_params (exact).

    # Head: Linear(64->128) -> ReLU -> (Dropout = id) -> Linear(128->C, padded to 128).
    acc = jnp.dot(h.astype(bf16), wfc1_ref[...], preferred_element_type=f32)
    if epilogue_bf16:
        z = jnp.maximum(acc.astype(bf16) + bfc1_ref[...], 0)
    else:
        z = jnp.maximum(acc + bfc1_ref[...], 0.0).astype(bf16)
    out_ref[...] = (jnp.dot(z, wfc2_ref[...], preferred_element_type=f32)
                    + bfc2_ref[...])


def fuse_params(params, *, epilogue_bf16):
    """One-time (hoisted/cached) weight fusion; call once, reuse across forwards."""
    f32, bf16 = jnp.float32, jnp.bfloat16
    bias_dt = bf16 if epilogue_bf16 else f32

    # input_linear(concat([cat, num_linear(x_num)])) == [cat | x_num] @ W_in + b_in
    w_in = jnp.concatenate(
        [params["win_cat"], params["wnum"] @ params["win_num"]], axis=0)
    b_in = params["bnum"] @ params["win_num"] + params["bin"]
    # seq_len==1 attention: out_proj(v_proj(h)) == h @ (Wv @ Wo) + (bv @ Wo + bo)
    w_attn = jnp.einsum("lij,ljk->lik", params["wv"], params["wo"])
    b_attn = jnp.einsum("lij,ljk->lik", params["bv"], params["wo"]) + params["bo"]
    # Fold the FINAL ln2 affine into fc1 (exact: that LN output feeds only fc1):
    #   (g*n + b) @ W + c == n @ (diag(g) W) + (b @ W + c)
    g_last = params["ln2g"][-1, 0]
    wfc1 = params["wfc1"] * g_last[:, None]
    bfc1 = params["ln2b"][-1] @ params["wfc1"] + params["bfc1"]
    # Lane-dense (128-wide) head output.
    wfc2 = jnp.zeros((128, OUT_PAD), f32).at[:, :NUM_CLASSES].set(params["wfc2"])
    bfc2 = jnp.zeros((1, OUT_PAD), f32).at[:, :NUM_CLASSES].set(params["bfc2"])

    return (
        w_in.astype(bf16), b_in.astype(f32),
        w_attn.astype(bf16), b_attn.astype(f32),
        params["ln1g"].astype(f32), params["ln1b"].astype(f32),
        params["w1"].astype(bf16), params["b1"].astype(bias_dt),
        params["w2"].astype(bf16), params["b2"].astype(f32),
        params["ln2g"].astype(f32), params["ln2b"].astype(f32),  # last row unused
        wfc1.astype(bf16), bfc1.astype(bias_dt),
        wfc2.astype(bf16), bfc2.astype(f32),
    )


def transformer_tabular_forward(cat_embs, x_num, fused_weights, *, config=None):
    """cat_embs: (B, cat_emb_dim) f32; x_num: (B, num_features) f32."""
    f32, bf16 = jnp.float32, jnp.bfloat16
    cfg = config if config is not None else _tpu_config()
    B = cat_embs.shape[0]

    x_in = jnp.concatenate([cat_embs, x_num], axis=1).astype(bf16)
    F_in = x_in.shape[1]

    # ---- Batch tiling ----
    # Multiple of 16 (bf16 sublane packing); as large as the per-gen cap allows, but
    # on multi-TC chips (v7x) keep at least `num_cores` grid steps so the "parallel"
    # axis shards across TensorCores.
    TB = min(cfg["tb_cap"], _round_up(B, 16))
    if cfg["num_cores"] > 1 and B >= 2 * 16:
        TB = min(TB, _round_up(-(-B // cfg["num_cores"]), 16))
    B_pad = _round_up(B, TB)
    if B_pad != B:
        x_in = jnp.pad(x_in, ((0, B_pad - B), (0, 0)))

    def const_spec(a):
        # Constant block index across the batch grid -> weight stays VMEM-resident.
        return pl.BlockSpec(a.shape, lambda i, n=a.ndim: (0,) * n)

    in_specs = [pl.BlockSpec((TB, F_in), lambda i: (i, 0))]
    in_specs += [const_spec(w) for w in fused_weights]

    kernel = functools.partial(transformer_tabular_kernel,
                               epilogue_bf16=cfg["epilogue_bf16"])

    out = pl.pallas_call(
        kernel,
        out_shape=jax.ShapeDtypeStruct((B_pad, OUT_PAD), f32),
        grid=(B_pad // TB,),
        in_specs=in_specs,
        out_specs=pl.BlockSpec((TB, OUT_PAD), lambda i: (i, 0)),
        compiler_params=pltpu.CompilerParams(
            dimension_semantics=("parallel",),
            vmem_limit_bytes=cfg["vmem_limit"]),
    )(x_in, *fused_weights)

    return out[:B, :NUM_CLASSES]


def init_params(key, cat_emb_dim, num_features):
    ks = jax.random.split(key, 20)
    def nrm(k, shape, scale=0.05):
        return scale * jax.random.normal(k, shape, dtype=jnp.float32)
    d = D_MODEL
    return dict(
        wnum=nrm(ks[0], (num_features, d // 2)),
        bnum=nrm(ks[1], (1, d // 2)),
        win_cat=nrm(ks[2], (cat_emb_dim, d)),
        win_num=nrm(ks[3], (d // 2, d)),
        bin=nrm(ks[4], (1, d)),
        wv=nrm(ks[5], (NUM_LAYERS, d, d)),
        bv=nrm(ks[6], (NUM_LAYERS, 1, d)),
        wo=nrm(ks[7], (NUM_LAYERS, d, d)),
        bo=nrm(ks[8], (NUM_LAYERS, 1, d)),
        ln1g=jnp.ones((NUM_LAYERS, 1, d), jnp.float32),
        ln1b=jnp.zeros((NUM_LAYERS, 1, d), jnp.float32),
        w1=nrm(ks[9], (NUM_LAYERS, d, DIM_FF)),
        b1=nrm(ks[10], (NUM_LAYERS, 1, DIM_FF)),
        w2=nrm(ks[11], (NUM_LAYERS, DIM_FF, d)),
        b2=nrm(ks[12], (NUM_LAYERS, 1, d)),
        ln2g=jnp.ones((NUM_LAYERS, 1, d), jnp.float32),
        ln2b=jnp.zeros((NUM_LAYERS, 1, d), jnp.float32),
        wfc1=nrm(ks[13], (d, 128)),
        bfc1=nrm(ks[14], (1, 128)),
        wfc2=nrm(ks[15], (128, NUM_CLASSES)),
        bfc2=nrm(ks[16], (1, NUM_CLASSES)),
    )


def reference_forward(cat_embs, x_num, params):
    """Pure-JAX f32 reference of the same math (unfused, PyTorch-equivalent)."""
    def ln(x, g, b):
        mu = jnp.mean(x, axis=-1, keepdims=True)
        var = jnp.mean((x - mu) * (x - mu), axis=-1, keepdims=True)
        return (x - mu) * lax.rsqrt(var + LN_EPS) * g + b
    num_emb = x_num @ params["wnum"] + params["bnum"]
    h = cat_embs @ params["win_cat"] + num_emb @ params["win_num"] + params["bin"]
    for l in range(NUM_LAYERS):
        attn = (h @ params["wv"][l] + params["bv"][l]) @ params["wo"][l] + params["bo"][l]
        h = ln(h + attn, params["ln1g"][l], params["ln1b"][l])
        ff = jnp.maximum(h @ params["w1"][l] + params["b1"][l], 0.0)
        ff = ff @ params["w2"][l] + params["b2"][l]
        h = ln(h + ff, params["ln2g"][l], params["ln2b"][l])
    z = jnp.maximum(h @ params["wfc1"] + params["bfc1"], 0.0)
    return z @ params["wfc2"] + params["bfc2"]


if __name__ == "__main__":
    key = jax.random.PRNGKey(0)
    k_emb, k_par, k_cat, k_num = jax.random.split(key, 4)

    B = 8
    cat_cardinalities = [7, 5, 11]
    emb_dims = [min(50, (c + 1) // 2) for c in cat_cardinalities]   # [4, 3, 6]
    cat_emb_dim = sum(emb_dims)                                     # 13
    num_features = 6

    # Deterministic embedding tables (parameters of nn.Embedding modules).
    ek = jax.random.split(k_emb, len(cat_cardinalities))
    emb_tables = [0.1 * jax.random.normal(ek[i], (c, e), dtype=jnp.float32)
                  for i, (c, e) in enumerate(zip(cat_cardinalities, emb_dims))]

    params = init_params(k_par, cat_emb_dim, num_features)

    # Inputs.
    x_cat = jnp.stack(
        [jax.random.randint(jax.random.fold_in(k_cat, i), (B,), 0, c)
         for i, c in enumerate(cat_cardinalities)], axis=1)         # (B, 3) int32
    x_num = jax.random.normal(k_num, (B, num_features), dtype=jnp.float32)

    # TODO(synk): nn.Embedding lookup is a data-dependent gather; done in plain JAX
    # (equivalent to torch.cat([emb(x_cat[:, i]) ...], dim=1)) rather than in-kernel.
    cat_embs = jnp.concatenate(
        [jnp.take(emb_tables[i], x_cat[:, i], axis=0)
         for i in range(len(cat_cardinalities))], axis=1)           # (B, 13)

    # Hoisted, one-time weight fusion (cache this tuple for repeated forward calls).
    cfg = _tpu_config()
    fused = jax.tree.map(jax.block_until_ready,
                         fuse_params(params, epilogue_bf16=cfg["epilogue_bf16"]))

    out = transformer_tabular_forward(cat_embs, x_num, fused, config=cfg)
    out = jax.block_until_ready(out)

    ref = reference_forward(cat_embs, x_num, params)
    assert out.shape == (B, NUM_CLASSES)
    # Kernel uses bf16 matmul inputs with f32 accumulation -> loose-but-meaningful tol.
    assert jnp.allclose(out, ref, rtol=5e-2, atol=5e-2), "mismatch vs reference"

    print("KERNEL_OK")
</pallas_src>

<mosaic_0001>
module attributes {stable_mosaic.version = 11 : i64} {
  func.func @transformer_tabular_kernel(%arg0: i32, %arg1: memref<16x19xbf16, #tpu.memory_space<vmem>>, %arg2: memref<19x64xbf16, #tpu.memory_space<vmem>>, %arg3: memref<1x64xf32, #tpu.memory_space<vmem>>, %arg4: memref<2x64x64xbf16, #tpu.memory_space<vmem>>, %arg5: memref<2x1x64xf32, #tpu.memory_space<vmem>>, %arg6: memref<2x1x64xf32, #tpu.memory_space<vmem>>, %arg7: memref<2x1x64xf32, #tpu.memory_space<vmem>>, %arg8: memref<2x64x2048xbf16, #tpu.memory_space<vmem>>, %arg9: memref<2x1x2048xf32, #tpu.memory_space<vmem>>, %arg10: memref<2x2048x64xbf16, #tpu.memory_space<vmem>>, %arg11: memref<2x1x64xf32, #tpu.memory_space<vmem>>, %arg12: memref<2x1x64xf32, #tpu.memory_space<vmem>>, %arg13: memref<2x1x64xf32, #tpu.memory_space<vmem>>, %arg14: memref<64x128xbf16, #tpu.memory_space<vmem>>, %arg15: memref<1x128xf32, #tpu.memory_space<vmem>>, %arg16: memref<128x128xbf16, #tpu.memory_space<vmem>>, %arg17: memref<1x128xf32, #tpu.memory_space<vmem>>, %arg18: memref<16x128xf32, #tpu.memory_space<vmem>>) attributes {dimension_semantics = [#tpu.dimension_semantics<parallel>], iteration_bounds = array<i64: 1>, scalar_prefetch = 0 : i64, scratch_operands = 0 : i64, tpu.core_type = #tpu.core_type<tc>, window_params = [{transform_indices = @transform_0, window_bounds = array<i64: 16, 19>}, {pipeline_mode = #tpu.pipeline_mode<synchronous>, transform_indices = @transform_1, window_bounds = array<i64: 19, 64>}, {pipeline_mode = #tpu.pipeline_mode<synchronous>, transform_indices = @transform_2, window_bounds = array<i64: 1, 64>}, {pipeline_mode = #tpu.pipeline_mode<synchronous>, transform_indices = @transform_3, window_bounds = array<i64: 2, 64, 64>}, {pipeline_mode = #tpu.pipeline_mode<synchronous>, transform_indices = @transform_4, window_bounds = array<i64: 2, 1, 64>}, {pipeline_mode = #tpu.pipeline_mode<synchronous>, transform_indices = @transform_5, window_bounds = array<i64: 2, 1, 64>}, {pipeline_mode = #tpu.pipeline_mode<synchronous>, transform_indices = @transform_6, window_bounds = array<i64: 2, 1, 64>}, {pipeline_mode = #tpu.pipeline_mode<synchronous>, transform_indices = @transform_7, window_bounds = array<i64: 2, 64, 2048>}, {pipeline_mode = #tpu.pipeline_mode<synchronous>, transform_indices = @transform_8, window_bounds = array<i64: 2, 1, 2048>}, {pipeline_mode = #tpu.pipeline_mode<synchronous>, transform_indices = @transform_9, window_bounds = array<i64: 2, 2048, 64>}, {pipeline_mode = #tpu.pipeline_mode<synchronous>, transform_indices = @transform_10, window_bounds = array<i64: 2, 1, 64>}, {pipeline_mode = #tpu.pipeline_mode<synchronous>, transform_indices = @transform_11, window_bounds = array<i64: 2, 1, 64>}, {pipeline_mode = #tpu.pipeline_mode<synchronous>, transform_indices = @transform_12, window_bounds = array<i64: 2, 1, 64>}, {pipeline_mode = #tpu.pipeline_mode<synchronous>, transform_indices = @transform_13, window_bounds = array<i64: 64, 128>}, {pipeline_mode = #tpu.pipeline_mode<synchronous>, transform_indices = @transform_14, window_bounds = array<i64: 1, 128>}, {pipeline_mode = #tpu.pipeline_mode<synchronous>, transform_indices = @transform_15, window_bounds = array<i64: 128, 128>}, {pipeline_mode = #tpu.pipeline_mode<synchronous>, transform_indices = @transform_16, window_bounds = array<i64: 1, 128>}, {transform_indices = @transform_17, window_bounds = array<i64: 16, 128>}]} {
    %c0 = arith.constant 0 : index
    %c0_0 = arith.constant 0 : index
    %0 = vector.load %arg1[%c0, %c0_0] : memref<16x19xbf16, #tpu.memory_space<vmem>>, vector<16x19xbf16>
    %c0_1 = arith.constant 0 : index
    %c0_2 = arith.constant 0 : index
    %1 = vector.load %arg2[%c0_1, %c0_2] : memref<19x64xbf16, #tpu.memory_space<vmem>>, vector<19x64xbf16>
    %cst = arith.constant dense<0.000000e+00> : vector<16x64xf32>
    %2 = tpu.matmul %0, %1, %cst {dimension_numbers = #tpu.dot_dimension_numbers<[1], [0], [0], [1], [0, 0, 1, 1], [], []>} : vector<16x19xbf16>, vector<19x64xbf16>, vector<16x64xf32> -> vector<16x64xf32>
    %c0_3 = arith.constant 0 : index
    %c0_4 = arith.constant 0 : index
    %3 = vector.load %arg3[%c0_3, %c0_4] : memref<1x64xf32, #tpu.memory_space<vmem>>, vector<1x64xf32>
    %4 = vector.broadcast %3 : vector<1x64xf32> to vector<16x64xf32>
    %5 = arith.addf %2, %4 : vector<16x64xf32>
    %6 = arith.truncf %5 : vector<16x64xf32> to vector<16x64xbf16>
    %c0_5 = arith.constant 0 : index
    %c0_6 = arith.constant 0 : index
    %c0_7 = arith.constant 0 : index
    %7 = vector.load %arg4[%c0_5, %c0_6, %c0_7] : memref<2x64x64xbf16, #tpu.memory_space<vmem>>, vector<1x64x64xbf16>
    %8 = vector.shape_cast %7 : vector<1x64x64xbf16> to vector<64x64xbf16>
    %cst_8 = arith.constant dense<0.000000e+00> : vector<16x64xf32>
    %9 = tpu.matmul %6, %8, %cst_8 {dimension_numbers = #tpu.dot_dimension_numbers<[1], [0], [0], [1], [0, 0, 1, 1], [], []>} : vector<16x64xbf16>, vector<64x64xbf16>, vector<16x64xf32> -> vector<16x64xf32>
    %c0_9 = arith.constant 0 : index
    %c0_10 = arith.constant 0 : index
    %c0_11 = arith.constant 0 : index
    %10 = vector.load %arg5[%c0_9, %c0_10, %c0_11] : memref<2x1x64xf32, #tpu.memory_space<vmem>>, vector<1x1x64xf32>
    %11 = vector.shape_cast %10 : vector<1x1x64xf32> to vector<1x64xf32>
    %12 = vector.broadcast %11 : vector<1x64xf32> to vector<16x64xf32>
    %13 = arith.addf %9, %12 : vector<16x64xf32>
    %14 = arith.addf %5, %13 : vector<16x64xf32>
    %cst_12 = arith.constant dense<0.000000e+00> : vector<16xf32>
    %15 = vector.multi_reduction <add>, %14, %cst_12 [1] : vector<16x64xf32> to vector<16xf32>
    %16 = vector.shape_cast %15 : vector<16xf32> to vector<16x1xf32>
    %cst_13 = arith.constant 6.400000e+01 : f32
    %17 = vector.broadcast %cst_13 : f32 to vector<16x1xf32>
    %18 = arith.divf %16, %17 : vector<16x1xf32>
    %19 = arith.mulf %14, %14 : vector<16x64xf32>
    %cst_14 = arith.constant dense<0.000000e+00> : vector<16xf32>
    %20 = vector.multi_reduction <add>, %19, %cst_14 [1] : vector<16x64xf32> to vector<16xf32>
    %21 = vector.shape_cast %20 : vector<16xf32> to vector<16x1xf32>
    %cst_15 = arith.constant 6.400000e+01 : f32
    %22 = vector.broadcast %cst_15 : f32 to vector<16x1xf32>
    %23 = arith.divf %21, %22 : vector<16x1xf32>
    %24 = arith.mulf %18, %18 : vector<16x1xf32>
    %25 = arith.subf %23, %24 : vector<16x1xf32>
    %26 = vector.broadcast %18 : vector<16x1xf32> to vector<16x64xf32>
    %27 = arith.subf %14, %26 : vector<16x64xf32>
    %cst_16 = arith.constant 9.99999974E-6 : f32
    %28 = vector.broadcast %cst_16 : f32 to vector<16x1xf32>
    %29 = arith.addf %25, %28 : vector<16x1xf32>
    %30 = math.rsqrt %29 : vector<16x1xf32>
    %31 = vector.broadcast %30 : vector<16x1xf32> to vector<16x64xf32>
    %32 = arith.mulf %27, %31 : vector<16x64xf32>
    %c0_17 = arith.constant 0 : index
    %c0_18 = arith.constant 0 : index
    %c0_19 = arith.constant 0 : index
    %33 = vector.load %arg6[%c0_17, %c0_18, %c0_19] : memref<2x1x64xf32, #tpu.memory_space<vmem>>, vector<1x1x64xf32>
    %34 = vector.shape_cast %33 : vector<1x1x64xf32> to vector<1x64xf32>
    %35 = vector.broadcast %34 : vector<1x64xf32> to vector<16x64xf32>
    %36 = arith.mulf %32, %35 : vector<16x64xf32>
    %c0_20 = arith.constant 0 : index
    %c0_21 = arith.constant 0 : index
    %c0_22 = arith.constant 0 : index
    %37 = vector.load %arg7[%c0_20, %c0_21, %c0_22] : memref<2x1x64xf32, #tpu.memory_space<vmem>>, vector<1x1x64xf32>
    %38 = vector.shape_cast %37 : vector<1x1x64xf32> to vector<1x64xf32>
    %39 = vector.broadcast %38 : vector<1x64xf32> to vector<16x64xf32>
    %40 = arith.addf %36, %39 : vector<16x64xf32>
    %41 = arith.truncf %40 : vector<16x64xf32> to vector<16x64xbf16>
    %c0_23 = arith.constant 0 : index
    %c0_24 = arith.constant 0 : index
    %c0_25 = arith.constant 0 : index
    %42 = vector.load %arg8[%c0_23, %c0_24, %c0_25] : memref<2x64x2048xbf16, #tpu.memory_space<vmem>>, vector<1x64x2048xbf16>
    %43 = vector.shape_cast %42 : vector<1x64x2048xbf16> to vector<64x2048xbf16>
    %cst_26 = arith.constant dense<0.000000e+00> : vector<16x2048xf32>
    %44 = tpu.matmul %41, %43, %cst_26 {dimension_numbers = #tpu.dot_dimension_numbers<[1], [0], [0], [1], [0, 0, 1, 1], [], []>} : vector<16x64xbf16>, vector<64x2048xbf16>, vector<16x2048xf32> -> vector<16x2048xf32>
    %c0_27 = arith.constant 0 : index
    %c0_28 = arith.constant 0 : index
    %c0_29 = arith.constant 0 : index
    %45 = vector.load %arg9[%c0_27, %c0_28, %c0_29] : memref<2x1x2048xf32, #tpu.memory_space<vmem>>, vector<1x1x2048xf32>
    %46 = vector.shape_cast %45 : vector<1x1x2048xf32> to vector<1x2048xf32>
    %47 = vector.broadcast %46 : vector<1x2048xf32> to vector<16x2048xf32>
    %48 = arith.addf %44, %47 : vector<16x2048xf32>
    %cst_30 = arith.constant 0.000000e+00 : f32
    %49 = vector.broadcast %cst_30 : f32 to vector<16x2048xf32>
    %50 = arith.maximumf %48, %49 : vector<16x2048xf32>
    %51 = arith.truncf %50 : vector<16x2048xf32> to vector<16x2048xbf16>
    %c0_31 = arith.constant 0 : index
    %c0_32 = arith.constant 0 : index
    %c0_33 = arith.constant 0 : index
    %52 = vector.load %arg10[%c0_31, %c0_32, %c0_33] : memref<2x2048x64xbf16, #tpu.memory_space<vmem>>, vector<1x2048x64xbf16>
    %53 = vector.shape_cast %52 : vector<1x2048x64xbf16> to vector<2048x64xbf16>
    %cst_34 = arith.constant dense<0.000000e+00> : vector<16x64xf32>
    %54 = tpu.matmul %51, %53, %cst_34 {dimension_numbers = #tpu.dot_dimension_numbers<[1], [0], [0], [1], [0, 0, 1, 1], [], []>} : vector<16x2048xbf16>, vector<2048x64xbf16>, vector<16x64xf32> -> vector<16x64xf32>
    %c0_35 = arith.constant 0 : index
    %c0_36 = arith.constant 0 : index
    %c0_37 = arith.constant 0 : index
    %55 = vector.load %arg11[%c0_35, %c0_36, %c0_37] : memref<2x1x64xf32, #tpu.memory_space<vmem>>, vector<1x1x64xf32>
    %56 = vector.shape_cast %55 : vector<1x1x64xf32> to vector<1x64xf32>
    %57 = vector.broadcast %56 : vector<1x64xf32> to vector<16x64xf32>
    %58 = arith.addf %54, %57 : vector<16x64xf32>
    %59 = arith.addf %40, %58 : vector<16x64xf32>
    %cst_38 = arith.constant dense<0.000000e+00> : vector<16xf32>
    %60 = vector.multi_reduction <add>, %59, %cst_38 [1] : vector<16x64xf32> to vector<16xf32>
    %61 = vector.shape_cast %60 : vector<16xf32> to vector<16x1xf32>
    %cst_39 = arith.constant 6.400000e+01 : f32
    %62 = vector.broadcast %cst_39 : f32 to vector<16x1xf32>
    %63 = arith.divf %61, %62 : vector<16x1xf32>
    %64 = arith.mulf %59, %59 : vector<16x64xf32>
    %cst_40 = arith.constant dense<0.000000e+00> : vector<16xf32>
    %65 = vector.multi_reduction <add>, %64, %cst_40 [1] : vector<16x64xf32> to vector<16xf32>
    %66 = vector.shape_cast %65 : vector<16xf32> to vector<16x1xf32>
    %cst_41 = arith.constant 6.400000e+01 : f32
    %67 = vector.broadcast %cst_41 : f32 to vector<16x1xf32>
    %68 = arith.divf %66, %67 : vector<16x1xf32>
    %69 = arith.mulf %63, %63 : vector<16x1xf32>
    %70 = arith.subf %68, %69 : vector<16x1xf32>
    %71 = vector.broadcast %63 : vector<16x1xf32> to vector<16x64xf32>
    %72 = arith.subf %59, %71 : vector<16x64xf32>
    %cst_42 = arith.constant 9.99999974E-6 : f32
    %73 = vector.broadcast %cst_42 : f32 to vector<16x1xf32>
    %74 = arith.addf %70, %73 : vector<16x1xf32>
    %75 = math.rsqrt %74 : vector<16x1xf32>
    %76 = vector.broadcast %75 : vector<16x1xf32> to vector<16x64xf32>
    %77 = arith.mulf %72, %76 : vector<16x64xf32>
    %c0_43 = arith.constant 0 : index
    %c0_44 = arith.constant 0 : index
    %c0_45 = arith.constant 0 : index
    %78 = vector.load %arg12[%c0_43, %c0_44, %c0_45] : memref<2x1x64xf32, #tpu.memory_space<vmem>>, vector<1x1x64xf32>
    %79 = vector.shape_cast %78 : vector<1x1x64xf32> to vector<1x64xf32>
    %80 = vector.broadcast %79 : vector<1x64xf32> to vector<16x64xf32>
    %81 = arith.mulf %77, %80 : vector<16x64xf32>
    %c0_46 = arith.constant 0 : index
    %c0_47 = arith.constant 0 : index
    %c0_48 = arith.constant 0 : index
    %82 = vector.load %arg13[%c0_46, %c0_47, %c0_48] : memref<2x1x64xf32, #tpu.memory_space<vmem>>, vector<1x1x64xf32>
    %83 = vector.shape_cast %82 : vector<1x1x64xf32> to vector<1x64xf32>
    %84 = vector.broadcast %83 : vector<1x64xf32> to vector<16x64xf32>
    %85 = arith.addf %81, %84 : vector<16x64xf32>
    %86 = arith.truncf %85 : vector<16x64xf32> to vector<16x64xbf16>
    %c1 = arith.constant 1 : index
    %c0_49 = arith.constant 0 : index
    %c0_50 = arith.constant 0 : index
    %87 = vector.load %arg4[%c1, %c0_49, %c0_50] : memref<2x64x64xbf16, #tpu.memory_space<vmem>>, vector<1x64x64xbf16>
    %88 = vector.shape_cast %87 : vector<1x64x64xbf16> to vector<64x64xbf16>
    %cst_51 = arith.constant dense<0.000000e+00> : vector<16x64xf32>
    %89 = tpu.matmul %86, %88, %cst_51 {dimension_numbers = #tpu.dot_dimension_numbers<[1], [0], [0], [1], [0, 0, 1, 1], [], []>} : vector<16x64xbf16>, vector<64x64xbf16>, vector<16x64xf32> -> vector<16x64xf32>
    %c1_52 = arith.constant 1 : index
    %c0_53 = arith.constant 0 : index
    %c0_54 = arith.constant 0 : index
    %90 = vector.load %arg5[%c1_52, %c0_53, %c0_54] : memref<2x1x64xf32, #tpu.memory_space<vmem>>, vector<1x1x64xf32>
    %91 = vector.shape_cast %90 : vector<1x1x64xf32> to vector<1x64xf32>
    %92 = vector.broadcast %91 : vector<1x64xf32> to vector<16x64xf32>
    %93 = arith.addf %89, %92 : vector<16x64xf32>
    %94 = arith.addf %85, %93 : vector<16x64xf32>
    %cst_55 = arith.constant dense<0.000000e+00> : vector<16xf32>
    %95 = vector.multi_reduction <add>, %94, %cst_55 [1] : vector<16x64xf32> to vector<16xf32>
    %96 = vector.shape_cast %95 : vector<16xf32> to vector<16x1xf32>
    %cst_56 = arith.constant 6.400000e+01 : f32
    %97 = vector.broadcast %cst_56 : f32 to vector<16x1xf32>
    %98 = arith.divf %96, %97 : vector<16x1xf32>
    %99 = arith.mulf %94, %94 : vector<16x64xf32>
    %cst_57 = arith.constant dense<0.000000e+00> : vector<16xf32>
    %100 = vector.multi_reduction <add>, %99, %cst_57 [1] : vector<16x64xf32> to vector<16xf32>
    %101 = vector.shape_cast %100 : vector<16xf32> to vector<16x1xf32>
    %cst_58 = arith.constant 6.400000e+01 : f32
    %102 = vector.broadcast %cst_58 : f32 to vector<16x1xf32>
    %103 = arith.divf %101, %102 : vector<16x1xf32>
    %104 = arith.mulf %98, %98 : vector<16x1xf32>
    %105 = arith.subf %103, %104 : vector<16x1xf32>
    %106 = vector.broadcast %98 : vector<16x1xf32> to vector<16x64xf32>
    %107 = arith.subf %94, %106 : vector<16x64xf32>
    %cst_59 = arith.constant 9.99999974E-6 : f32
    %108 = vector.broadcast %cst_59 : f32 to vector<16x1xf32>
    %109 = arith.addf %105, %108 : vector<16x1xf32>
    %110 = math.rsqrt %109 : vector<16x1xf32>
    %111 = vector.broadcast %110 : vector<16x1xf32> to vector<16x64xf32>
    %112 = arith.mulf %107, %111 : vector<16x64xf32>
    %c1_60 = arith.constant 1 : index
    %c0_61 = arith.constant 0 : index
    %c0_62 = arith.constant 0 : index
    %113 = vector.load %arg6[%c1_60, %c0_61, %c0_62] : memref<2x1x64xf32, #tpu.memory_space<vmem>>, vector<1x1x64xf32>
    %114 = vector.shape_cast %113 : vector<1x1x64xf32> to vector<1x64xf32>
    %115 = vector.broadcast %114 : vector<1x64xf32> to vector<16x64xf32>
    %116 = arith.mulf %112, %115 : vector<16x64xf32>
    %c1_63 = arith.constant 1 : index
    %c0_64 = arith.constant 0 : index
    %c0_65 = arith.constant 0 : index
    %117 = vector.load %arg7[%c1_63, %c0_64, %c0_65] : memref<2x1x64xf32, #tpu.memory_space<vmem>>, vector<1x1x64xf32>
    %118 = vector.shape_cast %117 : vector<1x1x64xf32> to vector<1x64xf32>
    %119 = vector.broadcast %118 : vector<1x64xf32> to vector<16x64xf32>
    %120 = arith.addf %116, %119 : vector<16x64xf32>
    %121 = arith.truncf %120 : vector<16x64xf32> to vector<16x64xbf16>
    %c1_66 = arith.constant 1 : index
    %c0_67 = arith.constant 0 : index
    %c0_68 = arith.constant 0 : index
    %122 = vector.load %arg8[%c1_66, %c0_67, %c0_68] : memref<2x64x2048xbf16, #tpu.memory_space<vmem>>, vector<1x64x2048xbf16>
    %123 = vector.shape_cast %122 : vector<1x64x2048xbf16> to vector<64x2048xbf16>
    %cst_69 = arith.constant dense<0.000000e+00> : vector<16x2048xf32>
    %124 = tpu.matmul %121, %123, %cst_69 {dimension_numbers = #tpu.dot_dimension_numbers<[1], [0], [0], [1], [0, 0, 1, 1], [], []>} : vector<16x64xbf16>, vector<64x2048xbf16>, vector<16x2048xf32> -> vector<16x2048xf32>
    %c1_70 = arith.constant 1 : index
    %c0_71 = arith.constant 0 : index
    %c0_72 = arith.constant 0 : index
    %125 = vector.load %arg9[%c1_70, %c0_71, %c0_72] : memref<2x1x2048xf32, #tpu.memory_space<vmem>>, vector<1x1x2048xf32>
    %126 = vector.shape_cast %125 : vector<1x1x2048xf32> to vector<1x2048xf32>
    %127 = vector.broadcast %126 : vector<1x2048xf32> to vector<16x2048xf32>
    %128 = arith.addf %124, %127 : vector<16x2048xf32>
    %cst_73 = arith.constant 0.000000e+00 : f32
    %129 = vector.broadcast %cst_73 : f32 to vector<16x2048xf32>
    %130 = arith.maximumf %128, %129 : vector<16x2048xf32>
    %131 = arith.truncf %130 : vector<16x2048xf32> to vector<16x2048xbf16>
    %c1_74 = arith.constant 1 : index
    %c0_75 = arith.constant 0 : index
    %c0_76 = arith.constant 0 : index
    %132 = vector.load %arg10[%c1_74, %c0_75, %c0_76] : memref<2x2048x64xbf16, #tpu.memory_space<vmem>>, vector<1x2048x64xbf16>
    %133 = vector.shape_cast %132 : vector<1x2048x64xbf16> to vector<2048x64xbf16>
    %cst_77 = arith.constant dense<0.000000e+00> : vector<16x64xf32>
    %134 = tpu.matmul %131, %133, %cst_77 {dimension_numbers = #tpu.dot_dimension_numbers<[1], [0], [0], [1], [0, 0, 1, 1], [], []>} : vector<16x2048xbf16>, vector<2048x64xbf16>, vector<16x64xf32> -> vector<16x64xf32>
    %c1_78 = arith.constant 1 : index
    %c0_79 = arith.constant 0 : index
    %c0_80 = arith.constant 0 : index
    %135 = vector.load %arg11[%c1_78, %c0_79, %c0_80] : memref<2x1x64xf32, #tpu.memory_space<vmem>>, vector<1x1x64xf32>
    %136 = vector.shape_cast %135 : vector<1x1x64xf32> to vector<1x64xf32>
    %137 = vector.broadcast %136 : vector<1x64xf32> to vector<16x64xf32>
    %138 = arith.addf %134, %137 : vector<16x64xf32>
    %139 = arith.addf %120, %138 : vector<16x64xf32>
    %cst_81 = arith.constant dense<0.000000e+00> : vector<16xf32>
    %140 = vector.multi_reduction <add>, %139, %cst_81 [1] : vector<16x64xf32> to vector<16xf32>
    %141 = vector.shape_cast %140 : vector<16xf32> to vector<16x1xf32>
    %cst_82 = arith.constant 6.400000e+01 : f32
    %142 = vector.broadcast %cst_82 : f32 to vector<16x1xf32>
    %143 = arith.divf %141, %142 : vector<16x1xf32>
    %144 = arith.mulf %139, %139 : vector<16x64xf32>
    %cst_83 = arith.constant dense<0.000000e+00> : vector<16xf32>
    %145 = vector.multi_reduction <add>, %144, %cst_83 [1] : vector<16x64xf32> to vector<16xf32>
    %146 = vector.shape_cast %145 : vector<16xf32> to vector<16x1xf32>
    %cst_84 = arith.constant 6.400000e+01 : f32
    %147 = vector.broadcast %cst_84 : f32 to vector<16x1xf32>
    %148 = arith.divf %146, %147 : vector<16x1xf32>
    %149 = arith.mulf %143, %143 : vector<16x1xf32>
    %150 = arith.subf %148, %149 : vector<16x1xf32>
    %151 = vector.broadcast %143 : vector<16x1xf32> to vector<16x64xf32>
    %152 = arith.subf %139, %151 : vector<16x64xf32>
    %cst_85 = arith.constant 9.99999974E-6 : f32
    %153 = vector.broadcast %cst_85 : f32 to vector<16x1xf32>
    %154 = arith.addf %150, %153 : vector<16x1xf32>
    %155 = math.rsqrt %154 : vector<16x1xf32>
    %156 = vector.broadcast %155 : vector<16x1xf32> to vector<16x64xf32>
    %157 = arith.mulf %152, %156 : vector<16x64xf32>
    %158 = arith.truncf %157 : vector<16x64xf32> to vector<16x64xbf16>
    %c0_86 = arith.constant 0 : index
    %c0_87 = arith.constant 0 : index
    %159 = vector.load %arg14[%c0_86, %c0_87] : memref<64x128xbf16, #tpu.memory_space<vmem>>, vector<64x128xbf16>
    %cst_88 = arith.constant dense<0.000000e+00> : vector<16x128xf32>
    %160 = tpu.matmul %158, %159, %cst_88 {dimension_numbers = #tpu.dot_dimension_numbers<[1], [0], [0], [1], [0, 0, 1, 1], [], []>} : vector<16x64xbf16>, vector<64x128xbf16>, vector<16x128xf32> -> vector<16x128xf32>
    %c0_89 = arith.constant 0 : index
    %c0_90 = arith.constant 0 : index
    %161 = vector.load %arg15[%c0_89, %c0_90] : memref<1x128xf32, #tpu.memory_space<vmem>>, vector<1x128xf32>
    %162 = vector.broadcast %161 : vector<1x128xf32> to vector<16x128xf32>
    %163 = arith.addf %160, %162 : vector<16x128xf32>
    %cst_91 = arith.constant 0.000000e+00 : f32
    %164 = vector.broadcast %cst_91 : f32 to vector<16x128xf32>
    %165 = arith.maximumf %163, %164 : vector<16x128xf32>
    %166 = arith.truncf %165 : vector<16x128xf32> to vector<16x128xbf16>
    %c0_92 = arith.constant 0 : index
    %c0_93 = arith.constant 0 : index
    %167 = vector.load %arg16[%c0_92, %c0_93] : memref<128x128xbf16, #tpu.memory_space<vmem>>, vector<128x128xbf16>
    %cst_94 = arith.constant dense<0.000000e+00> : vector<16x128xf32>
    %168 = tpu.matmul %166, %167, %cst_94 {dimension_numbers = #tpu.dot_dimension_numbers<[1], [0], [0], [1], [0, 0, 1, 1], [], []>} : vector<16x128xbf16>, vector<128x128xbf16>, vector<16x128xf32> -> vector<16x128xf32>
    %c0_95 = arith.constant 0 : index
    %c0_96 = arith.constant 0 : index
    %169 = vector.load %arg17[%c0_95, %c0_96] : memref<1x128xf32, #tpu.memory_space<vmem>>, vector<1x128xf32>
    %170 = vector.broadcast %169 : vector<1x128xf32> to vector<16x128xf32>
    %171 = arith.addf %168, %170 : vector<16x128xf32>
    %c0_97 = arith.constant 0 : index
    %c0_98 = arith.constant 0 : index
    %172 = vector.load %arg18[%c0_97, %c0_98] : memref<16x128xf32, #tpu.memory_space<vmem>>, vector<16x128xf32>
    tpu.vector_store %arg18[%c0_97, %c0_98], %171 {strides = array<i32>} : memref<16x128xf32, #tpu.memory_space<vmem>>, vector<16x128xf32>,
    return
  }
  func.func @transform_0(%arg0: i32) -> (i32, i32) {
    %c0_i32 = arith.constant 0 : i32
    %c0_i32_0 = arith.constant 0 : i32
    return %arg0, %c0_i32 : i32, i32
  }
  func.func @transform_1(%arg0: i32) -> (i32, i32) {
    %c0_i32 = arith.constant 0 : i32
    %c0_i32_0 = arith.constant 0 : i32
    %c0_i32_1 = arith.constant 0 : i32
    return %c0_i32, %c0_i32_0 : i32, i32
  }
  func.func @transform_2(%arg0: i32) -> (i32, i32) {
    %c0_i32 = arith.constant 0 : i32
    %c0_i32_0 = arith.constant 0 : i32
    %c0_i32_1 = arith.constant 0 : i32
    return %c0_i32, %c0_i32_0 : i32, i32
  }
  func.func @transform_3(%arg0: i32) -> (i32, i32, i32) {
    %c0_i32 = arith.constant 0 : i32
    %c0_i32_0 = arith.constant 0 : i32
    %c0_i32_1 = arith.constant 0 : i32
    %c0_i32_2 = arith.constant 0 : i32
    return %c0_i32, %c0_i32_0, %c0_i32_1 : i32, i32, i32
  }
  func.func @transform_4(%arg0: i32) -> (i32, i32, i32) {
    %c0_i32 = arith.constant 0 : i32
    %c0_i32_0 = arith.constant 0 : i32
    %c0_i32_1 = arith.constant 0 : i32
    %c0_i32_2 = arith.constant 0 : i32
    return %c0_i32, %c0_i32_0, %c0_i32_1 : i32, i32, i32
  }
  func.func @transform_5(%arg0: i32) -> (i32, i32, i32) {
    %c0_i32 = arith.constant 0 : i32
    %c0_i32_0 = arith.constant 0 : i32
    %c0_i32_1 = arith.constant 0 : i32
    %c0_i32_2 = arith.constant 0 : i32
    return %c0_i32, %c0_i32_0, %c0_i32_1 : i32, i32, i32
  }
  func.func @transform_6(%arg0: i32) -> (i32, i32, i32) {
    %c0_i32 = arith.constant 0 : i32
    %c0_i32_0 = arith.constant 0 : i32
    %c0_i32_1 = arith.constant 0 : i32
    %c0_i32_2 = arith.constant 0 : i32
    return %c0_i32, %c0_i32_0, %c0_i32_1 : i32, i32, i32
  }
  func.func @transform_7(%arg0: i32) -> (i32, i32, i32) {
    %c0_i32 = arith.constant 0 : i32
    %c0_i32_0 = arith.constant 0 : i32
    %c0_i32_1 = arith.constant 0 : i32
    %c0_i32_2 = arith.constant 0 : i32
    return %c0_i32, %c0_i32_0, %c0_i32_1 : i32, i32, i32
  }
  func.func @transform_8(%arg0: i32) -> (i32, i32, i32) {
    %c0_i32 = arith.constant 0 : i32
    %c0_i32_0 = arith.constant 0 : i32
    %c0_i32_1 = arith.constant 0 : i32
    %c0_i32_2 = arith.constant 0 : i32
    return %c0_i32, %c0_i32_0, %c0_i32_1 : i32, i32, i32
  }
  func.func @transform_9(%arg0: i32) -> (i32, i32, i32) {
    %c0_i32 = arith.constant 0 : i32
    %c0_i32_0 = arith.constant 0 : i32
    %c0_i32_1 = arith.constant 0 : i32
    %c0_i32_2 = arith.constant 0 : i32
    return %c0_i32, %c0_i32_0, %c0_i32_1 : i32, i32, i32
  }
  func.func @transform_10(%arg0: i32) -> (i32, i32, i32) {
    %c0_i32 = arith.constant 0 : i32
    %c0_i32_0 = arith.constant 0 : i32
    %c0_i32_1 = arith.constant 0 : i32
    %c0_i32_2 = arith.constant 0 : i32
    return %c0_i32, %c0_i32_0, %c0_i32_1 : i32, i32, i32
  }
  func.func @transform_11(%arg0: i32) -> (i32, i32, i32) {
    %c0_i32 = arith.constant 0 : i32
    %c0_i32_0 = arith.constant 0 : i32
    %c0_i32_1 = arith.constant 0 : i32
    %c0_i32_2 = arith.constant 0 : i32
    return %c0_i32, %c0_i32_0, %c0_i32_1 : i32, i32, i32
  }
  func.func @transform_12(%arg0: i32) -> (i32, i32, i32) {
    %c0_i32 = arith.constant 0 : i32
    %c0_i32_0 = arith.constant 0 : i32
    %c0_i32_1 = arith.constant 0 : i32
    %c0_i32_2 = arith.constant 0 : i32
    return %c0_i32, %c0_i32_0, %c0_i32_1 : i32, i32, i32
  }
  func.func @transform_13(%arg0: i32) -> (i32, i32) {
    %c0_i32 = arith.constant 0 : i32
    %c0_i32_0 = arith.constant 0 : i32
    %c0_i32_1 = arith.constant 0 : i32
    return %c0_i32, %c0_i32_0 : i32, i32
  }
  func.func @transform_14(%arg0: i32) -> (i32, i32) {
    %c0_i32 = arith.constant 0 : i32
    %c0_i32_0 = arith.constant 0 : i32
    %c0_i32_1 = arith.constant 0 : i32
    return %c0_i32, %c0_i32_0 : i32, i32
  }
  func.func @transform_15(%arg0: i32) -> (i32, i32) {
    %c0_i32 = arith.constant 0 : i32
    %c0_i32_0 = arith.constant 0 : i32
    %c0_i32_1 = arith.constant 0 : i32
    return %c0_i32, %c0_i32_0 : i32, i32
  }
  func.func @transform_16(%arg0: i32) -> (i32, i32) {
    %c0_i32 = arith.constant 0 : i32
    %c0_i32_0 = arith.constant 0 : i32
    %c0_i32_1 = arith.constant 0 : i32
    return %c0_i32, %c0_i32_0 : i32, i32
  }
  func.func @transform_17(%arg0: i32) -> (i32, i32) {
    %c0_i32 = arith.constant 0 : i32
    %c0_i32_0 = arith.constant 0 : i32
    return %arg0, %c0_i32 : i32, i32
  }
}

</mosaic_0001>

<bundles_post_ra>
// kernel: tpu_custom_call.1
= control target key start
LH: loop header
LB: loop body
LE: loop exit
PB: predicated region body
PF: predicated region fallthrough
CT: control target
= control target key end

     0   :  { %s7657_s0 = inlined_call_operand.hbm [shape: bf16[16,19], index: 0, kind: input, shape index: {}]   ;;  %s7658_s1 = inlined_call_operand.hbm [shape: bf16[19,64], index: 1, kind: input, shape index: {}]   ;;  %s7659_s2 = inlined_call_operand.hbm [shape: f32[1,64], index: 2, kind: input, shape index: {}]   ;;  %s7660_s3 = inlined_call_operand.hbm [shape: bf16[2,64,64], index: 3, kind: input, shape index: {}]   ;;  %s7661_s4 = inlined_call_operand.hbm [shape: f32[2,1,64], index: 4, kind: input, shape index: {}]   ;;  %s7662_s5 = inlined_call_operand.hbm [shape: f32[2,1,64], index: 5, kind: input, shape index: {}]   ;;  %s7663_s6 = inlined_call_operand.hbm [shape: f32[2,1,64], index: 6, kind: input, shape index: {}]   ;;  %s7664_s7 = inlined_call_operand.hbm [shape: bf16[2,64,2048], index: 7, kind: input, shape index: {}]   ;;  %s7665_s8 = inlined_call_operand.hbm [shape: f32[2,1,2048], index: 8, kind: input, shape index: {}]   ;;  %s7666_s9 = inlined_call_operand.hbm [shape: bf16[2,2048,64], index: 9, kind: input, shape index: {}]   ;;  %s7667_s10 = inlined_call_operand.hbm [shape: f32[2,1,64], index: 10, kind: input, shape index: {}]   ;;  %s7668_s11 = inlined_call_operand.hbm [shape: f32[2,1,64], index: 11, kind: input, shape index: {}]   ;;  %s7669_s12 = inlined_call_operand.hbm [shape: f32[2,1,64], index: 12, kind: input, shape index: {}]   ;;  %s7670_s13 = inlined_call_operand.hbm [shape: bf16[64,128], index: 13, kind: input, shape index: {}]   ;;  %s7671_s14 = inlined_call_operand.hbm [shape: f32[1,128], index: 14, kind: input, shape index: {}]   ;;  %s7672_s15 = inlined_call_operand.hbm [shape: bf16[128,128], index: 15, kind: input, shape index: {}]   ;;  %s7673_s16 = inlined_call_operand.hbm [shape: f32[1,128], index: 16, kind: input, shape index: {}]   ;;  %s7674_s17 = inlined_call_operand.hbm [shape: f32[16,128], index: 17, kind: output, shape index: {}]  }
   0x1   :  { %7680 = sst [smem:[#allocation40_spill]] %s7657_s0 }
   0x2   :  { %7681 = sst [smem:[#allocation41_spill]] %s7658_s1 }
   0x3   :  { %7682 = sst [smem:[#allocation42_spill]] %s7674_s17 }
   0x4   :  { %22 = vsyncpa [#allocation3], 0 }
   0x5   :  { %23 = vsyncpa [#allocation6], 0 }
   0x6   :  { %24 = vsyncpa [#allocation9], 0 }
   0x7   :  { %25 = vsyncpa [#allocation12], 0 }
   0x8   :  { %26 = vsyncpa [#allocation15], 0 }
   0x9   :  { %27 = vsyncpa [#allocation18], 0 }
   0xa   :  { %28 = vsyncpa [#allocation21], 0 }
   0xb   :  { %29 = vsyncpa [#allocation24], 0 }
   0xc   :  { %30 = vsyncpa [#allocation27], 0 }
   0xd   :  { %31 = vsyncpa [#allocation4], 0  ;;  %s7016_s24 = smov [#allocation5]   ;;  %s7017_s26 = smov [#allocation8]  }
   0xe   :  { %s49_s25 = sshll.u32 %s7016_s24, 4  ;;  %s71_s27 = sshll.u32 %s7017_s26, 4  ;;  %s50_s25 = int_to_ptr.vmem [resolvable:$true] %s49_s25  ;;  %s7136_s27 = int_to_ptr.vmem [resolvable:$true] %s71_s27 }
   0xf   :  { %s7683_s0 = sld [smem:[#allocation41_spill]] }
  0x15   :  { %s6600_s30 = scalar_lea.hbm %s7683_s0, 192 }
  0x16   :  { %p6601_p0 = scmp.ne.s32.totalorder %s7683_s0, %s6600_s30  ;;  %p6604_p1 = scmp.lt.u32.totalorder %s6600_s30, %s7683_s0 }
  0x18   :  { %p6606_p2 = pnand %p6604_p1, %p6601_p0 }
  0x1a   :  { %6609 = shalt.err (!%p6606_p2)
}
  0x1b   :  { %s6610_s21 = scalar_lea.vmem %s50_s25, 192  ;;  %p6615_p4 = scmp.lt.s32.totalorder %s50_s25, %s50_s25 }
  0x1c   :  { %p6611_p3 = scmp.ne.s32.totalorder %s50_s25, %s6610_s21  ;;  %p6616_p5 = scmp.lt.s32.totalorder %s6610_s21, %s6610_s21 }
  0x1e   :  { %p6617_p6 = por %p6616_p5, %p6615_p4 }
  0x20   :  { %p6618_p7 = pnand %p6617_p6, %p6611_p3 }
  0x22   :  { %6621 = shalt.err (!%p6618_p7)
}
  0x23   :  { %s7018_s22 = smov 64   ;;  %s7019_s23 = smov 4  }
  0x24   :  { %55 = dma.hbm_to_vmem [thread:$0]  %s7683_s0, 192, %s50_s25, [#allocation6], %s7018_s22, %s7018_s22, %s7019_s23  }
  0x25   :  { %s6622_s30 = scalar_lea.hbm %s7660_s3, 1024 }
  0x26   :  { %p6623_p8 = scmp.ne.s32.totalorder %s7660_s3, %s6622_s30  ;;  %p6626_p9 = scmp.lt.u32.totalorder %s6622_s30, %s7660_s3 }
  0x28   :  { %p6628_p10 = pnand %p6626_p9, %p6623_p8 }
  0x2a   :  { %6631 = shalt.err (!%p6628_p10)
}
  0x2b   :  { %s6632_s21 = scalar_lea.vmem %s7136_s27, 1024  ;;  %p6637_p12 = scmp.lt.s32.totalorder %s7136_s27, %s7136_s27 }
  0x2c   :  { %p6633_p11 = scmp.ne.s32.totalorder %s7136_s27, %s6632_s21  ;;  %p6638_p13 = scmp.lt.s32.totalorder %s6632_s21, %s6632_s21 }
  0x2e   :  { %p6639_p0 = por %p6638_p13, %p6637_p12 }
  0x30   :  { %p6640_p1 = pnand %p6639_p0, %p6633_p11 }
  0x32   :  { %6643 = shalt.err (!%p6640_p1)
}
  0x33   :  { %77 = dma.hbm_to_vmem [thread:$0]  %s7660_s3, 1024, %s7136_s27, [#allocation9], %s7018_s22, %s7018_s22, %s7019_s23  }
  0x34   :  { %s7020_s24 = smov [#allocation11]   ;;  %s7021_s28 = smov [#allocation14]  }
  0x35   :  { %s95_s26 = sshll.u32 %s7020_s24, 4  ;;  %s119_s29 = sshll.u32 %s7021_s28, 4  ;;  %s96_s26 = int_to_ptr.vmem [resolvable:$true] %s95_s26  ;;  %s7173_s29 = int_to_ptr.vmem [resolvable:$true] %s119_s29 }
  0x36   :  { %s6644_s19 = scalar_lea.hbm %s7662_s5, 32 }
  0x37   :  { %p6645_p2 = scmp.ne.s32.totalorder %s7662_s5, %s6644_s19  ;;  %p6648_p3 = scmp.lt.u32.totalorder %s6644_s19, %s7662_s5 }
  0x39   :  { %p6650_p4 = pnand %p6648_p3, %p6645_p2 }
  0x3b   :  { %6653 = shalt.err (!%p6650_p4)
}
  0x3c   :  { %s6654_s3 = scalar_lea.vmem %s96_s26, 32  ;;  %p6659_p6 = scmp.lt.s32.totalorder %s96_s26, %s96_s26 }
  0x3d   :  { %p6655_p5 = scmp.ne.s32.totalorder %s96_s26, %s6654_s3  ;;  %p6660_p7 = scmp.lt.s32.totalorder %s6654_s3, %s6654_s3 }
  0x3f   :  { %p6661_p8 = por %p6660_p7, %p6659_p6 }
  0x41   :  { %p6662_p9 = pnand %p6661_p8, %p6655_p5 }
  0x43   :  { %6665 = shalt.err (!%p6662_p9)
}
  0x44   :  { %s7678_s27 = smov 16   ;;  %s7023_s25 = smov 1  }
  0x45   :  { %101 = dma.hbm_to_vmem [thread:$0]  %s7662_s5, 32, %s96_s26, [#allocation12], %s7678_s27, %s7678_s27, %s7023_s25  }
  0x46   :  { %s6666_s30 = scalar_lea.hbm %s7664_s7, 16384 }
  0x47   :  { %p6667_p10 = scmp.ne.s32.totalorder %s7664_s7, %s6666_s30  ;;  %p6670_p11 = scmp.lt.u32.totalorder %s6666_s30, %s7664_s7 }
  0x49   :  { %p6672_p12 = pnand %p6670_p11, %p6667_p10 }
  0x4b   :  { %6675 = shalt.err (!%p6672_p12)
}
  0x4c   :  { %s6676_s21 = scalar_lea.vmem %s7173_s29, 16384  ;;  %p6681_p0 = scmp.lt.s32.totalorder %s7173_s29, %s7173_s29 }
  0x4d   :  { %p6677_p13 = scmp.ne.s32.totalorder %s7173_s29, %s6676_s21  ;;  %p6682_p1 = scmp.lt.s32.totalorder %s6676_s21, %s6676_s21 }
  0x4f   :  { %p6683_p2 = por %p6682_p1, %p6681_p0 }
  0x51   :  { %p6684_p3 = pnand %p6683_p2, %p6677_p13 }
  0x53   :  { %6687 = shalt.err (!%p6684_p3)
}
  0x54   :  { %s7024_s5 = smov 1024   ;;  %s7025_s0 = smov [#allocation17]  }
  0x55   :  { %125 = dma.hbm_to_vmem [thread:$0]  %s7664_s7, 16384, %s7173_s29, [#allocation15], %s7024_s5, %s7024_s5, %s7018_s22  }
  0x56   :  { %s143_s24 = sshll.u32 %s7025_s0, 4  ;;  %s7026_s17 = smov [#allocation20]   ;;  %s144_s24 = int_to_ptr.vmem [resolvable:$true] %s143_s24 }
  0x57   :  { %s167_s28 = sshll.u32 %s7026_s17, 4  ;;  %s6688_s19 = scalar_lea.hbm %s7666_s9, 32768  ;;  %s168_s28 = int_to_ptr.vmem [resolvable:$true] %s167_s28 }
  0x58   :  { %p6689_p4 = scmp.ne.s32.totalorder %s7666_s9, %s6688_s19  ;;  %p6692_p5 = scmp.lt.u32.totalorder %s6688_s19, %s7666_s9 }
  0x5a   :  { %p6694_p6 = pnand %p6692_p5, %p6689_p4 }
  0x5c   :  { %6697 = shalt.err (!%p6694_p6)
}
  0x5d   :  { %s6698_s7 = scalar_lea.vmem %s144_s24, 32768  ;;  %p6703_p8 = scmp.lt.s32.totalorder %s144_s24, %s144_s24 }
  0x5e   :  { %p6699_p7 = scmp.ne.s32.totalorder %s144_s24, %s6698_s7  ;;  %p6704_p9 = scmp.lt.s32.totalorder %s6698_s7, %s6698_s7 }
  0x60   :  { %p6705_p10 = por %p6704_p9, %p6703_p8 }
  0x62   :  { %p6706_p11 = pnand %p6705_p10, %p6699_p7 }
  0x64   :  { %6709 = shalt.err (!%p6706_p11)
}
  0x65   :  { %149 = dma.hbm_to_vmem [thread:$0]  %s7666_s9, 32768, %s144_s24, [#allocation18], %s7018_s22, %s7018_s22, %s7019_s23  }
  0x66   :  { %s6710_s3 = scalar_lea.hbm %s7668_s11, 32 }
  0x67   :  { %p6711_p12 = scmp.ne.s32.totalorder %s7668_s11, %s6710_s3  ;;  %p6714_p13 = scmp.lt.u32.totalorder %s6710_s3, %s7668_s11 }
  0x69   :  { %p6716_p0 = pnand %p6714_p13, %p6711_p12 }
  0x6b   :  { %6719 = shalt.err (!%p6716_p0)
}
  0x6c   :  { %s6720_s19 = scalar_lea.vmem %s168_s28, 32  ;;  %p6725_p2 = scmp.lt.s32.totalorder %s168_s28, %s168_s28 }
  0x6d   :  { %p6721_p1 = scmp.ne.s32.totalorder %s168_s28, %s6720_s19  ;;  %p6726_p3 = scmp.lt.s32.totalorder %s6720_s19, %s6720_s19 }
  0x6f   :  { %p6727_p4 = por %p6726_p3, %p6725_p2 }
  0x71   :  { %p6728_p5 = pnand %p6727_p4, %p6721_p1 }
  0x73   :  { %6731 = shalt.err (!%p6728_p5)
}
  0x74   :  { %s7684_s9 = smov 16   ;;  %s7027_s20 = smov [#allocation23]  }
  0x75   :  { %173 = dma.hbm_to_vmem [thread:$0]  %s7668_s11, 32, %s168_s28, [#allocation21], %s7684_s9, %s7684_s9, %s7023_s25  }
  0x76   :  { %s191_s21 = sshll.u32 %s7027_s20, 4  ;;  %s7028_s7 = smov [#allocation26]   ;;  %s192_s21 = int_to_ptr.vmem [resolvable:$true] %s191_s21 }
  0x77   :  { %s213_s29 = sshll.u32 %s7028_s7, 4  ;;  %s6732_s27 = scalar_lea.hbm %s7670_s13, 512  ;;  %s214_s29 = int_to_ptr.vmem [resolvable:$true] %s213_s29 }
  0x78   :  { %p6733_p6 = scmp.ne.s32.totalorder %s7670_s13, %s6732_s27  ;;  %p6736_p7 = scmp.lt.u32.totalorder %s6732_s27, %s7670_s13 }
  0x7a   :  { %p6738_p8 = pnand %p6736_p7, %p6733_p6 }
  0x7c   :  { %6741 = shalt.err (!%p6738_p8)
}
  0x7d   :  { %s6742_s11 = scalar_lea.vmem %s192_s21, 512  ;;  %p6747_p10 = scmp.lt.s32.totalorder %s192_s21, %s192_s21 }
  0x7e   :  { %p6743_p9 = scmp.ne.s32.totalorder %s192_s21, %s6742_s11  ;;  %p6748_p11 = scmp.lt.s32.totalorder %s6742_s11, %s6742_s11 }
  0x80   :  { %p6749_p12 = por %p6748_p11, %p6747_p10 }
  0x82   :  { %p6750_p13 = pnand %p6749_p12, %p6743_p9 }
  0x84   :  { %6753 = shalt.err (!%p6750_p13)
}
  0x85   :  { %197 = dma.hbm_to_vmem [thread:$0]  %s7670_s13, 512, %s192_s21, [#allocation24], %s7018_s22, %s7018_s22, %s7019_s23  }
  0x86   :  { %s6754_s1 = scalar_lea.hbm %s7672_s15, 1024 }
  0x87   :  { %p6755_p0 = scmp.ne.s32.totalorder %s7672_s15, %s6754_s1  ;;  %p6758_p1 = scmp.lt.u32.totalorder %s6754_s1, %s7672_s15 }
  0x89   :  { %p6760_p2 = pnand %p6758_p1, %p6755_p0 }
  0x8b   :  { %6763 = shalt.err (!%p6760_p2)
}
  0x8c   :  { %s6764_s27 = scalar_lea.vmem %s214_s29, 1024  ;;  %p6769_p4 = scmp.lt.s32.totalorder %s214_s29, %s214_s29 }
  0x8d   :  { %p6765_p3 = scmp.ne.s32.totalorder %s214_s29, %s6764_s27  ;;  %p6770_p5 = scmp.lt.s32.totalorder %s6764_s27, %s6764_s27 }
  0x8f   :  { %p6771_p6 = por %p6770_p5, %p6769_p4 }
  0x91   :  { %p6772_p7 = pnand %p6771_p6, %p6765_p3 }
  0x93   :  { %6775 = shalt.err (!%p6772_p7)
}
  0x94   :  { %219 = dma.hbm_to_vmem [thread:$0]  %s7672_s15, 1024, %s214_s29, [#allocation27], %s7018_s22, %s7018_s22, %s7019_s23  }
  0x95   :  { %s7029_s3 = smov [#allocation2]   ;;  %s7030_s17 = smov [#allocation7]  }
  0x96   :  { %s37_s0 = sshll.u32 %s7029_s3, 4  ;;  %s62_s30 = sshll.u32 %s7030_s17, 4  ;;  %s38_s0 = int_to_ptr.vmem [resolvable:$true] %s37_s0  ;;  %s63_s30 = int_to_ptr.vmem [resolvable:$true] %s62_s30 }
  0x97   :  { %s7685_s18 = sld [smem:[#allocation40_spill]] }
  0x9d   :  { %s6776_s19 = scalar_lea.hbm %s7685_s18, 128 }
  0x9e   :  { %p6777_p8 = scmp.ne.s32.totalorder %s7685_s18, %s6776_s19  ;;  %p6780_p9 = scmp.lt.u32.totalorder %s6776_s19, %s7685_s18 }
  0xa0   :  { %p6782_p10 = pnand %p6780_p9, %p6777_p8 }
  0xa2   :  { %6785 = shalt.err (!%p6782_p10)
}
  0xa3   :  { %s6786_s15 = scalar_lea.vmem %s38_s0, 128  ;;  %p6791_p12 = scmp.lt.s32.totalorder %s38_s0, %s38_s0 }
  0xa4   :  { %p6787_p11 = scmp.ne.s32.totalorder %s38_s0, %s6786_s15  ;;  %p6792_p13 = scmp.lt.s32.totalorder %s6786_s15, %s6786_s15 }
  0xa6   :  { %p6793_p0 = por %p6792_p13, %p6791_p12 }
  0xa8   :  { %p6794_p1 = pnand %p6793_p0, %p6787_p11 }
  0xaa   :  { %6797 = shalt.err (!%p6794_p1)
}
  0xab   :  { %43 = dma.hbm_to_vmem [thread:$0]  %s7685_s18, 128, %s38_s0, [#allocation3], %s7018_s22, %s7018_s22, %s7019_s23  }
  0xac   :  { %s6798_s13 = scalar_lea.hbm %s7659_s2, 16 }
  0xad   :  { %p6799_p2 = scmp.ne.s32.totalorder %s7659_s2, %s6798_s13  ;;  %p6802_p3 = scmp.lt.u32.totalorder %s6798_s13, %s7659_s2 }
  0xaf   :  { %p6804_p4 = pnand %p6802_p3, %p6799_p2 }
  0xb1   :  { %6807 = shalt.err (!%p6804_p4)
}
  0xb2   :  { %s6808_s28 = scalar_lea.vmem %s63_s30, 16  ;;  %s6812_s19 = scalar_lea.vmem %s63_s30, 32 }
  0xb3   :  { %p6809_p5 = scmp.ne.s32.totalorder %s63_s30, %s6808_s28  ;;  %p6813_p6 = scmp.lt.s32.totalorder %s63_s30, %s63_s30 }
  0xb4   :  { %p6814_p7 = scmp.lt.s32.totalorder %s6812_s19, %s6808_s28 }
  0xb6   :  { %p6815_p8 = por %p6814_p7, %p6813_p6 }
  0xb8   :  { %p6816_p9 = pnand %p6815_p8, %p6809_p5 }
  0xba   :  { %6819 = shalt.err (!%p6816_p9)
}
  0xbb   :  { %65 = dma.hbm_to_vmem [thread:$0]  %s7659_s2, 16, %s63_s30, [#allocation6]  }
  0xbc   :  { %s7031_s0 = smov [#allocation10]   ;;  %s7032_s24 = smov [#allocation13]  }
  0xbd   :  { %s83_s18 = sshll.u32 %s7031_s0, 4  ;;  %s107_s1 = sshll.u32 %s7032_s24, 4  ;;  %s84_s18 = int_to_ptr.vmem [resolvable:$true] %s83_s18  ;;  %s108_s1 = int_to_ptr.vmem [resolvable:$true] %s107_s1 }
  0xbe   :  { %s6820_s15 = scalar_lea.hbm %s7661_s4, 32 }
  0xbf   :  { %p6821_p10 = scmp.ne.s32.totalorder %s7661_s4, %s6820_s15  ;;  %p6824_p11 = scmp.lt.u32.totalorder %s6820_s15, %s7661_s4 }
  0xc1   :  { %p6826_p12 = pnand %p6824_p11, %p6821_p10 }
  0xc3   :  { %6829 = shalt.err (!%p6826_p12)
}
  0xc4   :  { %s6830_s2 = scalar_lea.vmem %s84_s18, 32  ;;  %p6835_p0 = scmp.lt.s32.totalorder %s84_s18, %s84_s18 }
  0xc5   :  { %p6831_p13 = scmp.ne.s32.totalorder %s84_s18, %s6830_s2  ;;  %p6836_p1 = scmp.lt.s32.totalorder %s6830_s2, %s6830_s2 }
  0xc7   :  { %p6837_p2 = por %p6836_p1, %p6835_p0 }
  0xc9   :  { %p6838_p3 = pnand %p6837_p2, %p6831_p13 }
  0xcb   :  { %6841 = shalt.err (!%p6838_p3)
}
  0xcc   :  { %89 = dma.hbm_to_vmem [thread:$0]  %s7661_s4, 32, %s84_s18, [#allocation9], %s7684_s9, %s7684_s9, %s7023_s25  }
  0xcd   :  { %s6842_s17 = scalar_lea.hbm %s7663_s6, 32 }
  0xce   :  { %p6843_p4 = scmp.ne.s32.totalorder %s7663_s6, %s6842_s17  ;;  %p6846_p5 = scmp.lt.u32.totalorder %s6842_s17, %s7663_s6 }
  0xd0   :  { %p6848_p6 = pnand %p6846_p5, %p6843_p4 }
  0xd2   :  { %6851 = shalt.err (!%p6848_p6)
}
  0xd3   :  { %s6852_s23 = scalar_lea.vmem %s108_s1, 32  ;;  %p6857_p8 = scmp.lt.s32.totalorder %s108_s1, %s108_s1 }
  0xd4   :  { %p6853_p7 = scmp.ne.s32.totalorder %s108_s1, %s6852_s23  ;;  %p6858_p9 = scmp.lt.s32.totalorder %s6852_s23, %s6852_s23 }
  0xd6   :  { %p6859_p10 = por %p6858_p9, %p6857_p8 }
  0xd8   :  { %p6860_p11 = pnand %p6859_p10, %p6853_p7 }
  0xda   :  { %6863 = shalt.err (!%p6860_p11)
}
  0xdb   :  { %113 = dma.hbm_to_vmem [thread:$0]  %s7663_s6, 32, %s108_s1, [#allocation12], %s7684_s9, %s7684_s9, %s7023_s25  }
  0xdc   :  { %s7033_s18 = smov [#allocation16]   ;;  %s6864_s15 = scalar_lea.hbm %s7665_s8, 512 }
  0xdd   :  { %s131_s24 = sshll.u32 %s7033_s18, 4  ;;  %p6865_p12 = scmp.ne.s32.totalorder %s7665_s8, %s6864_s15  ;;  %s132_s24 = int_to_ptr.vmem [resolvable:$true] %s131_s24 }
  0xde   :  { %p6868_p13 = scmp.lt.u32.totalorder %s6864_s15, %s7665_s8 }
  0xe0   :  { %p6870_p0 = pnand %p6868_p13, %p6865_p12 }
  0xe2   :  { %6873 = shalt.err (!%p6870_p0)
}
  0xe3   :  { %s6874_s2 = scalar_lea.vmem %s132_s24, 512  ;;  %p6879_p2 = scmp.lt.s32.totalorder %s132_s24, %s132_s24 }
  0xe4   :  { %p6875_p1 = scmp.ne.s32.totalorder %s132_s24, %s6874_s2  ;;  %p6880_p3 = scmp.lt.s32.totalorder %s6874_s2, %s6874_s2 }
  0xe6   :  { %p6881_p4 = por %p6880_p3, %p6879_p2 }
  0xe8   :  { %p6882_p5 = pnand %p6881_p4, %p6875_p1 }
  0xea   :  { %6885 = shalt.err (!%p6882_p5)
}
  0xeb   :  { %s7034_s6 = smov 256   ;;  %s7035_s13 = smov [#allocation19]  }
  0xec   :  { %137 = dma.hbm_to_vmem [thread:$0]  %s7665_s8, 512, %s132_s24, [#allocation15], %s7034_s6, %s7034_s6, %s7684_s9  }
  0xed   :  { %s155_s21 = sshll.u32 %s7035_s13, 4  ;;  %s7036_s3 = smov [#allocation22]   ;;  %s156_s21 = int_to_ptr.vmem [resolvable:$true] %s155_s21 }
  0xee   :  { %s179_s17 = sshll.u32 %s7036_s3, 4  ;;  %s6886_s19 = scalar_lea.hbm %s7667_s10, 32  ;;  %s180_s17 = int_to_ptr.vmem [resolvable:$true] %s179_s17 }
  0xef   :  { %p6887_p6 = scmp.ne.s32.totalorder %s7667_s10, %s6886_s19  ;;  %p6890_p7 = scmp.lt.u32.totalorder %s6886_s19, %s7667_s10 }
  0xf1   :  { %p6892_p8 = pnand %p6890_p7, %p6887_p6 }
  0xf3   :  { %6895 = shalt.err (!%p6892_p8)
}
  0xf4   :  { %s6896_s8 = scalar_lea.vmem %s156_s21, 32  ;;  %p6901_p10 = scmp.lt.s32.totalorder %s156_s21, %s156_s21 }
  0xf5   :  { %p6897_p9 = scmp.ne.s32.totalorder %s156_s21, %s6896_s8  ;;  %p6902_p11 = scmp.lt.s32.totalorder %s6896_s8, %s6896_s8 }
  0xf7   :  { %p6903_p12 = por %p6902_p11, %p6901_p10 }
  0xf9   :  { %p6904_p13 = pnand %p6903_p12, %p6897_p9 }
  0xfb   :  { %6907 = shalt.err (!%p6904_p13)
}
  0xfc   :  { %161 = dma.hbm_to_vmem [thread:$0]  %s7667_s10, 32, %s156_s21, [#allocation18], %s7684_s9, %s7684_s9, %s7023_s25  }
  0xfd   :  { %s6908_s15 = scalar_lea.hbm %s7669_s12, 32 }
  0xfe   :  { %p6909_p0 = scmp.ne.s32.totalorder %s7669_s12, %s6908_s15  ;;  %p6912_p1 = scmp.lt.u32.totalorder %s6908_s15, %s7669_s12 }
 0x100   :  { %p6914_p2 = pnand %p6912_p1, %p6909_p0 }
 0x102   :  { %6917 = shalt.err (!%p6914_p2)
}
 0x103   :  { %s6918_s2 = scalar_lea.vmem %s180_s17, 32  ;;  %p6923_p4 = scmp.lt.s32.totalorder %s180_s17, %s180_s17 }
 0x104   :  { %p6919_p3 = scmp.ne.s32.totalorder %s180_s17, %s6918_s2  ;;  %p6924_p5 = scmp.lt.s32.totalorder %s6918_s2, %s6918_s2 }
 0x106   :  { %p6925_p6 = por %p6924_p5, %p6923_p4 }
 0x108   :  { %p6926_p7 = pnand %p6925_p6, %p6919_p3 }
 0x10a   :  { %6929 = shalt.err (!%p6926_p7)
}
 0x10b   :  { %185 = dma.hbm_to_vmem [thread:$0]  %s7669_s12, 32, %s180_s17, [#allocation21], %s7684_s9, %s7684_s9, %s7023_s25  }
 0x10c   :  { %s7037_s1 = smov [#allocation25]   ;;  %s7038_s13 = smov [#allocation28]  }
 0x10d   :  { %s204_s30 = sshll.u32 %s7037_s1, 4  ;;  %s226_s21 = sshll.u32 %s7038_s13, 4  ;;  %s205_s30 = int_to_ptr.vmem [resolvable:$true] %s204_s30  ;;  %s227_s21 = int_to_ptr.vmem [resolvable:$true] %s226_s21 }
 0x10e   :  { %s6930_s28 = scalar_lea.hbm %s7671_s14, 16 }
 0x10f   :  { %p6931_p8 = scmp.ne.s32.totalorder %s7671_s14, %s6930_s28  ;;  %p6934_p9 = scmp.lt.u32.totalorder %s6930_s28, %s7671_s14 }
 0x111   :  { %p6936_p10 = pnand %p6934_p9, %p6931_p8 }
 0x113   :  { %6939 = shalt.err (!%p6936_p10)
}
 0x114   :  { %s6940_s12 = scalar_lea.vmem %s205_s30, 16  ;;  %s6944_s25 = scalar_lea.vmem %s205_s30, 32 }
 0x115   :  { %p6941_p11 = scmp.ne.s32.totalorder %s205_s30, %s6940_s12  ;;  %p6945_p12 = scmp.lt.s32.totalorder %s205_s30, %s205_s30 }
 0x116   :  { %p6946_p13 = scmp.lt.s32.totalorder %s6944_s25, %s6940_s12 }
 0x118   :  { %p6947_p0 = por %p6946_p13, %p6945_p12 }
 0x11a   :  { %p6948_p1 = pnand %p6947_p0, %p6941_p11 }
 0x11c   :  { %6951 = shalt.err (!%p6948_p1)
}
 0x11d   :  { %207 = dma.hbm_to_vmem [thread:$0]  %s7671_s14, 16, %s205_s30, [#allocation24]  }
 0x11e   :  { %s6952_s18 = scalar_lea.hbm %s7673_s16, 16 }
 0x11f   :  { %p6953_p2 = scmp.ne.s32.totalorder %s7673_s16, %s6952_s18  ;;  %p6956_p3 = scmp.lt.u32.totalorder %s6952_s18, %s7673_s16 }
 0x121   :  { %p6958_p4 = pnand %p6956_p3, %p6953_p2 }
 0x123   :  { %6961 = shalt.err (!%p6958_p4)
}
 0x124   :  { %s6962_s29 = scalar_lea.vmem %s227_s21, 16  ;;  %s6966_s5 = scalar_lea.vmem %s227_s21, 32 }
 0x125   :  { %p6963_p5 = scmp.ne.s32.totalorder %s227_s21, %s6962_s29  ;;  %p6967_p6 = scmp.lt.s32.totalorder %s227_s21, %s227_s21 }
 0x126   :  { %p6968_p7 = scmp.lt.s32.totalorder %s6966_s5, %s6962_s29 }
 0x128   :  { %p6969_p8 = por %p6968_p7, %p6967_p6 }
 0x12a   :  { %p6970_p9 = pnand %p6969_p8, %p6963_p5 }
 0x12c   :  { %6973 = shalt.err (!%p6970_p9)
}
 0x12d   :  { %229 = dma.hbm_to_vmem [thread:$0]  %s7673_s16, 16, %s227_s21, [#allocation27]  }
 0x12e   :  { %6996 = dma.done.wait [#allocation3], 128  }
 0x12f   :  { %6997 = vsyncadd [#allocation3], 4294967168 }
 0x130   :  { %6998 = dma.done.wait [#allocation6], 208  }
 0x131   :  { %6999 = vsyncadd [#allocation6], 4294967088 }
 0x132   :  { %7000 = dma.done.wait [#allocation9], 1056  }
 0x133   :  { %7001 = vsyncadd [#allocation9], 4294966240 }
 0x134   :  { %7002 = dma.done.wait [#allocation12], 64  }
 0x135   :  { %7003 = vsyncadd [#allocation12], 4294967232 }
 0x136   :  { %7004 = dma.done.wait [#allocation15], 16896  }
 0x137   :  { %7005 = vsyncadd [#allocation15], 4294950400 }
 0x138   :  { %7006 = dma.done.wait [#allocation18], 32800  }
 0x139   :  { %7007 = vsyncadd [#allocation18], 4294934496 }
 0x13a   :  { %7008 = dma.done.wait [#allocation21], 64  }
 0x13b   :  { %7009 = vsyncadd [#allocation21], 4294967232 }
 0x13c   :  { %7010 = dma.done.wait [#allocation24], 528  }
 0x13d   :  { %7011 = vsyncadd [#allocation24], 4294966768 }
 0x13e   :  { %7012 = dma.done.wait [#allocation27], 1040  }
 0x13f   :  { %7013 = vsyncadd [#allocation27], 4294966256  ;;  %v7039_v0 = vmov 0.0   ;;  %vm312_vm0 = vcmask 1040384   ;;  %vm7040_vm1 = vmmov 0   ;;  %vm313_vm2 = vcmask 1041408  }
 0x140   :  { %6211 = vmatprep.subr.bf16.mxu1 %v7039_v0  ;;  %6215 = vmatprep.mubr.msk.bf16.mxu1 %vm7040_vm1, %v7039_v0  ;;  %v7041_v1 = vmov 65535   ;;  %v6305_v3 = vld [vmem:[#allocation5] sm:$0xff]   ;;  %v6306_v5 = vld [vmem:[#allocation5 + $0x8] ss:$0 sps:$4 sm:$0x33]   ;;  %v6307_v7 = vld [vmem:[#allocation2] sm:$0xff]  }
 0x141   :  { %v314_v2 = vsel %vm312_vm0, 4294967295, %v7041_v1  ;;  %6212 = vmatpush3.bf16.msra.mxu1 %v6305_v3  ;;  %vm308_vm3 = vcmask 154624   ;;  %v6308_v8 = vld [vmem:[#allocation8] sm:$0xff]   ;;  %v6309_v9 = vld [vmem:[#allocation8 + $0x8] sm:$0xff]   ;;  %v6310_v10 = vld [vmem:[#allocation8 + $0x10] sm:$0xff]   ;;  %vm400_vm4 = vcmask 523264  }
 0x142   :  { %v315_v4 = vsel %vm313_vm2, %v314_v2, 0  ;;  %6213 = vmatprep.subr.bf16.mxu1 %v7039_v0  ;;  %v6311_v11 = vld [vmem:[#allocation8 + $0x18] sm:$0xff]   ;;  %v5397_v20 = vld [vmem:[#allocation10] ss:$0 sm:$0xff]  ;;  %v497_v35 = vld [vmem:[#allocation14] sm:$0xff]  ;;  %s7043_s16 = smov [#allocation29]  }
 0x143   :  { %v317_v6 = vand.u32 %v6306_v5, %v315_v4  ;;  %v5392_v12 = vld [vmem:[#allocation7] ss:$0 sm:$0xff]  ;;  %v505_v36 = vld [vmem:[#allocation14 + $0x40] sm:$0xff]  ;;  %v498_v37 = vld [vmem:[#allocation14 + $0x8] sm:$0xff]  ;;  %s5372_s27 = sshll.u32 %s7043_s16, 4  ;;  %s5373_s27 = int_to_ptr.vmem [resolvable:$true] %s5372_s27 }
 0x144   :  { %v5406_v38 = vcombine.high %v497_v35, %v505_v36  ;;  %v506_v39 = vld [vmem:[#allocation14 + $0x48] sm:$0xff]  ;;  %v5405_v42 = vcombine.low %v497_v35, %v505_v36  ;;  %v513_v43 = vld [vmem:[#allocation14 + $0x80] sm:$0xff]  ;;  %v499_v4 = vld [vmem:[#allocation14 + $0x10] sm:$0xff]  ;;  %s6974_s2 = scalar_lea.vmem %s5373_s27, 256  ;;  %p6979_p11 = scmp.lt.s32.totalorder %s5373_s27, %s5373_s27 }
 0x145   :  { %6214 = vmatpush3.bf16.msra.mxu1 %v317_v6  ;;  %v5407_v40 = vcombine.low %v498_v37, %v506_v39  ;;  %v5408_v41 = vcombine.high %v498_v37, %v506_v39  ;;  %v521_v44 = vld [vmem:[#allocation14 + $0xc0] sm:$0xff]  ;;  %v514_v45 = vld [vmem:[#allocation14 + $0x88] sm:$0xff]  ;;  %v507_v5 = vld [vmem:[#allocation14 + $0x50] sm:$0xff]  ;;  %p6975_p10 = scmp.ne.s32.totalorder %s5373_s27, %s6974_s2  ;;  %p6980_p12 = scmp.lt.s32.totalorder %s6974_s2, %s6974_s2 }
 0x146   :  { %6219 = vmatprep.subr.bf16.mxu1 %v7039_v0  ;;  %968 = vmatprep.subr.bf16.mxu0 %v5406_v38  ;;  %v5422_v46 = vcombine.high %v513_v43, %v521_v44  ;;  %v522_v47 = vld [vmem:[#allocation14 + $0xc8] sm:$0xff]  ;;  %v5421_v50 = vcombine.low %v513_v43, %v521_v44  ;;  %v529_v51 = vld [vmem:[#allocation14 + $0x100] sm:$0xff]  ;;  %v500_v6 = vld [vmem:[#allocation14 + $0x18] sm:$0xff] }
 0x147   :  { %969 = vmatpush1.bf16.msra.mxu0 %v5405_v42  ;;  %v5423_v48 = vcombine.low %v514_v45, %v522_v47  ;;  %v5424_v49 = vcombine.high %v514_v45, %v522_v47  ;;  %v537_v52 = vld [vmem:[#allocation14 + $0x140] sm:$0xff]  ;;  %v530_v53 = vld [vmem:[#allocation14 + $0x108] sm:$0xff]  ;;  %v5404_v37 = vld [vmem:[#allocation13] ss:$0 sm:$0xff]  ;;  %p6981_p13 = por %p6980_p12, %p6979_p11 }
 0x148   :  { %6216 = vmatmul.mubr.msk.bf16.vlgmr.msra.gmra.mrb[0].mxu1 %vm308_vm3, %v6307_v7  ;;  %970 = vmatprep.subr.bf16.mxu0 %v5422_v46  ;;  %v5438_v54 = vcombine.high %v529_v51, %v537_v52  ;;  %v538_v55 = vld [vmem:[#allocation14 + $0x148] sm:$0xff]  ;;  %v5437_v58 = vcombine.low %v529_v51, %v537_v52  ;;  %v545_v59 = vld [vmem:[#allocation14 + $0x180] sm:$0xff]  ;;  %v5410_v7 = vcombine.high %v499_v4, %v507_v5  ;;  %v515_v39 = vld [vmem:[#allocation14 + $0x90] sm:$0xff] }
 0x149   :  { %6220 = vmatpush3.bf16.msra.mxu1 %v6308_v8  ;;  %6227 = vmatprep.mubr.msk.bf16.mxu1 %vm7040_vm1, %v7039_v0  ;;  %v5439_v56 = vcombine.low %v530_v53, %v538_v55  ;;  %v5440_v57 = vcombine.high %v530_v53, %v538_v55  ;;  %v553_v60 = vld [vmem:[#allocation14 + $0x1c0] sm:$0xff]  ;;  %v546_v61 = vld [vmem:[#allocation14 + $0x188] sm:$0xff]  ;;  %v508_v8 = vld [vmem:[#allocation14 + $0x58] sm:$0xff]  ;;  %p6982_p0 = pnand %p6981_p13, %p6975_p10 }
 0x14a   :  { %6221 = vmatprep.subr.bf16.mxu1 %v7039_v0  ;;  %v5454_v62 = vcombine.high %v545_v59, %v553_v60  ;;  %v554_v63 = vld [vmem:[#allocation14 + $0x1c8] sm:$0xff]  ;;  %v5453_v3 = vcombine.low %v545_v59, %v553_v60  ;;  %v524_v42 = vld [vmem:[#allocation14 + $0xd8] sm:$0xff]  ;;  %v539_v47 = vld [vmem:[#allocation14 + $0x150] sm:$0xff] }
 0x14b   :  { %971 = vmatpush1.bf16.msra.mxu0 %v5421_v50  ;;  %v5455_v1 = vcombine.low %v546_v61, %v554_v63  ;;  %v5456_v2 = vcombine.high %v546_v61, %v554_v63  ;;  %v555_v55 = vld [vmem:[#allocation14 + $0x1d0] sm:$0xff]  ;;  %v509_v63 = vld [vmem:[#allocation14 + $0x60] sm:$0xff] }
 0x14c   :  { %972 = vmatprep.subr.bf16.mxu0 %v5438_v54  ;;  %v547_v54 = vld [vmem:[#allocation14 + $0x190] sm:$0xff] }
 0x14d   :  { %6222 = vmatpush3.bf16.msra.mxu1 %v6309_v9  ;;  %v5409_v9 = vcombine.low %v499_v4, %v507_v5  ;;  %v5458_v60 = vcombine.high %v547_v54, %v555_v55 }
 0x14e   :  { %6223 = vmatprep.subr.bf16.mxu1 %v7039_v0 }
 0x14f   :  { %973 = vmatpush1.bf16.msra.mxu0 %v5437_v58 }
 0x150   :  { %974 = vmatprep.subr.bf16.mxu0 %v5454_v62  ;;  %v501_v62 = vld [vmem:[#allocation14 + $0x20] sm:$0xff] }
 0x151   :  { %6224 = vmatpush3.bf16.msra.mxu1 %v6310_v10  ;;  %v5411_v10 = vcombine.low %v500_v6, %v508_v8  ;;  %v5414_v5 = vcombine.high %v501_v62, %v509_v63 }
 0x152   :  { %6225 = vmatprep.subr.bf16.mxu1 %v7039_v0 }
 0x153   :  { %975 = vmatpush1.bf16.msra.mxu0 %v5453_v3  ;;  %v5457_v3 = vcombine.low %v547_v54, %v555_v55  ;;  %v544_v54 = vld [vmem:[#allocation14 + $0x178] sm:$0xff] }
 0x154   :  { %1054 = vmatprep.subr.bf16.mxu0 %v5410_v7  ;;  %v517_v7 = vld [vmem:[#allocation14 + $0xa0] sm:$0xff] }
 0x155   :  { %6226 = vmatpush3.bf16.msra.mxu1 %v6311_v11  ;;  %v5412_v11 = vcombine.high %v500_v6, %v508_v8  ;;  %v525_v8 = vld [vmem:[#allocation14 + $0xe0] sm:$0xff] }
 0x156   :  { %1011 = vmatprep.subr.bf16.mxu1 %v5408_v41  ;;  %v516_v41 = vld [vmem:[#allocation14 + $0x98] sm:$0xff] }
 0x157   :  { %v5428_v46 = vcombine.high %v516_v41, %v524_v42  ;;  %v5427_v51 = vcombine.low %v516_v41, %v524_v42  ;;  %v519_v42 = vld [vmem:[#allocation14 + $0xb0] sm:$0xff] }
 0x21b   :  { %v353_v13 = vpop.f32.mrb[0].mxu1 }
 0x21c   :  { %v6217_v14 = vpop.f32.mrb[1].mxu1  ;;  %v354_v16 = vadd.f32 %v5392_v12, %v353_v13 }
 0x21d   :  { %v356_v15 = vpop.f32.mrb[2].mxu1 }
 0x21e   :  { %v357_v17 = vadd.f32 %v5392_v12, %v356_v15  ;;  %v6218_v18 = vpop.f32.mrb[3].mxu1  ;;  %v7042_v12 = vmov 0  }
 0x21f   :  { %1000 = vmatprep.mubr.bf16.mxu0 %v7042_v12 }
 0x220   :  { %v360_v19 = vpack.c.bf16 %v357_v17, %v354_v16 }
 0x222   :  { %6228 = vmatmul.mubr.msk.bf16.vlgmr.msra.gmra.mrb[4].mxu1 %vm400_vm4, %v360_v19 }
 0x223   :  { %1012 = vmatpush1.bf16.msra.mxu1 %v5407_v40  ;;  %1043 = vmatprep.mubr.bf16.mxu1 %v7042_v12  ;;  %v523_v40 = vld [vmem:[#allocation14 + $0xd0] sm:$0xff] }
 0x224   :  { %1013 = vmatprep.subr.bf16.mxu1 %v5424_v49  ;;  %v5426_v45 = vcombine.high %v515_v39, %v523_v40  ;;  %v540_v49 = vld [vmem:[#allocation14 + $0x158] sm:$0xff]  ;;  %v5425_v50 = vcombine.low %v515_v39, %v523_v40 }
 0x227   :  { %1014 = vmatpush1.bf16.msra.mxu1 %v5423_v48  ;;  %v532_v48 = vld [vmem:[#allocation14 + $0x118] sm:$0xff] }
 0x228   :  { %1015 = vmatprep.subr.bf16.mxu1 %v5440_v57  ;;  %v5444_v53 = vcombine.high %v532_v48, %v540_v49  ;;  %v556_v57 = vld [vmem:[#allocation14 + $0x1d8] sm:$0xff]  ;;  %v5443_v59 = vcombine.low %v532_v48, %v540_v49 }
 0x22b   :  { %1016 = vmatpush1.bf16.msra.mxu1 %v5439_v56  ;;  %v548_v56 = vld [vmem:[#allocation14 + $0x198] sm:$0xff] }
 0x22c   :  { %1017 = vmatprep.subr.bf16.mxu1 %v5456_v2  ;;  %v5460_v61 = vcombine.high %v548_v56, %v556_v57  ;;  %v510_v2 = vld [vmem:[#allocation14 + $0x68] sm:$0xff]  ;;  %v5459_v4 = vcombine.low %v548_v56, %v556_v57 }
 0x22f   :  { %1018 = vmatpush1.bf16.msra.mxu1 %v5455_v1  ;;  %v502_v1 = vld [vmem:[#allocation14 + $0x28] sm:$0xff] }
 0x230   :  { %1097 = vmatprep.subr.bf16.mxu1 %v5412_v11  ;;  %v5416_v6 = vcombine.high %v502_v1, %v510_v2  ;;  %v5413_v11 = vcombine.low %v501_v62, %v509_v63  ;;  %v560_v62 = vld [vmem:[#allocation14 + $0x1f8] sm:$0xff] }
 0x2f5   :  { %v438_v21 = vpop.f32.mrb[4].mxu1 }
 0x2f6   :  { %v439_v22 = vadd.f32 %v5397_v20, %v438_v21  ;;  %v6229_v23 = vpop.f32.mrb[5].mxu1 }
 0x2f7   :  { %v441_v24 = vpop.f32.mrb[6].mxu1 }
 0x2f8   :  { %v7403_v25 = vadd.f32 %v439_v22, %v354_v16  ;;  %v442_v26 = vadd.f32 %v5397_v20, %v441_v24  ;;  %v6230_v27 = vpop.f32.mrb[7].mxu1 }
 0x2fa   :  { %v7405_v28 = vadd.f32 %v442_v26, %v357_v17  ;;  %v447_v29 = vsel %vm400_vm4, %v7403_v25, 0.0  ;;  %v456_v30 = vmul.f32 %v7403_v25, %v7403_v25 }
 0x2fb   :  { %448 = vadd.xlane.f32.xlu0 %v447_v29 }
 0x2fc   :  { %v458_v31 = vsel %vm400_vm4, %v456_v30, 0.0  ;;  %v457_v32 = vmul.f32 %v7405_v28, %v7405_v28  ;;  %v450_v33 = vsel %vm400_vm4, %v7405_v28, 0.0 }
 0x2fd   :  { %459 = vadd.xlane.f32.xlu1 %v458_v31 }
 0x2fe   :  { %v461_v34 = vsel %vm400_vm4, %v457_v32, 0.0  ;;  %v5403_v32 = vld [vmem:[#allocation11] ss:$0 sm:$0xff] }
 0x2ff   :  { %451 = vadd.xlane.f32.xlu0 %v450_v33 }
 0x301   :  { %462 = vadd.xlane.f32.xlu1 %v461_v34 }
 0x388   :  { %v449_v13 = vpop.xlane.xlu0 %448 }
 0x389   :  { %v454_v14 = vmul.f32 0.015625, %v449_v13  ;;  %v5415_v13 = vcombine.low %v502_v1, %v510_v2 }
 0x38a   :  { %v460_v15 = vpop.xlane.xlu1 %459 }
 0x38b   :  { %v466_v16 = vmul.f32 %v454_v14, %v454_v14  ;;  %v464_v17 = vmul.f32 0.015625, %v460_v15  ;;  %v470_v29 = vsub.f32 %v7403_v25, %v454_v14  ;;  %v5430_v14 = vcombine.high %v517_v7, %v525_v8 }
 0x38c   :  { %v452_v18 = vpop.xlane.xlu0 %451 }
 0x38d   :  { %v468_v19 = vsub.f32 %v464_v17, %v466_v16  ;;  %v455_v20 = vmul.f32 0.015625, %v452_v18  ;;  %v533_v16 = vld [vmem:[#allocation14 + $0x120] sm:$0xff]  ;;  %v534_v18 = vld [vmem:[#allocation14 + $0x128] sm:$0xff] }
 0x38e   :  { %v463_v21 = vpop.xlane.xlu1 %462  ;;  %v541_v17 = vld [vmem:[#allocation14 + $0x160] sm:$0xff] }
 0x38f   :  { %v472_v22 = vadd.f32 1e-05, %v468_v19  ;;  %v467_v23 = vmul.f32 %v455_v20, %v455_v20  ;;  %v465_v24 = vmul.f32 0.015625, %v463_v21  ;;  %v471_v33 = vsub.f32 %v7405_v28, %v455_v20  ;;  %v531_v28 = vld [vmem:[#allocation14 + $0x110] sm:$0xff]  ;;  %v542_v19 = vld [vmem:[#allocation14 + $0x168] sm:$0xff] }
 0x390   :  { %v5442_v52 = vcombine.high %v531_v28, %v539_v47  ;;  %v5441_v58 = vcombine.low %v531_v28, %v539_v47  ;;  %v5429_v20 = vcombine.low %v517_v7, %v525_v8  ;;  %v528_v28 = vld [vmem:[#allocation14 + $0xf8] sm:$0xff]  ;;  %v6313_v7 = vld [vmem:[#allocation17 + $0xc0] sm:$0xff]  }
 0x391   :  { %6584 = vrsqrt.f32 %v472_v22  ;;  %v469_v26 = vsub.f32 %v465_v24, %v467_v23  ;;  %v5446_v22 = vcombine.high %v533_v16, %v541_v17  ;;  %v5448_v23 = vcombine.high %v534_v18, %v542_v19  ;;  %v549_v24 = vld [vmem:[#allocation14 + $0x1a0] sm:$0xff] }
 0x392   :  { %v6314_v8 = vld [vmem:[#allocation17] sm:$0xff]  }
 0x393   :  { %v473_v27 = vadd.f32 1e-05, %v469_v26  ;;  %v557_v26 = vld [vmem:[#allocation14 + $0x1e0] sm:$0xff] }
 0x395   :  { %6586 = vrsqrt.f32 %v473_v27  ;;  %v550_v27 = vld [vmem:[#allocation14 + $0x1a8] sm:$0xff] }
 0x39b   :  { %v6585_v30 = vpop.eup %6584 }
 0x39c   :  { %v476_v31 = vmul.f32 %v6585_v30, %v470_v29  ;;  %v558_v29 = vld [vmem:[#allocation14 + $0x1e8] sm:$0xff]  ;;  %v5445_v30 = vcombine.low %v533_v16, %v541_v17  ;;  %v6321_v16 = vld [vmem:[#allocation17 + $0xd0] sm:$0xff]  }
 0x39d   :  { %v5463_v39 = vcombine.low %v550_v27, %v558_v29  ;;  %v6322_v17 = vld [vmem:[#allocation17 + $0x10] sm:$0xff]  }
 0x39e   :  { %v485_v35 = vmul.f32 %v5403_v32, %v476_v31  ;;  %v5447_v31 = vcombine.low %v534_v18, %v542_v19  ;;  %v6323_v18 = vld [vmem:[#allocation17 + $0x90] sm:$0xff]   ;;  %v6324_v19 = vld [vmem:[#allocation17 + $0x58] sm:$0xff]  }
 0x39f   :  { %v6587_v34 = vpop.eup %6586 }
 0x3a0   :  { %v477_v36 = vmul.f32 %v6587_v34, %v471_v33  ;;  %v7421_v43 = vadd.f32 %v5404_v37, %v485_v35  ;;  %v5464_v33 = vcombine.high %v550_v27, %v558_v29  ;;  %v503_v34 = vld [vmem:[#allocation14 + $0x30] sm:$0xff]  ;;  %v6332_v27 = vld [vmem:[#allocation17 + $0x68] sm:$0xff]  }
 0x3a1   :  { %v511_v35 = vld [vmem:[#allocation14 + $0x70] sm:$0xff]  ;;  %v6333_v29 = vld [vmem:[#allocation17 + $0xe8] sm:$0xff]  }
 0x3a2   :  { %v486_v38 = vmul.f32 %v5403_v32, %v477_v36  ;;  %v5462_v32 = vcombine.high %v549_v24, %v557_v26  ;;  %v504_v36 = vld [vmem:[#allocation14 + $0x38] sm:$0xff]  ;;  %v5418_v40 = vcombine.high %v503_v34, %v511_v35  ;;  %v5417_v47 = vcombine.low %v503_v34, %v511_v35  ;;  %v6338_v34 = vld [vmem:[#allocation17 + $0x30] sm:$0xff]  }
 0x3a3   :  { %v6339_v35 = vld [vmem:[#allocation17 + $0xb0] sm:$0xff]  }
 0x3a4   :  { %v7423_v44 = vadd.f32 %v5404_v37, %v486_v38  ;;  %v512_v37 = vld [vmem:[#allocation14 + $0x78] sm:$0xff]  ;;  %v5461_v38 = vcombine.low %v549_v24, %v557_v26  ;;  %v6330_v24 = vld [vmem:[#allocation17 + $0x20] sm:$0xff]  }
 0x3a5   :  { %v5420_v41 = vcombine.high %v504_v36, %v512_v37  ;;  %v5419_v48 = vcombine.low %v504_v36, %v512_v37  ;;  %v6331_v26 = vld [vmem:[#allocation17 + $0xa0] sm:$0xff]   ;;  %v6340_v36 = vld [vmem:[#allocation17 + $0x78] sm:$0xff]  }
 0x3a6   :  { %v7427_v25 = vpack.c.bf16 %v7423_v44, %v7421_v43  ;;  %v6341_v37 = vld [vmem:[#allocation17 + $0xf8] sm:$0xff]  }
 0x3a8   :  { %5469 = vmatmul.mubr.msk.bf16.vlgmr.msra.gmra.mrb[0].mxu0 %vm400_vm4, %v7427_v25  ;;  %5470 = vmatmul.mubr.msk.bf16.vlgmr.msra.gmra.mrb[8].mxu1 %vm400_vm4, %v7427_v25 }
 0x3a9   :  { %1055 = vmatpush1.bf16.msra.mxu0 %v5409_v9  ;;  %1098 = vmatpush1.bf16.msra.mxu1 %v5411_v10  ;;  %v518_v9 = vld [vmem:[#allocation14 + $0xa8] sm:$0xff] }
 0x3aa   :  { %1056 = vmatprep.subr.bf16.mxu0 %v5426_v45  ;;  %1099 = vmatprep.subr.bf16.mxu1 %v5428_v46  ;;  %v526_v10 = vld [vmem:[#allocation14 + $0xe8] sm:$0xff]  ;;  %v527_v45 = vld [vmem:[#allocation14 + $0xf0] sm:$0xff]  ;;  %v520_v46 = vld [vmem:[#allocation14 + $0xb8] sm:$0xff] }
 0x3ab   :  { %1086 = vmatprep.mubr.bf16.mxu0 %v7042_v12  ;;  %1129 = vmatprep.mubr.bf16.mxu1 %v7042_v12  ;;  %v5432_v15 = vcombine.high %v518_v9, %v526_v10  ;;  %v5431_v21 = vcombine.low %v518_v9, %v526_v10  ;;  %v5434_v49 = vcombine.high %v519_v42, %v527_v45  ;;  %v6315_v9 = vld [vmem:[#allocation17 + $0x80] sm:$0xff]   ;;  %v6316_v10 = vld [vmem:[#allocation17 + $0x48] sm:$0xff]  }
 0x3ac   :  { %v5433_v55 = vcombine.low %v519_v42, %v527_v45  ;;  %v5435_v56 = vcombine.low %v520_v46, %v528_v28  ;;  %v565_v42 = vlaneseq }
 0x3ad   :  { %1057 = vmatpush1.bf16.msra.mxu0 %v5425_v50  ;;  %1100 = vmatpush1.bf16.msra.mxu1 %v5427_v51  ;;  %v5436_v50 = vcombine.high %v520_v46, %v528_v28  ;;  %v535_v51 = vld [vmem:[#allocation14 + $0x130] sm:$0xff] }
 0x3ae   :  { %1058 = vmatprep.subr.bf16.mxu0 %v5442_v52  ;;  %1101 = vmatprep.subr.bf16.mxu1 %v5444_v53  ;;  %v543_v52 = vld [vmem:[#allocation14 + $0x170] sm:$0xff]  ;;  %v536_v53 = vld [vmem:[#allocation14 + $0x138] sm:$0xff]  ;;  %v566_v45 = vshrl.u32 %v565_v42, 7 }
 0x3af   :  { %v5450_v57 = vcombine.high %v535_v51, %v543_v52  ;;  %v5449_v63 = vcombine.low %v535_v51, %v543_v52  ;;  %v5451_v1 = vcombine.low %v536_v53, %v544_v54 }
 0x3b0   :  { %v7451_v46 = vsub.s32 0, %v566_v45  ;;  %v7453_v28 = vsub.s32 2, %v566_v45 }
 0x3b1   :  { %1059 = vmatpush1.bf16.msra.mxu0 %v5441_v58  ;;  %1102 = vmatpush1.bf16.msra.mxu1 %v5443_v59  ;;  %v5452_v58 = vcombine.high %v536_v53, %v544_v54  ;;  %v551_v59 = vld [vmem:[#allocation14 + $0x1b0] sm:$0xff] }
 0x3b2   :  { %1060 = vmatprep.subr.bf16.mxu0 %v5458_v60  ;;  %1103 = vmatprep.subr.bf16.mxu1 %v5460_v61  ;;  %v559_v60 = vld [vmem:[#allocation14 + $0x1f0] sm:$0xff]  ;;  %v552_v61 = vld [vmem:[#allocation14 + $0x1b8] sm:$0xff] }
 0x3b3   :  { %v5466_v2 = vcombine.high %v551_v59, %v559_v60 }
 0x3b5   :  { %1061 = vmatpush1.bf16.msra.mxu0 %v5457_v3  ;;  %1104 = vmatpush1.bf16.msra.mxu1 %v5459_v4  ;;  %v5468_v3 = vcombine.high %v552_v61, %v560_v62  ;;  %v5465_v4 = vcombine.low %v551_v59, %v559_v60 }
 0x3b6   :  { %1140 = vmatprep.subr.bf16.mxu0 %v5414_v5  ;;  %1183 = vmatprep.subr.bf16.mxu1 %v5416_v6  ;;  %v5467_v5 = vcombine.low %v552_v61, %v560_v62  ;;  %v6312_v6 = vld [vmem:[#allocation17 + $0x40] sm:$0xff]  }
 0x3b8   :  { %5471 = vmatmul.mubr.msk.bf16.vlgmr.msra.gmra.mrb[4].mxu0 %vm400_vm4, %v7427_v25  ;;  %5472 = vmatmul.mubr.msk.bf16.vlgmr.msra.gmra.mrb[12].mxu1 %vm400_vm4, %v7427_v25 }
 0x3b9   :  { %1141 = vmatpush1.bf16.msra.mxu0 %v5413_v11  ;;  %1184 = vmatpush1.bf16.msra.mxu1 %v5415_v13  ;;  %v6317_v11 = vld [vmem:[#allocation17 + $0xc8] sm:$0xff]  }
 0x3ba   :  { %1142 = vmatprep.subr.bf16.mxu0 %v5430_v14  ;;  %1185 = vmatprep.subr.bf16.mxu1 %v5432_v15  ;;  %v6318_v13 = vld [vmem:[#allocation17 + $0x8] sm:$0xff]   ;;  %v6320_v15 = vld [vmem:[#allocation17 + $0x50] sm:$0xff]  }
 0x3bb   :  { %1172 = vmatprep.mubr.bf16.mxu0 %v7042_v12  ;;  %1215 = vmatprep.mubr.bf16.mxu1 %v7042_v12  ;;  %v6319_v14 = vld [vmem:[#allocation17 + $0x88] sm:$0xff]  }
 0x3bd   :  { %1143 = vmatpush1.bf16.msra.mxu0 %v5429_v20  ;;  %1186 = vmatpush1.bf16.msra.mxu1 %v5431_v21  ;;  %v6325_v20 = vld [vmem:[#allocation17 + $0xd8] sm:$0xff]  }
 0x3be   :  { %1144 = vmatprep.subr.bf16.mxu0 %v5446_v22  ;;  %1187 = vmatprep.subr.bf16.mxu1 %v5448_v23  ;;  %v6326_v21 = vld [vmem:[#allocation17 + $0x18] sm:$0xff]   ;;  %v6328_v22 = vld [vmem:[#allocation17 + $0x60] sm:$0xff]  }
 0x3bf   :  { %v6329_v23 = vld [vmem:[#allocation17 + $0xe0] sm:$0xff]  }
 0x3c1   :  { %1145 = vmatpush1.bf16.msra.mxu0 %v5445_v30  ;;  %1188 = vmatpush1.bf16.msra.mxu1 %v5447_v31  ;;  %v6334_v30 = vld [vmem:[#allocation17 + $0x28] sm:$0xff]  }
 0x3c2   :  { %1146 = vmatprep.subr.bf16.mxu0 %v5462_v32  ;;  %1189 = vmatprep.subr.bf16.mxu1 %v5464_v33  ;;  %v6335_v31 = vld [vmem:[#allocation17 + $0xa8] sm:$0xff]   ;;  %v6336_v32 = vld [vmem:[#allocation17 + $0x70] sm:$0xff]  }
 0x3c3   :  { %v6337_v33 = vld [vmem:[#allocation17 + $0xf0] sm:$0xff]  }
 0x3c5   :  { %1147 = vmatpush1.bf16.msra.mxu0 %v5461_v38  ;;  %1190 = vmatpush1.bf16.msra.mxu1 %v5463_v39  ;;  %v6342_v38 = vld [vmem:[#allocation17 + $0x38] sm:$0xff]  }
 0x3c6   :  { %1226 = vmatprep.subr.bf16.mxu0 %v5418_v40  ;;  %1269 = vmatprep.subr.bf16.mxu1 %v5420_v41  ;;  %v6343_v39 = vld [vmem:[#allocation17 + $0xb8] sm:$0xff]   ;;  %v6344_v40 = vld [vmem:[#allocation17 + $0x140] sm:$0xff]  }
 0x3c7   :  { %v6345_v41 = vld [vmem:[#allocation17 + $0x1c0] sm:$0xff]  }
 0x3c8   :  { %5473 = vmatmul.mubr.msk.bf16.vlgmr.msra.gmra.mrb[8].mxu0 %vm400_vm4, %v7427_v25  ;;  %5474 = vmatmul.mubr.msk.bf16.vlgmr.msra.gmra.mrb[16].mxu1 %vm400_vm4, %v7427_v25 }
 0x3c9   :  { %1227 = vmatpush1.bf16.msra.mxu0 %v5417_v47  ;;  %1270 = vmatpush1.bf16.msra.mxu1 %v5419_v48  ;;  %v561_v47 = vld [vmem:[#allocation16] sm:$0xff]  ;;  %v7455_v48 = vsub.s32 1, %v566_v45 }
 0x3ca   :  { %1228 = vmatprep.subr.bf16.mxu0 %v5434_v49  ;;  %1271 = vmatprep.subr.bf16.mxu1 %v5436_v50  ;;  %v7457_v49 = vsub.s32 3, %v566_v45  ;;  %v568_v50 = vrot.slane %v561_v47, %v7451_v46  ;;  %v576_v51 = vrot.slane %v561_v47, %v7453_v28 }
 0x3cb   :  { %1258 = vmatprep.mubr.bf16.mxu0 %v7042_v12  ;;  %1301 = vmatprep.mubr.bf16.mxu1 %v7042_v12  ;;  %v572_v52 = vrot.slane %v561_v47, %v7455_v48 }
 0x3cc   :  { %v580_v53 = vrot.slane %v561_v47, %v7457_v49 }
 0x3cd   :  { %1229 = vmatpush1.bf16.msra.mxu0 %v5433_v55  ;;  %1272 = vmatpush1.bf16.msra.mxu1 %v5435_v56 }
 0x3ce   :  { %1230 = vmatprep.subr.bf16.mxu0 %v5450_v57  ;;  %1273 = vmatprep.subr.bf16.mxu1 %v5452_v58 }
 0x3d1   :  { %1231 = vmatpush1.bf16.msra.mxu0 %v5449_v63  ;;  %1274 = vmatpush1.bf16.msra.mxu1 %v5451_v1 }
 0x3d2   :  { %1232 = vmatprep.subr.bf16.mxu0 %v5466_v2  ;;  %1275 = vmatprep.subr.bf16.mxu1 %v5468_v3 }
 0x3d5   :  { %1233 = vmatpush1.bf16.msra.mxu0 %v5465_v4  ;;  %1276 = vmatpush1.bf16.msra.mxu1 %v5467_v5 }
 0x3d6   :  { %5840 = vmatprep.subr.bf16.mxu0 %v6312_v6  ;;  %5862 = vmatprep.subr.bf16.mxu1 %v6313_v7 }
 0x3d8   :  { %5475 = vmatmul.mubr.msk.bf16.vlgmr.msra.gmra.mrb[12].mxu0 %vm400_vm4, %v7427_v25  ;;  %5476 = vmatmul.mubr.msk.bf16.vlgmr.msra.gmra.mrb[20].mxu1 %vm400_vm4, %v7427_v25  ;;  %v6327_v25 = vld [vmem:[#allocation17 + $0x98] sm:$0xff]  }
 0x3d9   :  { %5841 = vmatpush3.bf16.msra.mxu0 %v6314_v8  ;;  %5863 = vmatpush3.bf16.msra.mxu1 %v6315_v9 }
 0x3da   :  { %5842 = vmatprep.subr.bf16.mxu0 %v6316_v10  ;;  %5864 = vmatprep.subr.bf16.mxu1 %v6317_v11 }
 0x3dd   :  { %5843 = vmatpush3.bf16.msra.mxu0 %v6318_v13  ;;  %5865 = vmatpush3.bf16.msra.mxu1 %v6319_v14 }
 0x3de   :  { %5844 = vmatprep.subr.bf16.mxu0 %v6320_v15  ;;  %5866 = vmatprep.subr.bf16.mxu1 %v6321_v16 }
 0x3e1   :  { %5845 = vmatpush3.bf16.msra.mxu0 %v6322_v17  ;;  %5867 = vmatpush3.bf16.msra.mxu1 %v6323_v18 }
 0x3e2   :  { %5846 = vmatprep.subr.bf16.mxu0 %v6324_v19  ;;  %5868 = vmatprep.subr.bf16.mxu1 %v6325_v20  ;;  %v6346_v20 = vld [vmem:[#allocation17 + $0x100] sm:$0xff]  }
 0x3e5   :  { %5847 = vmatpush3.bf16.msra.mxu0 %v6326_v21  ;;  %5869 = vmatpush3.bf16.msra.mxu1 %v6327_v25  ;;  %v6347_v21 = vld [vmem:[#allocation17 + $0x180] sm:$0xff]   ;;  %v6348_v25 = vld [vmem:[#allocation17 + $0x148] sm:$0xff]  }
 0x3e6   :  { %5848 = vmatprep.subr.bf16.mxu0 %v6328_v22  ;;  %5870 = vmatprep.subr.bf16.mxu1 %v6329_v23  ;;  %v6349_v22 = vld [vmem:[#allocation17 + $0x1c8] sm:$0xff]   ;;  %v7463_v23 = vsub.s32 4, %v566_v45 }
 0x3e9   :  { %5849 = vmatpush3.bf16.msra.mxu0 %v6330_v24  ;;  %5871 = vmatpush3.bf16.msra.mxu1 %v6331_v26  ;;  %v7465_v24 = vsub.s32 6, %v566_v45  ;;  %v7467_v26 = vsub.s32 5, %v566_v45 }
 0x3ea   :  { %5850 = vmatprep.subr.bf16.mxu0 %v6332_v27  ;;  %5872 = vmatprep.subr.bf16.mxu1 %v6333_v29  ;;  %v7469_v27 = vsub.s32 7, %v566_v45  ;;  %v6350_v29 = vld [vmem:[#allocation17 + $0x108] sm:$0xff]  }
 0x3ed   :  { %5851 = vmatpush3.bf16.msra.mxu0 %v6334_v30  ;;  %5873 = vmatpush3.bf16.msra.mxu1 %v6335_v31  ;;  %v6351_v30 = vld [vmem:[#allocation17 + $0x188] sm:$0xff]   ;;  %v584_v31 = vrot.slane %v561_v47, %v7463_v23 }
 0x3ee   :  { %5852 = vmatprep.subr.bf16.mxu0 %v6336_v32  ;;  %5874 = vmatprep.subr.bf16.mxu1 %v6337_v33  ;;  %v592_v32 = vrot.slane %v561_v47, %v7465_v24  ;;  %v6352_v33 = vld [vmem:[#allocation17 + $0x150] sm:$0xff]  }
 0x3f1   :  { %5853 = vmatpush3.bf16.msra.mxu0 %v6338_v34  ;;  %5875 = vmatpush3.bf16.msra.mxu1 %v6339_v35  ;;  %v6353_v34 = vld [vmem:[#allocation17 + $0x1d0] sm:$0xff]   ;;  %v588_v35 = vrot.slane %v561_v47, %v7467_v26 }
 0x3f2   :  { %5854 = vmatprep.subr.bf16.mxu0 %v6340_v36  ;;  %5876 = vmatprep.subr.bf16.mxu1 %v6341_v37  ;;  %v596_v36 = vrot.slane %v561_v47, %v7469_v27 }
 0x3f5   :  { %5855 = vmatpush3.bf16.msra.mxu0 %v6342_v38  ;;  %5877 = vmatpush3.bf16.msra.mxu1 %v6343_v39  ;;  %v6354_v39 = vld [vmem:[#allocation17 + $0x110] sm:$0xff]  }
 0x3f6   :  { %5884 = vmatprep.subr.bf16.mxu0 %v6344_v40  ;;  %5906 = vmatprep.subr.bf16.mxu1 %v6345_v41  ;;  %v6355_v40 = vld [vmem:[#allocation17 + $0x190] sm:$0xff]  }
 0x47b   :  { %v1002_v54 = vpop.f32.mrb[0].mxu0  ;;  %v1045_v55 = vpop.f32.mrb[8].mxu1 }
 0x47c   :  { %v1003_v56 = vadd.f32 %v1002_v54, %v568_v50  ;;  %v1046_v57 = vadd.f32 %v1045_v55, %v576_v51  ;;  %v1004_v58 = vpop.f32.mrb[1].mxu0  ;;  %v1047_v59 = vpop.f32.mrb[9].mxu1 }
 0x47d   :  { %v1005_v60 = vadd.f32 %v1004_v58, %v572_v52  ;;  %v1048_v61 = vadd.f32 %v1047_v59, %v580_v53  ;;  %v1006_v62 = vpop.f32.mrb[2].mxu0  ;;  %v1049_v63 = vpop.f32.mrb[10].mxu1 }
 0x47e   :  { %v1007_v1 = vadd.f32 %v1006_v62, %v568_v50  ;;  %v1050_v2 = vadd.f32 %v1049_v63, %v576_v51  ;;  %v1008_v3 = vpop.f32.mrb[3].mxu0  ;;  %v1051_v4 = vpop.f32.mrb[11].mxu1  ;;  %v1312_v7 = vmax.f32 %v1003_v56, 0.0  ;;  %v1314_v8 = vmax.f32 %v1046_v57, 0.0  ;;  %v6356_v51 = vld [vmem:[#allocation17 + $0x158] sm:$0xff]  }
 0x47f   :  { %v1009_v5 = vadd.f32 %v1008_v3, %v572_v52  ;;  %v1052_v6 = vadd.f32 %v1051_v4, %v580_v53  ;;  %v1313_v11 = vmax.f32 %v1005_v60, 0.0  ;;  %v1315_v13 = vmax.f32 %v1048_v61, 0.0  ;;  %v6357_v52 = vld [vmem:[#allocation17 + $0x1d8] sm:$0xff]  }
 0x480   :  { %v1328_v9 = vmax.f32 %v1007_v1, 0.0  ;;  %v1330_v10 = vmax.f32 %v1050_v2, 0.0  ;;  %v6358_v62 = vld [vmem:[#allocation17 + $0x118] sm:$0xff]  }
 0x481   :  { %v1329_v14 = vmax.f32 %v1009_v5, 0.0  ;;  %v1331_v15 = vmax.f32 %v1052_v6, 0.0  ;;  %v6359_v63 = vld [vmem:[#allocation17 + $0x198] sm:$0xff]   ;;  %v6360_v5 = vld [vmem:[#allocation17 + $0x160] sm:$0xff]  }
 0x482   :  { %v1344_v16 = vpack.c.bf16 %v1328_v9, %v1312_v7  ;;  %v1346_v17 = vpack.c.bf16 %v1330_v10, %v1314_v8  ;;  %v6361_v6 = vld [vmem:[#allocation17 + $0x1e0] sm:$0xff]  }
 0x483   :  { %v1345_v18 = vpack.c.bf16 %v1329_v14, %v1313_v11  ;;  %v1347_v19 = vpack.c.bf16 %v1331_v15, %v1315_v13 }
 0x485   :  { %2423 = vmatprep.mubr.bf16.mxu0 %v1345_v18  ;;  %2464 = vmatprep.mubr.bf16.mxu1 %v1347_v19  ;;  %v6364_v18 = vld [vmem:[#allocation17 + $0x168] sm:$0xff]  }
 0x486   :  { %2424 = vmatmul.mubr.bf16.vlgmr.msra.gmra.mrb[16].mxu0 %v1344_v16  ;;  %2465 = vmatmul.mubr.bf16.vlgmr.msra.gmra.mrb[24].mxu1 %v1346_v17  ;;  %v6362_v16 = vld [vmem:[#allocation17 + $0x120] sm:$0xff]   ;;  %v6365_v19 = vld [vmem:[#allocation17 + $0x1e8] sm:$0xff]  }
 0x487   :  { %5885 = vmatpush3.bf16.msra.mxu0 %v6346_v20  ;;  %5907 = vmatpush3.bf16.msra.mxu1 %v6347_v21  ;;  %v6363_v17 = vld [vmem:[#allocation17 + $0x1a0] sm:$0xff]   ;;  %v7479_v20 = vld [vmem:[#allocation16 + $0x8] sm:$0xff] }
 0x488   :  { %5886 = vmatprep.subr.bf16.mxu0 %v6348_v25  ;;  %5908 = vmatprep.subr.bf16.mxu1 %v6349_v22  ;;  %v6366_v21 = vld [vmem:[#allocation17 + $0x128] sm:$0xff]   ;;  %v600_v22 = vrot.slane %v7479_v20, %v7451_v46 }
 0x489   :  { %v6367_v25 = vld [vmem:[#allocation17 + $0x1a8] sm:$0xff]  }
 0x48b   :  { %v1088_v37 = vpop.f32.mrb[4].mxu0  ;;  %v1131_v38 = vpop.f32.mrb[12].mxu1  ;;  %5887 = vmatpush3.bf16.msra.mxu0 %v6350_v29  ;;  %5909 = vmatpush3.bf16.msra.mxu1 %v6351_v30  ;;  %v608_v29 = vrot.slane %v7479_v20, %v7453_v28  ;;  %v6368_v30 = vld [vmem:[#allocation17 + $0x170] sm:$0xff]  }
 0x48c   :  { %v1089_v41 = vadd.f32 %v1088_v37, %v584_v31  ;;  %v1132_v42 = vadd.f32 %v1131_v38, %v592_v32  ;;  %v1090_v45 = vpop.f32.mrb[5].mxu0  ;;  %v1133_v50 = vpop.f32.mrb[13].mxu1  ;;  %5888 = vmatprep.subr.bf16.mxu0 %v6352_v33  ;;  %5910 = vmatprep.subr.bf16.mxu1 %v6353_v34  ;;  %v612_v33 = vrot.slane %v7479_v20, %v7457_v49  ;;  %v6371_v37 = vld [vmem:[#allocation17 + $0x1b0] sm:$0xff]  }
 0x48d   :  { %v1091_v53 = vadd.f32 %v1090_v45, %v588_v35  ;;  %v1134_v54 = vadd.f32 %v1133_v50, %v596_v36  ;;  %v1092_v55 = vpop.f32.mrb[6].mxu0  ;;  %v1135_v56 = vpop.f32.mrb[14].mxu1  ;;  %v6373_v45 = vld [vmem:[#allocation17 + $0x1f8] sm:$0xff]  }
 0x48e   :  { %v1093_v57 = vadd.f32 %v1092_v55, %v584_v31  ;;  %v1136_v47 = vadd.f32 %v1135_v56, %v592_v32  ;;  %v1094_v58 = vpop.f32.mrb[7].mxu0  ;;  %v1137_v59 = vpop.f32.mrb[15].mxu1  ;;  %v1316_v1 = vmax.f32 %v1089_v41, 0.0  ;;  %v1318_v2 = vmax.f32 %v1132_v42, 0.0  ;;  %v6369_v31 = vld [vmem:[#allocation17 + $0x1f0] sm:$0xff]   ;;  %v6372_v42 = vld [vmem:[#allocation17 + $0x178] sm:$0xff]  }
 0x48f   :  { %v1095_v60 = vadd.f32 %v1094_v58, %v588_v35  ;;  %v1138_v61 = vadd.f32 %v1137_v59, %v596_v36  ;;  %5889 = vmatpush3.bf16.msra.mxu0 %v6354_v39  ;;  %5911 = vmatpush3.bf16.msra.mxu1 %v6355_v40  ;;  %v1317_v7 = vmax.f32 %v1091_v53, 0.0  ;;  %v1319_v8 = vmax.f32 %v1134_v54, 0.0  ;;  %v6370_v36 = vld [vmem:[#allocation17 + $0x130] sm:$0xff]   ;;  %v6374_v59 = vld [vmem:[#allocation17 + $0x138] sm:$0xff]  }
 0x490   :  { %v1332_v3 = vmax.f32 %v1093_v57, 0.0  ;;  %v1334_v4 = vmax.f32 %v1136_v47, 0.0  ;;  %5890 = vmatprep.subr.bf16.mxu0 %v6356_v51  ;;  %5912 = vmatprep.subr.bf16.mxu1 %v6357_v52  ;;  %v604_v32 = vrot.slane %v7479_v20, %v7455_v48 }
 0x491   :  { %v1333_v9 = vmax.f32 %v1095_v60, 0.0  ;;  %v1335_v10 = vmax.f32 %v1138_v61, 0.0  ;;  %v6375_v60 = vld [vmem:[#allocation17 + $0x1b8] sm:$0xff]  }
 0x492   :  { %v7475_v11 = vpack.c.bf16 %v1332_v3, %v1316_v1  ;;  %v7477_v13 = vpack.c.bf16 %v1334_v4, %v1318_v2  ;;  %v6376_v2 = vld [vmem:[#allocation17 + $0x240] sm:$0xff]  }
 0x493   :  { %v1349_v14 = vpack.c.bf16 %v1333_v9, %v1317_v7  ;;  %v1351_v15 = vpack.c.bf16 %v1335_v10, %v1319_v8  ;;  %5891 = vmatpush3.bf16.msra.mxu0 %v6358_v62  ;;  %5913 = vmatpush3.bf16.msra.mxu1 %v6359_v63  ;;  %v6377_v3 = vld [vmem:[#allocation17 + $0x2c0] sm:$0xff]  }
 0x494   :  { %5892 = vmatprep.subr.bf16.mxu0 %v6360_v5  ;;  %5914 = vmatprep.subr.bf16.mxu1 %v6361_v6 }
 0x495   :  { %2505 = vmatprep.mubr.bf16.mxu0 %v1349_v14  ;;  %2546 = vmatprep.mubr.bf16.mxu1 %v1351_v15  ;;  %v6378_v15 = vld [vmem:[#allocation17 + $0x200] sm:$0xff]  }
 0x497   :  { %5893 = vmatpush3.bf16.msra.mxu0 %v6362_v16  ;;  %5915 = vmatpush3.bf16.msra.mxu1 %v6363_v17  ;;  %v6379_v16 = vld [vmem:[#allocation17 + $0x280] sm:$0xff]   ;;  %v6380_v17 = vld [vmem:[#allocation17 + $0x248] sm:$0xff]  }
 0x498   :  { %5894 = vmatprep.subr.bf16.mxu0 %v6364_v18  ;;  %5916 = vmatprep.subr.bf16.mxu1 %v6365_v19  ;;  %v6381_v18 = vld [vmem:[#allocation17 + $0x2c8] sm:$0xff]  }
 0x499   :  { %v6382_v19 = vld [vmem:[#allocation17 + $0x208] sm:$0xff]  }
 0x49b   :  { %v1174_v34 = vpop.f32.mrb[8].mxu0  ;;  %v1217_v35 = vpop.f32.mrb[16].mxu1  ;;  %5895 = vmatpush3.bf16.msra.mxu0 %v6366_v21  ;;  %5917 = vmatpush3.bf16.msra.mxu1 %v6367_v25  ;;  %v616_v21 = vrot.slane %v7479_v20, %v7463_v23  ;;  %v624_v25 = vrot.slane %v7479_v20, %v7465_v24 }
 0x49c   :  { %v1175_v38 = vadd.f32 %v1174_v34, %v600_v22  ;;  %v1218_v39 = vadd.f32 %v1217_v35, %v608_v29  ;;  %v1176_v40 = vpop.f32.mrb[9].mxu0  ;;  %v1219_v41 = vpop.f32.mrb[17].mxu1  ;;  %5896 = vmatprep.subr.bf16.mxu0 %v6368_v30  ;;  %5918 = vmatprep.subr.bf16.mxu1 %v6369_v31  ;;  %v6385_v30 = vld [vmem:[#allocation17 + $0x2d0] sm:$0xff]  }
 0x49d   :  { %v1177_v50 = vadd.f32 %v1176_v40, %v604_v32  ;;  %v1220_v51 = vadd.f32 %v1219_v41, %v612_v33  ;;  %v1178_v52 = vpop.f32.mrb[10].mxu0  ;;  %v1221_v53 = vpop.f32.mrb[18].mxu1 }
 0x49e   :  { %v1179_v54 = vadd.f32 %v1178_v52, %v600_v22  ;;  %v1222_v55 = vadd.f32 %v1221_v53, %v608_v29  ;;  %v1180_v56 = vpop.f32.mrb[11].mxu0  ;;  %v1223_v57 = vpop.f32.mrb[19].mxu1  ;;  %v1320_v61 = vmax.f32 %v1175_v38, 0.0  ;;  %v1322_v62 = vmax.f32 %v1218_v39, 0.0  ;;  %v6383_v22 = vld [vmem:[#allocation17 + $0x288] sm:$0xff]   ;;  %v6384_v29 = vld [vmem:[#allocation17 + $0x250] sm:$0xff]  }
 0x49f   :  { %v1181_v47 = vadd.f32 %v1180_v56, %v604_v32  ;;  %v1224_v58 = vadd.f32 %v1223_v57, %v612_v33  ;;  %5897 = vmatpush3.bf16.msra.mxu0 %v6370_v36  ;;  %5919 = vmatpush3.bf16.msra.mxu1 %v6371_v37  ;;  %v1321_v4 = vmax.f32 %v1177_v50, 0.0  ;;  %v1323_v5 = vmax.f32 %v1220_v51, 0.0  ;;  %v6386_v33 = vld [vmem:[#allocation17 + $0x210] sm:$0xff]   ;;  %v6388_v39 = vld [vmem:[#allocation17 + $0x258] sm:$0xff]  }
 0x4a0   :  { %v1336_v63 = vmax.f32 %v1179_v54, 0.0  ;;  %v1338_v1 = vmax.f32 %v1222_v55, 0.0  ;;  %5898 = vmatprep.subr.bf16.mxu0 %v6372_v42  ;;  %5920 = vmatprep.subr.bf16.mxu1 %v6373_v45  ;;  %v6387_v38 = vld [vmem:[#allocation17 + $0x290] sm:$0xff]   ;;  %v6389_v50 = vld [vmem:[#allocation17 + $0x2d8] sm:$0xff]  }
 0x4a1   :  { %v1337_v6 = vmax.f32 %v1181_v47, 0.0  ;;  %v1339_v7 = vmax.f32 %v1224_v58, 0.0  ;;  %v6390_v56 = vld [vmem:[#allocation17 + $0x218] sm:$0xff]  }
 0x4a2   :  { %v7489_v8 = vpack.c.bf16 %v1336_v63, %v1320_v61  ;;  %v7491_v9 = vpack.c.bf16 %v1338_v1, %v1322_v62  ;;  %v6392_v61 = vld [vmem:[#allocation17 + $0x260] sm:$0xff]  }
 0x4a3   :  { %v1353_v10 = vpack.c.bf16 %v1337_v6, %v1321_v4  ;;  %v1355_v14 = vpack.c.bf16 %v1339_v7, %v1323_v5  ;;  %5899 = vmatpush3.bf16.msra.mxu0 %v6374_v59  ;;  %5921 = vmatpush3.bf16.msra.mxu1 %v6375_v60  ;;  %v6391_v60 = vld [vmem:[#allocation17 + $0x298] sm:$0xff]  }
 0x4a4   :  { %5928 = vmatprep.subr.bf16.mxu0 %v6376_v2  ;;  %5950 = vmatprep.subr.bf16.mxu1 %v6377_v3  ;;  %v6393_v3 = vld [vmem:[#allocation17 + $0x2e0] sm:$0xff]  }
 0x4a6   :  { %2506 = vmatmul.mubr.bf16.vlgmr.msra.gmra.mrb[20].mxu0 %v7475_v11  ;;  %2547 = vmatmul.mubr.bf16.vlgmr.msra.gmra.mrb[28].mxu1 %v7477_v13  ;;  %v620_v11 = vrot.slane %v7479_v20, %v7467_v26  ;;  %v628_v13 = vrot.slane %v7479_v20, %v7469_v27 }
 0x4a7   :  { %5929 = vmatpush3.bf16.msra.mxu0 %v6378_v15  ;;  %2587 = vmatprep.mubr.bf16.mxu0 %v1353_v10  ;;  %v6394_v10 = vld [vmem:[#allocation17 + $0x220] sm:$0xff]   ;;  %v6396_v15 = vld [vmem:[#allocation17 + $0x268] sm:$0xff]  }
 0x4a8   :  { %5951 = vmatpush3.bf16.msra.mxu1 %v6379_v16  ;;  %2628 = vmatprep.mubr.bf16.mxu1 %v1355_v14  ;;  %v6395_v14 = vld [vmem:[#allocation17 + $0x2a0] sm:$0xff]   ;;  %v6397_v16 = vld [vmem:[#allocation17 + $0x2e8] sm:$0xff]  }
 0x4a9   :  { %5930 = vmatprep.subr.bf16.mxu0 %v6380_v17  ;;  %5952 = vmatprep.subr.bf16.mxu1 %v6381_v18  ;;  %v6398_v17 = vld [vmem:[#allocation17 + $0x228] sm:$0xff]  }
 0x4aa   :  { %v6399_v18 = vld [vmem:[#allocation17 + $0x2a8] sm:$0xff]  }
 0x4ab   :  { %v1260_v31 = vpop.f32.mrb[12].mxu0  ;;  %v1303_v32 = vpop.f32.mrb[20].mxu1  ;;  %5931 = vmatpush3.bf16.msra.mxu0 %v6382_v19  ;;  %v6400_v19 = vld [vmem:[#allocation17 + $0x270] sm:$0xff]  }
 0x4ac   :  { %v1261_v34 = vadd.f32 %v1260_v31, %v616_v21  ;;  %v1304_v35 = vadd.f32 %v1303_v32, %v624_v25  ;;  %5953 = vmatpush3.bf16.msra.mxu1 %v6383_v22  ;;  %v1262_v36 = vpop.f32.mrb[13].mxu0  ;;  %v1305_v37 = vpop.f32.mrb[21].mxu1  ;;  %5932 = vmatprep.subr.bf16.mxu0 %v6384_v29  ;;  %v6403_v22 = vld [vmem:[#allocation17 + $0x2b0] sm:$0xff]   ;;  %v6404_v29 = vld [vmem:[#allocation17 + $0x278] sm:$0xff]   ;;  %v6408_v31 = vld [vmem:[#allocation17 + $0x340] sm:$0xff]  }
 0x4ad   :  { %v1263_v40 = vadd.f32 %v1262_v36, %v620_v11  ;;  %v1306_v41 = vadd.f32 %v1305_v37, %v628_v13  ;;  %v1264_v42 = vpop.f32.mrb[14].mxu0  ;;  %v1307_v45 = vpop.f32.mrb[22].mxu1  ;;  %5954 = vmatprep.subr.bf16.mxu1 %v6385_v30  ;;  %v6407_v30 = vld [vmem:[#allocation17 + $0x2b8] sm:$0xff]   ;;  %v6409_v32 = vld [vmem:[#allocation17 + $0x3c0] sm:$0xff]   ;;  %v6413_v36 = vld [vmem:[#allocation17 + $0x3c8] sm:$0xff]  }
 0x4ae   :  { %v1265_v20 = vadd.f32 %v1264_v42, %v616_v21  ;;  %v1308_v51 = vadd.f32 %v1307_v45, %v624_v25  ;;  %v1266_v52 = vpop.f32.mrb[15].mxu0  ;;  %v1309_v53 = vpop.f32.mrb[23].mxu1  ;;  %v1324_v57 = vmax.f32 %v1261_v34, 0.0  ;;  %v1326_v47 = vmax.f32 %v1304_v35, 0.0  ;;  %v6401_v21 = vld [vmem:[#allocation17 + $0x2f0] sm:$0xff]   ;;  %v6411_v34 = vld [vmem:[#allocation17 + $0x380] sm:$0xff]  }
 0x4af   :  { %v1267_v54 = vadd.f32 %v1266_v52, %v620_v11  ;;  %v1310_v55 = vadd.f32 %v1309_v53, %v628_v13  ;;  %5933 = vmatpush3.bf16.msra.mxu0 %v6386_v33  ;;  %v1325_v62 = vmax.f32 %v1263_v40, 0.0  ;;  %v1327_v63 = vmax.f32 %v1306_v41, 0.0  ;;  %v6402_v25 = vld [vmem:[#allocation17 + $0x230] sm:$0xff]   ;;  %v6405_v11 = vld [vmem:[#allocation17 + $0x2f8] sm:$0xff]   ;;  %v6410_v33 = vld [vmem:[#allocation17 + $0x300] sm:$0xff]  }
 0x4b0   :  { %v1340_v58 = vmax.f32 %v1265_v20, 0.0  ;;  %v1342_v59 = vmax.f32 %v1308_v51, 0.0  ;;  %5955 = vmatpush3.bf16.msra.mxu1 %v6387_v38  ;;  %5934 = vmatprep.subr.bf16.mxu0 %v6388_v39  ;;  %v6406_v13 = vld [vmem:[#allocation17 + $0x238] sm:$0xff]   ;;  %v6412_v35 = vld [vmem:[#allocation17 + $0x348] sm:$0xff]   ;;  %v6416_v39 = vld [vmem:[#allocation17 + $0x350] sm:$0xff]  }
 0x4b1   :  { %v1341_v1 = vmax.f32 %v1267_v54, 0.0  ;;  %v1343_v2 = vmax.f32 %v1310_v55, 0.0  ;;  %5956 = vmatprep.subr.bf16.mxu1 %v6389_v50  ;;  %v6414_v37 = vld [vmem:[#allocation17 + $0x308] sm:$0xff]   ;;  %v6417_v40 = vld [vmem:[#allocation17 + $0x3d0] sm:$0xff]   ;;  %v6420_v45 = vld [vmem:[#allocation17 + $0x358] sm:$0xff]  }
 0x4b2   :  { %v7503_v4 = vpack.c.bf16 %v1340_v58, %v1324_v57  ;;  %v7505_v5 = vpack.c.bf16 %v1342_v59, %v1326_v47  ;;  %v6415_v38 = vld [vmem:[#allocation17 + $0x388] sm:$0xff]   ;;  %v6418_v41 = vld [vmem:[#allocation17 + $0x310] sm:$0xff]   ;;  %v6423_v50 = vld [vmem:[#allocation17 + $0x398] sm:$0xff]  }
 0x4b3   :  { %v1357_v6 = vpack.c.bf16 %v1341_v1, %v1325_v62  ;;  %v1359_v7 = vpack.c.bf16 %v1343_v2, %v1327_v63  ;;  %5935 = vmatpush3.bf16.msra.mxu0 %v6390_v56  ;;  %v6419_v42 = vld [vmem:[#allocation17 + $0x390] sm:$0xff]   ;;  %v6424_v20 = vld [vmem:[#allocation17 + $0x360] sm:$0xff]   ;;  %v6428_v54 = vld [vmem:[#allocation17 + $0x368] sm:$0xff]  }
 0x4b4   :  { %5957 = vmatpush3.bf16.msra.mxu1 %v6391_v60  ;;  %5936 = vmatprep.subr.bf16.mxu0 %v6392_v61  ;;  %v6425_v51 = vld [vmem:[#allocation17 + $0x3e0] sm:$0xff]   ;;  %v6429_v55 = vld [vmem:[#allocation17 + $0x3e8] sm:$0xff]   ;;  %v6432_v47 = vld [vmem:[#allocation17 + $0x370] sm:$0xff]  }
 0x4b5   :  { %5958 = vmatprep.subr.bf16.mxu1 %v6393_v3  ;;  %v6426_v52 = vld [vmem:[#allocation17 + $0x320] sm:$0xff]   ;;  %v6430_v56 = vld [vmem:[#allocation17 + $0x328] sm:$0xff]   ;;  %v6433_v58 = vld [vmem:[#allocation17 + $0x3f0] sm:$0xff]  }
 0x4b6   :  { %v6427_v53 = vld [vmem:[#allocation17 + $0x3a0] sm:$0xff]   ;;  %v6431_v57 = vld [vmem:[#allocation17 + $0x3a8] sm:$0xff]   ;;  %v6434_v59 = vld [vmem:[#allocation17 + $0x330] sm:$0xff]  }
 0x4b7   :  { %5937 = vmatpush3.bf16.msra.mxu0 %v6394_v10  ;;  %v6435_v60 = vld [vmem:[#allocation17 + $0x3b0] sm:$0xff]   ;;  %v6436_v61 = vld [vmem:[#allocation17 + $0x378] sm:$0xff]  }
 0x4b8   :  { %5959 = vmatpush3.bf16.msra.mxu1 %v6395_v14  ;;  %5938 = vmatprep.subr.bf16.mxu0 %v6396_v15  ;;  %v6437_v62 = vld [vmem:[#allocation17 + $0x3f8] sm:$0xff]  }
 0x4b9   :  { %5960 = vmatprep.subr.bf16.mxu1 %v6397_v16  ;;  %v6438_v63 = vld [vmem:[#allocation17 + $0x338] sm:$0xff]  }
 0x4ba   :  { %v6439_v1 = vld [vmem:[#allocation17 + $0x3b8] sm:$0xff]  }
 0x4bb   :  { %5939 = vmatpush3.bf16.msra.mxu0 %v6398_v17 }
 0x4bc   :  { %5961 = vmatpush3.bf16.msra.mxu1 %v6399_v18  ;;  %5940 = vmatprep.subr.bf16.mxu0 %v6400_v19 }
 0x4bd   :  { %5962 = vmatprep.subr.bf16.mxu1 %v6401_v21 }
 0x4bf   :  { %5941 = vmatpush3.bf16.msra.mxu0 %v6402_v25 }
 0x4c0   :  { %5963 = vmatpush3.bf16.msra.mxu1 %v6403_v22  ;;  %5942 = vmatprep.subr.bf16.mxu0 %v6404_v29 }
 0x4c1   :  { %5964 = vmatprep.subr.bf16.mxu1 %v6405_v11 }
 0x4c3   :  { %5943 = vmatpush3.bf16.msra.mxu0 %v6406_v13 }
 0x4c4   :  { %5965 = vmatpush3.bf16.msra.mxu1 %v6407_v30  ;;  %5972 = vmatprep.subr.bf16.mxu0 %v6408_v31 }
 0x4c5   :  { %5994 = vmatprep.subr.bf16.mxu1 %v6409_v32 }
 0x4c6   :  { %2588 = vmatmul.mubr.bf16.vlgmr.msra.gmra.mrb[24].mxu0 %v7489_v8  ;;  %v6421_v8 = vld [vmem:[#allocation17 + $0x3d8] sm:$0xff]  }
 0x4c7   :  { %2629 = vmatmul.mubr.bf16.vlgmr.msra.gmra.mrb[32].mxu1 %v7491_v9  ;;  %5973 = vmatpush3.bf16.msra.mxu0 %v6410_v33  ;;  %v6422_v9 = vld [vmem:[#allocation17 + $0x318] sm:$0xff]  }
 0x4c8   :  { %2669 = vmatprep.mubr.bf16.mxu0 %v1357_v6  ;;  %5995 = vmatpush3.bf16.msra.mxu1 %v6411_v34  ;;  %v5477_v6 = vld [vmem:[#allocation19] ss:$0 sm:$0xff] }
 0x4c9   :  { %2710 = vmatprep.mubr.bf16.mxu1 %v1359_v7  ;;  %5974 = vmatprep.subr.bf16.mxu0 %v6412_v35 }
 0x4ca   :  { %5996 = vmatprep.subr.bf16.mxu1 %v6413_v36 }
 0x4cb   :  { %5975 = vmatpush3.bf16.msra.mxu0 %v6414_v37 }
 0x4cc   :  { %5997 = vmatpush3.bf16.msra.mxu1 %v6415_v38  ;;  %5976 = vmatprep.subr.bf16.mxu0 %v6416_v39 }
 0x4cd   :  { %5998 = vmatprep.subr.bf16.mxu1 %v6417_v40 }
 0x4cf   :  { %5977 = vmatpush3.bf16.msra.mxu0 %v6418_v41 }
 0x4d0   :  { %5999 = vmatpush3.bf16.msra.mxu1 %v6419_v42  ;;  %5978 = vmatprep.subr.bf16.mxu0 %v6420_v45 }
 0x4d1   :  { %6000 = vmatprep.subr.bf16.mxu1 %v6421_v8 }
 0x4d3   :  { %5979 = vmatpush3.bf16.msra.mxu0 %v6422_v9 }
 0x4d4   :  { %6001 = vmatpush3.bf16.msra.mxu1 %v6423_v50  ;;  %5980 = vmatprep.subr.bf16.mxu0 %v6424_v20 }
 0x4d5   :  { %6002 = vmatprep.subr.bf16.mxu1 %v6425_v51 }
 0x4d7   :  { %5981 = vmatpush3.bf16.msra.mxu0 %v6426_v52 }
 0x4d8   :  { %6003 = vmatpush3.bf16.msra.mxu1 %v6427_v53  ;;  %5982 = vmatprep.subr.bf16.mxu0 %v6428_v54 }
 0x4d9   :  { %6004 = vmatprep.subr.bf16.mxu1 %v6429_v55 }
 0x4db   :  { %5983 = vmatpush3.bf16.msra.mxu0 %v6430_v56 }
 0x4dc   :  { %6005 = vmatpush3.bf16.msra.mxu1 %v6431_v57  ;;  %5984 = vmatprep.subr.bf16.mxu0 %v6432_v47 }
 0x4dd   :  { %6006 = vmatprep.subr.bf16.mxu1 %v6433_v58 }
 0x4df   :  { %5985 = vmatpush3.bf16.msra.mxu0 %v6434_v59 }
 0x4e0   :  { %6007 = vmatpush3.bf16.msra.mxu1 %v6435_v60  ;;  %5986 = vmatprep.subr.bf16.mxu0 %v6436_v61 }
 0x4e1   :  { %6008 = vmatprep.subr.bf16.mxu1 %v6437_v62 }
 0x4e3   :  { %5987 = vmatpush3.bf16.msra.mxu0 %v6438_v63 }
 0x4e4   :  { %6009 = vmatpush3.bf16.msra.mxu1 %v6439_v1  ;;  %6231 = vmatprep.subr.bf16.mxu0 %v7039_v0 }
 0x4e6   :  { %2670 = vmatmul.mubr.bf16.vlgmr.msra.gmra.mrb[28].mxu0 %v7503_v4 }
 0x4e7   :  { %2711 = vmatmul.mubr.bf16.vlgmr.msra.gmra.mrb[36].mxu1 %v7505_v5  ;;  %6239 = vmatprep.mubr.msk.bf16.mxu0 %vm7040_vm1, %v7039_v0 }
 0x4e8   :  { %3413 = vmatprep.mubr.bf16.mxu1 %v7042_v12 }
 0x559   :  { %v5856_v2 = vpop.f32.mrb[16].mxu0  ;;  %v5878_v3 = vpop.f32.mrb[24].mxu1 }
 0x55a   :  { %v5857_v7 = vpop.f32.mrb[17].mxu0  ;;  %v5879_v10 = vpop.f32.mrb[25].mxu1 }
 0x55b   :  { %v5858_v14 = vadd.f32 %v5857_v7, %v5856_v2  ;;  %v5880_v15 = vadd.f32 %v5879_v10, %v5878_v3  ;;  %v5859_v16 = vpop.f32.mrb[18].mxu0  ;;  %v5881_v17 = vpop.f32.mrb[26].mxu1 }
 0x55c   :  { %v5860_v18 = vpop.f32.mrb[19].mxu0  ;;  %v5882_v19 = vpop.f32.mrb[27].mxu1 }
 0x55d   :  { %v2426_v21 = vadd.f32 %v5858_v14, %v5477_v6  ;;  %v5861_v4 = vadd.f32 %v5860_v18, %v5859_v16  ;;  %v5883_v25 = vadd.f32 %v5882_v19, %v5881_v17 }
 0x55f   :  { %v2467_v5 = vadd.f32 %v5880_v15, %v2426_v21  ;;  %v2429_v22 = vadd.f32 %v5861_v4, %v5477_v6 }
 0x561   :  { %v2470_v29 = vadd.f32 %v5883_v25, %v2429_v22 }
 0x579   :  { %v5900_v11 = vpop.f32.mrb[20].mxu0  ;;  %v5922_v13 = vpop.f32.mrb[28].mxu1 }
 0x57a   :  { %v5901_v30 = vpop.f32.mrb[21].mxu0  ;;  %v5923_v31 = vpop.f32.mrb[29].mxu1 }
 0x57b   :  { %v5902_v32 = vadd.f32 %v5901_v30, %v5900_v11  ;;  %v5924_v33 = vadd.f32 %v5923_v31, %v5922_v13  ;;  %v5903_v34 = vpop.f32.mrb[22].mxu0  ;;  %v5925_v35 = vpop.f32.mrb[30].mxu1 }
 0x57c   :  { %v5904_v36 = vpop.f32.mrb[23].mxu0  ;;  %v5926_v37 = vpop.f32.mrb[31].mxu1 }
 0x57d   :  { %v2508_v38 = vadd.f32 %v5902_v32, %v2467_v5  ;;  %v5905_v39 = vadd.f32 %v5904_v36, %v5903_v34  ;;  %v5927_v40 = vadd.f32 %v5926_v37, %v5925_v35  ;;  %v6440_v32 = vld [vmem:[#allocation8 + $0x20] sm:$0xff]  }
 0x57e   :  { %6232 = vmatpush3.bf16.msra.mxu0 %v6440_v32  ;;  %v2925_v32 = vld [vmem:[#allocation14 + $0x280] sm:$0xff] }
 0x57f   :  { %v2549_v41 = vadd.f32 %v5924_v33, %v2508_v38  ;;  %v2511_v42 = vadd.f32 %v5905_v39, %v2470_v29  ;;  %6233 = vmatprep.subr.bf16.mxu0 %v7039_v0  ;;  %v6443_v33 = vld [vmem:[#allocation8 + $0x38] sm:$0xff]  }
 0x581   :  { %v2552_v45 = vadd.f32 %v5927_v40, %v2511_v42 }
 0x599   :  { %v5944_v8 = vpop.f32.mrb[24].mxu0 }
 0x59a   :  { %v5966_v9 = vpop.f32.mrb[32].mxu1  ;;  %v5945_v50 = vpop.f32.mrb[25].mxu0 }
 0x59b   :  { %v5946_v20 = vadd.f32 %v5945_v50, %v5944_v8  ;;  %v5967_v51 = vpop.f32.mrb[33].mxu1  ;;  %v5947_v52 = vpop.f32.mrb[26].mxu0 }
 0x59c   :  { %v5968_v53 = vadd.f32 %v5967_v51, %v5966_v9  ;;  %v5969_v54 = vpop.f32.mrb[34].mxu1  ;;  %v5948_v55 = vpop.f32.mrb[27].mxu0 }
 0x59d   :  { %v2590_v56 = vadd.f32 %v5946_v20, %v2549_v41  ;;  %v5949_v57 = vadd.f32 %v5948_v55, %v5947_v52  ;;  %v5970_v47 = vpop.f32.mrb[35].mxu1 }
 0x59e   :  { %v5971_v58 = vadd.f32 %v5970_v47, %v5969_v54 }
 0x59f   :  { %v2631_v59 = vadd.f32 %v5968_v53, %v2590_v56  ;;  %v2593_v60 = vadd.f32 %v5949_v57, %v2552_v45  ;;  %v5606_v53 = vld [vmem:[#allocation20] ss:$0 sm:$0xff] }
 0x5a1   :  { %v2634_v61 = vadd.f32 %v5971_v58, %v2593_v60  ;;  %v5607_v58 = vld [vmem:[#allocation22] ss:$0 sm:$0xff] }
 0x5b9   :  { %v5988_v62 = vpop.f32.mrb[28].mxu0 }
 0x5ba   :  { %v6010_v63 = vpop.f32.mrb[36].mxu1  ;;  %v5989_v1 = vpop.f32.mrb[29].mxu0 }
 0x5bb   :  { %v5990_v2 = vadd.f32 %v5989_v1, %v5988_v62  ;;  %v6011_v3 = vpop.f32.mrb[37].mxu1  ;;  %v5991_v6 = vpop.f32.mrb[30].mxu0 }
 0x5bc   :  { %v6012_v7 = vadd.f32 %v6011_v3, %v6010_v63  ;;  %v6013_v10 = vpop.f32.mrb[38].mxu1  ;;  %v5992_v14 = vpop.f32.mrb[31].mxu0  ;;  %v5608_v63 = vld [vmem:[#allocation10 + $0x1] ss:$0 sm:$0xff] }
 0x5bd   :  { %v2672_v15 = vadd.f32 %v5990_v2, %v2631_v59  ;;  %v5993_v16 = vadd.f32 %v5992_v14, %v5991_v6  ;;  %v6014_v17 = vpop.f32.mrb[39].mxu1 }
 0x5be   :  { %v6015_v18 = vadd.f32 %v6014_v17, %v6013_v10 }
 0x5bf   :  { %v2713_v19 = vadd.f32 %v6012_v7, %v2672_v15  ;;  %v2675_v21 = vadd.f32 %v5993_v16, %v2634_v61 }
 0x5c1   :  { %v2719_v4 = vadd.f32 %v2713_v19, %v7421_v43  ;;  %v2716_v25 = vadd.f32 %v6015_v18, %v2675_v21  ;;  %v6441_v43 = vld [vmem:[#allocation8 + $0x28] sm:$0xff]  }
 0x5c2   :  { %6234 = vmatpush3.bf16.msra.mxu0 %v6441_v43  ;;  %v2933_v43 = vld [vmem:[#allocation14 + $0x2c0] sm:$0xff] }
 0x5c3   :  { %v2720_v5 = vadd.f32 %v2716_v25, %v7423_v44  ;;  %v2721_v22 = vsel %vm400_vm4, %v2719_v4, 0.0  ;;  %v2729_v29 = vmul.f32 %v2719_v4, %v2719_v4  ;;  %6235 = vmatprep.subr.bf16.mxu0 %v7039_v0  ;;  %v6442_v44 = vld [vmem:[#allocation8 + $0x30] sm:$0xff]   ;;  %v2909_v25 = vld [vmem:[#allocation14 + $0x200] sm:$0xff] }
 0x5c4   :  { %2722 = vadd.xlane.f32.xlu0 %v2721_v22  ;;  %v2910_v22 = vld [vmem:[#allocation14 + $0x208] sm:$0xff] }
 0x5c5   :  { %v2724_v11 = vsel %vm400_vm4, %v2720_v5, 0.0  ;;  %v2730_v13 = vmul.f32 %v2720_v5, %v2720_v5  ;;  %v2731_v30 = vsel %vm400_vm4, %v2729_v29, 0.0 }
 0x5c6   :  { %2725 = vadd.xlane.f32.xlu1 %v2724_v11  ;;  %6236 = vmatpush3.bf16.msra.mxu0 %v6442_v44  ;;  %v2918_v11 = vld [vmem:[#allocation14 + $0x248] sm:$0xff] }
 0x5c7   :  { %v2734_v31 = vsel %vm400_vm4, %v2730_v13, 0.0  ;;  %6237 = vmatprep.subr.bf16.mxu0 %v7039_v0  ;;  %v2926_v44 = vld [vmem:[#allocation14 + $0x288] sm:$0xff] }
 0x5c8   :  { %2732 = vadd.xlane.f32.xlu0 %v2731_v30  ;;  %v5618_v30 = vcombine.low %v2910_v22, %v2918_v11 }
 0x5ca   :  { %2735 = vadd.xlane.f32.xlu1 %v2734_v31  ;;  %6238 = vmatpush3.bf16.msra.mxu0 %v6443_v33  ;;  %v5619_v31 = vcombine.high %v2910_v22, %v2918_v11  ;;  %v5633_v33 = vcombine.high %v2925_v32, %v2933_v43  ;;  %v5614_v11 = vld [vmem:[#allocation11 + $0x1] ss:$0 sm:$0xff] }
 0x5cc   :  { %3424 = vmatprep.subr.bf16.mxu0 %v5619_v31 }
 0x651   :  { %v2723_v34 = vpop.xlane.xlu0 %2722 }
 0x652   :  { %v2727_v35 = vmul.f32 0.015625, %v2723_v34  ;;  %v2934_v34 = vld [vmem:[#allocation14 + $0x2c8] sm:$0xff] }
 0x653   :  { %v2726_v36 = vpop.xlane.xlu1 %2725 }
 0x654   :  { %v2728_v37 = vmul.f32 0.015625, %v2726_v36  ;;  %v2739_v39 = vmul.f32 %v2727_v35, %v2727_v35  ;;  %v2743_v51 = vsub.f32 %v2719_v4, %v2727_v35  ;;  %v5632_v35 = vcombine.low %v2925_v32, %v2933_v43 }
 0x655   :  { %v2733_v38 = vpop.xlane.xlu0 %2732  ;;  %v5634_v36 = vcombine.low %v2926_v44, %v2934_v34 }
 0x656   :  { %v2737_v40 = vmul.f32 0.015625, %v2733_v38  ;;  %v2740_v42 = vmul.f32 %v2728_v37, %v2728_v37  ;;  %v2744_v54 = vsub.f32 %v2720_v5, %v2728_v37  ;;  %v2917_v5 = vld [vmem:[#allocation14 + $0x240] sm:$0xff]  ;;  %v5635_v37 = vcombine.high %v2926_v44, %v2934_v34  ;;  %v5615_v44 = vld [vmem:[#allocation13 + $0x1] ss:$0 sm:$0xff]  ;;  %v2927_v34 = vld [vmem:[#allocation14 + $0x290] sm:$0xff] }
 0x657   :  { %v2736_v41 = vpop.xlane.xlu1 %2735  ;;  %v5617_v29 = vcombine.high %v2909_v25, %v2917_v5  ;;  %v5616_v13 = vcombine.low %v2909_v25, %v2917_v5  ;;  %v2941_v38 = vld [vmem:[#allocation14 + $0x300] sm:$0xff] }
 0x658   :  { %v2741_v45 = vsub.f32 %v2737_v40, %v2739_v39  ;;  %v2738_v8 = vmul.f32 0.015625, %v2736_v41  ;;  %v2949_v39 = vld [vmem:[#allocation14 + $0x340] sm:$0xff]  ;;  %v2942_v40 = vld [vmem:[#allocation14 + $0x308] sm:$0xff] }
 0x659   :  { %3381 = vmatprep.subr.bf16.mxu1 %v5617_v29  ;;  %v5649_v41 = vcombine.high %v2941_v38, %v2949_v39 }
 0x65a   :  { %v2745_v9 = vadd.f32 1e-05, %v2741_v45  ;;  %v2742_v50 = vsub.f32 %v2738_v8, %v2740_v42  ;;  %3382 = vmatpush1.bf16.msra.mxu1 %v5616_v13  ;;  %v2950_v42 = vld [vmem:[#allocation14 + $0x348] sm:$0xff]  ;;  %v5648_v45 = vcombine.low %v2941_v38, %v2949_v39 }
 0x65b   :  { %3383 = vmatprep.subr.bf16.mxu1 %v5633_v33  ;;  %v5650_v8 = vcombine.low %v2942_v40, %v2950_v42 }
 0x65c   :  { %6588 = vrsqrt.f32 %v2745_v9  ;;  %v2746_v20 = vadd.f32 1e-05, %v2742_v50  ;;  %v5651_v9 = vcombine.high %v2942_v40, %v2950_v42  ;;  %v2957_v50 = vld [vmem:[#allocation14 + $0x380] sm:$0xff]  ;;  %v2951_v42 = vld [vmem:[#allocation14 + $0x350] sm:$0xff] }
 0x65e   :  { %6590 = vrsqrt.f32 %v2746_v20  ;;  %3384 = vmatpush1.bf16.msra.mxu1 %v5632_v35  ;;  %v2965_v20 = vld [vmem:[#allocation14 + $0x3c0] sm:$0xff]  ;;  %v2935_v35 = vld [vmem:[#allocation14 + $0x2d0] sm:$0xff] }
 0x65f   :  { %3385 = vmatprep.subr.bf16.mxu1 %v5649_v41  ;;  %v5637_v40 = vcombine.high %v2927_v34, %v2935_v35  ;;  %v2943_v41 = vld [vmem:[#allocation14 + $0x310] sm:$0xff] }
 0x662   :  { %3386 = vmatpush1.bf16.msra.mxu1 %v5648_v45  ;;  %v2944_v45 = vld [vmem:[#allocation14 + $0x318] sm:$0xff] }
 0x666   :  { %v6589_v52 = vpop.eup %6588 }
 0x667   :  { %v2749_v55 = vmul.f32 %v6589_v52, %v2743_v51  ;;  %v2958_v51 = vld [vmem:[#allocation14 + $0x388] sm:$0xff]  ;;  %v5665_v52 = vcombine.high %v2957_v50, %v2965_v20 }
 0x668   :  { %v6591_v56 = vpop.eup %6590 }
 0x669   :  { %v2750_v57 = vmul.f32 %v6591_v56, %v2744_v54  ;;  %v2758_v47 = vmul.f32 %v5606_v53, %v2749_v55  ;;  %v5664_v54 = vcombine.low %v2957_v50, %v2965_v20  ;;  %3387 = vmatprep.subr.bf16.mxu1 %v5665_v52  ;;  %v5653_v20 = vcombine.high %v2943_v41, %v2951_v42  ;;  %v2959_v52 = vld [vmem:[#allocation14 + $0x390] sm:$0xff] }
 0x66b   :  { %v2759_v59 = vmul.f32 %v5606_v53, %v2750_v57  ;;  %v2767_v60 = vadd.f32 %v5607_v58, %v2758_v47  ;;  %v2966_v53 = vld [vmem:[#allocation14 + $0x3c8] sm:$0xff]  ;;  %3388 = vmatpush1.bf16.msra.mxu1 %v5664_v54  ;;  %v2911_v57 = vld [vmem:[#allocation14 + $0x210] sm:$0xff]  ;;  %v2960_v54 = vld [vmem:[#allocation14 + $0x398] sm:$0xff] }
 0x66c   :  { %v5666_v55 = vcombine.low %v2958_v51, %v2966_v53  ;;  %v5667_v56 = vcombine.high %v2958_v51, %v2966_v53  ;;  %v2919_v47 = vld [vmem:[#allocation14 + $0x250] sm:$0xff] }
 0x66d   :  { %v2768_v61 = vadd.f32 %v5607_v58, %v2759_v59  ;;  %v2912_v58 = vld [vmem:[#allocation14 + $0x218] sm:$0xff]  ;;  %v5620_v59 = vcombine.low %v2911_v57, %v2919_v47  ;;  %v2967_v53 = vld [vmem:[#allocation14 + $0x3d0] sm:$0xff] }
 0x66f   :  { %v2769_v62 = vpack.c.bf16 %v2768_v61, %v2767_v60 }
 0x671   :  { %6240 = vmatmul.mubr.msk.bf16.vlgmr.msra.gmra.mrb[32].mxu0 %vm400_vm4, %v2769_v62 }
 0x672   :  { %3456 = vmatprep.mubr.bf16.mxu0 %v7042_v12  ;;  %3425 = vmatpush1.bf16.msra.mxu0 %v5618_v30 }
 0x673   :  { %3426 = vmatprep.subr.bf16.mxu0 %v5635_v37  ;;  %v2936_v37 = vld [vmem:[#allocation14 + $0x2d8] sm:$0xff] }
 0x676   :  { %3427 = vmatpush1.bf16.msra.mxu0 %v5634_v36  ;;  %v2928_v36 = vld [vmem:[#allocation14 + $0x298] sm:$0xff] }
 0x677   :  { %3428 = vmatprep.subr.bf16.mxu0 %v5651_v9  ;;  %v5636_v9 = vcombine.low %v2927_v34, %v2935_v35  ;;  %v5638_v50 = vcombine.low %v2928_v36, %v2936_v37 }
 0x67a   :  { %3429 = vmatpush1.bf16.msra.mxu0 %v5650_v8  ;;  %v2952_v8 = vld [vmem:[#allocation14 + $0x358] sm:$0xff] }
 0x67b   :  { %3430 = vmatprep.subr.bf16.mxu0 %v5667_v56  ;;  %v5655_v51 = vcombine.high %v2944_v45, %v2952_v8  ;;  %v5652_v56 = vcombine.low %v2943_v41, %v2951_v42  ;;  %v2924_v41 = vld [vmem:[#allocation14 + $0x278] sm:$0xff] }
 0x67e   :  { %3431 = vmatpush1.bf16.msra.mxu0 %v5666_v55  ;;  %v2968_v55 = vld [vmem:[#allocation14 + $0x3d8] sm:$0xff] }
 0x744   :  { %v2848_v1 = vpop.f32.mrb[32].mxu0 }
 0x745   :  { %v2849_v2 = vadd.f32 %v5608_v63, %v2848_v1  ;;  %v6241_v3 = vpop.f32.mrb[33].mxu0 }
 0x746   :  { %v2851_v6 = vpop.f32.mrb[34].mxu0 }
 0x747   :  { %v7526_v7 = vadd.f32 %v2849_v2, %v2767_v60  ;;  %v2852_v10 = vadd.f32 %v5608_v63, %v2851_v6  ;;  %v6242_v14 = vpop.f32.mrb[35].mxu0  ;;  %v5621_v60 = vcombine.high %v2911_v57, %v2919_v47  ;;  %v5654_v57 = vcombine.low %v2944_v45, %v2952_v8 }
 0x748   :  { %v5669_v47 = vcombine.high %v2959_v52, %v2967_v53 }
 0x749   :  { %v7528_v15 = vadd.f32 %v2852_v10, %v2768_v61  ;;  %v2857_v16 = vsel %vm400_vm4, %v7526_v7, 0.0  ;;  %v2865_v17 = vmul.f32 %v7526_v7, %v7526_v7  ;;  %v2920_v61 = vld [vmem:[#allocation14 + $0x258] sm:$0xff]  ;;  %3467 = vmatprep.subr.bf16.mxu1 %v5621_v60  ;;  %v2921_v60 = vld [vmem:[#allocation14 + $0x260] sm:$0xff] }
 0x74a   :  { %2858 = vadd.xlane.f32.xlu0 %v2857_v16  ;;  %v5622_v62 = vcombine.low %v2912_v58, %v2920_v61  ;;  %v5623_v63 = vcombine.high %v2912_v58, %v2920_v61  ;;  %v5671_v58 = vcombine.high %v2960_v54, %v2968_v55  ;;  %v2914_v61 = vld [vmem:[#allocation14 + $0x228] sm:$0xff] }
 0x74b   :  { %v2860_v18 = vsel %vm400_vm4, %v7528_v15, 0.0  ;;  %v2866_v19 = vmul.f32 %v7528_v15, %v7528_v15  ;;  %v2867_v21 = vsel %vm400_vm4, %v2865_v17, 0.0 }
 0x74c   :  { %2861 = vadd.xlane.f32.xlu1 %v2860_v18  ;;  %3510 = vmatprep.subr.bf16.mxu0 %v5623_v63  ;;  %v5668_v63 = vcombine.low %v2959_v52, %v2967_v53  ;;  %v2940_v52 = vld [vmem:[#allocation14 + $0x2f8] sm:$0xff] }
 0x74d   :  { %v2870_v4 = vsel %vm400_vm4, %v2866_v19, 0.0 }
 0x74e   :  { %2868 = vadd.xlane.f32.xlu0 %v2867_v21 }
 0x750   :  { %2871 = vadd.xlane.f32.xlu1 %v2870_v4 }
 0x7d7   :  { %v2859_v1 = vpop.xlane.xlu0 %2858 }
 0x7d8   :  { %v2863_v2 = vmul.f32 0.015625, %v2859_v1  ;;  %v5670_v1 = vcombine.low %v2960_v54, %v2968_v55 }
 0x7d9   :  { %v2862_v3 = vpop.xlane.xlu1 %2861 }
 0x7da   :  { %v2864_v6 = vmul.f32 0.015625, %v2862_v3  ;;  %v2875_v14 = vmul.f32 %v2863_v2, %v2863_v2  ;;  %v2879_v22 = vsub.f32 %v7526_v7, %v2863_v2 }
 0x7db   :  { %v2869_v10 = vpop.xlane.xlu0 %2868 }
 0x7dc   :  { %v2873_v16 = vmul.f32 0.015625, %v2869_v10  ;;  %v2876_v18 = vmul.f32 %v2864_v6, %v2864_v6  ;;  %v2880_v13 = vsub.f32 %v7528_v15, %v2864_v6  ;;  %v5639_v15 = vcombine.high %v2928_v36, %v2936_v37  ;;  %v2929_v6 = vld [vmem:[#allocation14 + $0x2a0] sm:$0xff]  ;;  %v2915_v37 = vld [vmem:[#allocation14 + $0x230] sm:$0xff] }
 0x7dd   :  { %v2872_v17 = vpop.xlane.xlu1 %2871  ;;  %v2937_v10 = vld [vmem:[#allocation14 + $0x2e0] sm:$0xff] }
 0x7de   :  { %v2877_v19 = vsub.f32 %v2873_v16, %v2875_v14  ;;  %v2874_v21 = vmul.f32 0.015625, %v2872_v17  ;;  %v2930_v14 = vld [vmem:[#allocation14 + $0x2a8] sm:$0xff] }
 0x7df   :  { %v2938_v16 = vld [vmem:[#allocation14 + $0x2e8] sm:$0xff] }
 0x7e0   :  { %v2881_v4 = vadd.f32 1e-05, %v2877_v19  ;;  %v2878_v25 = vsub.f32 %v2874_v21, %v2876_v18  ;;  %v5641_v19 = vcombine.high %v2929_v6, %v2937_v10  ;;  %v5643_v21 = vcombine.high %v2930_v14, %v2938_v16 }
 0x7e2   :  { %6592 = vrsqrt.f32 %v2881_v4  ;;  %v2882_v5 = vadd.f32 1e-05, %v2878_v25  ;;  %v2945_v4 = vld [vmem:[#allocation14 + $0x320] sm:$0xff] }
 0x7e3   :  { %v2953_v25 = vld [vmem:[#allocation14 + $0x360] sm:$0xff] }
 0x7e4   :  { %6594 = vrsqrt.f32 %v2882_v5  ;;  %v2946_v5 = vld [vmem:[#allocation14 + $0x328] sm:$0xff] }
 0x7ec   :  { %v6593_v29 = vpop.eup %6592 }
 0x7ed   :  { %v2885_v30 = vmul.f32 %v6593_v29, %v2879_v22  ;;  %v2954_v22 = vld [vmem:[#allocation14 + $0x368] sm:$0xff]  ;;  %v5640_v29 = vcombine.low %v2929_v6, %v2937_v10  ;;  %v2972_v6 = vld [vmem:[#allocation14 + $0x3f8] sm:$0xff] }
 0x7ee   :  { %v6595_v31 = vpop.eup %6594  ;;  %v5658_v34 = vcombine.low %v2946_v5, %v2954_v22 }
 0x7ef   :  { %v2895_v32 = vmul.f32 %v5614_v11, %v2885_v30  ;;  %v2886_v43 = vmul.f32 %v6595_v31, %v2880_v13  ;;  %v5657_v13 = vcombine.high %v2945_v4, %v2953_v25  ;;  %v5659_v30 = vcombine.high %v2946_v5, %v2954_v22  ;;  %v2961_v31 = vld [vmem:[#allocation14 + $0x3a0] sm:$0xff]  ;;  %v6448_v5 = vld [vmem:[#allocation17 + $0x448] sm:$0xff]  }
 0x7f0   :  { %v6449_v22 = vld [vmem:[#allocation17 + $0x4c8] sm:$0xff]  }
 0x7f1   :  { %v2896_v33 = vmul.f32 %v5614_v11, %v2886_v43  ;;  %v7542_v38 = vadd.f32 %v5615_v44, %v2895_v32  ;;  %v5642_v11 = vcombine.low %v2930_v14, %v2938_v16  ;;  %v2969_v32 = vld [vmem:[#allocation14 + $0x3e0] sm:$0xff]  ;;  %v2962_v43 = vld [vmem:[#allocation14 + $0x3a8] sm:$0xff] }
 0x7f2   :  { %v5673_v35 = vcombine.high %v2961_v31, %v2969_v32  ;;  %v5672_v42 = vcombine.low %v2961_v31, %v2969_v32  ;;  %v6454_v31 = vld [vmem:[#allocation17 + $0x410] sm:$0xff]  }
 0x7f3   :  { %v7544_v39 = vadd.f32 %v5615_v44, %v2896_v33  ;;  %v2970_v44 = vld [vmem:[#allocation14 + $0x3e8] sm:$0xff]  ;;  %v5656_v33 = vcombine.low %v2945_v4, %v2953_v25  ;;  %v6445_v4 = vld [vmem:[#allocation17 + $0x4c0] sm:$0xff]   ;;  %v6455_v32 = vld [vmem:[#allocation17 + $0x490] sm:$0xff]  }
 0x7f4   :  { %v5675_v36 = vcombine.high %v2962_v43, %v2970_v44  ;;  %v5674_v45 = vcombine.low %v2962_v43, %v2970_v44  ;;  %v6446_v25 = vld [vmem:[#allocation17 + $0x400] sm:$0xff]   ;;  %v6456_v43 = vld [vmem:[#allocation17 + $0x458] sm:$0xff]  }
 0x7f5   :  { %v7548_v7 = vpack.c.bf16 %v7544_v39, %v7542_v38  ;;  %v6457_v44 = vld [vmem:[#allocation17 + $0x4d8] sm:$0xff]  }
 0x7f7   :  { %5680 = vmatmul.mubr.msk.bf16.vlgmr.msra.gmra.mrb[40].mxu1 %vm400_vm4, %v7548_v7  ;;  %5681 = vmatmul.mubr.msk.bf16.vlgmr.msra.gmra.mrb[36].mxu0 %vm400_vm4, %v7548_v7 }
 0x7f8   :  { %3468 = vmatpush1.bf16.msra.mxu1 %v5620_v59  ;;  %3511 = vmatpush1.bf16.msra.mxu0 %v5622_v62  ;;  %v2913_v59 = vld [vmem:[#allocation14 + $0x220] sm:$0xff]  ;;  %v2922_v62 = vld [vmem:[#allocation14 + $0x268] sm:$0xff] }
 0x7f9   :  { %3469 = vmatprep.subr.bf16.mxu1 %v5637_v40  ;;  %3512 = vmatprep.subr.bf16.mxu0 %v5639_v15  ;;  %v5625_v2 = vcombine.high %v2913_v59, %v2921_v60  ;;  %v5627_v3 = vcombine.high %v2914_v61, %v2922_v62  ;;  %v5624_v17 = vcombine.low %v2913_v59, %v2921_v60  ;;  %v2923_v40 = vld [vmem:[#allocation14 + $0x270] sm:$0xff]  ;;  %v2916_v15 = vld [vmem:[#allocation14 + $0x238] sm:$0xff] }
 0x7fa   :  { %3499 = vmatprep.mubr.bf16.mxu1 %v7042_v12  ;;  %3542 = vmatprep.mubr.bf16.mxu0 %v7042_v12  ;;  %v5626_v18 = vcombine.low %v2914_v61, %v2922_v62  ;;  %v5629_v8 = vcombine.high %v2915_v37, %v2923_v40  ;;  %v5628_v53 = vcombine.low %v2915_v37, %v2923_v40  ;;  %v2956_v59 = vld [vmem:[#allocation14 + $0x378] sm:$0xff]  ;;  %v6463_v37 = vld [vmem:[#allocation17 + $0x4a0] sm:$0xff]   ;;  %v6464_v40 = vld [vmem:[#allocation17 + $0x468] sm:$0xff]  }
 0x7fb   :  { %v5630_v54 = vcombine.low %v2916_v15, %v2924_v41 }
 0x7fc   :  { %3470 = vmatpush1.bf16.msra.mxu1 %v5636_v9  ;;  %3513 = vmatpush1.bf16.msra.mxu0 %v5638_v50  ;;  %v5631_v9 = vcombine.high %v2916_v15, %v2924_v41  ;;  %v2931_v50 = vld [vmem:[#allocation14 + $0x2b0] sm:$0xff]  ;;  %v6465_v15 = vld [vmem:[#allocation17 + $0x4e8] sm:$0xff]  }
 0x7fd   :  { %3471 = vmatprep.subr.bf16.mxu1 %v5653_v20  ;;  %3514 = vmatprep.subr.bf16.mxu0 %v5655_v51  ;;  %v2939_v20 = vld [vmem:[#allocation14 + $0x2f0] sm:$0xff]  ;;  %v2932_v51 = vld [vmem:[#allocation14 + $0x2b8] sm:$0xff]  ;;  %v6466_v41 = vld [vmem:[#allocation17 + $0x428] sm:$0xff]  }
 0x7fe   :  { %v5645_v55 = vcombine.high %v2931_v50, %v2939_v20  ;;  %v5644_v60 = vcombine.low %v2931_v50, %v2939_v20  ;;  %v5646_v61 = vcombine.low %v2932_v51, %v2940_v52  ;;  %v6471_v50 = vld [vmem:[#allocation17 + $0x4b0] sm:$0xff]   ;;  %v6472_v20 = vld [vmem:[#allocation17 + $0x478] sm:$0xff]  }
 0x800   :  { %3472 = vmatpush1.bf16.msra.mxu1 %v5652_v56  ;;  %3515 = vmatpush1.bf16.msra.mxu0 %v5654_v57  ;;  %v5647_v56 = vcombine.high %v2932_v51, %v2940_v52  ;;  %v2947_v57 = vld [vmem:[#allocation14 + $0x330] sm:$0xff]  ;;  %v6473_v51 = vld [vmem:[#allocation17 + $0x4f8] sm:$0xff]  }
 0x801   :  { %3473 = vmatprep.subr.bf16.mxu1 %v5669_v47  ;;  %3516 = vmatprep.subr.bf16.mxu0 %v5671_v58  ;;  %v2955_v47 = vld [vmem:[#allocation14 + $0x370] sm:$0xff]  ;;  %v2948_v58 = vld [vmem:[#allocation14 + $0x338] sm:$0xff] }
 0x802   :  { %v5661_v62 = vcombine.high %v2947_v57, %v2955_v47  ;;  %v5660_v10 = vcombine.low %v2947_v57, %v2955_v47  ;;  %v5662_v14 = vcombine.low %v2948_v58, %v2956_v59  ;;  %v6474_v52 = vld [vmem:[#allocation17 + $0x438] sm:$0xff]  }
 0x804   :  { %3474 = vmatpush1.bf16.msra.mxu1 %v5668_v63  ;;  %3517 = vmatpush1.bf16.msra.mxu0 %v5670_v1  ;;  %v5663_v63 = vcombine.high %v2948_v58, %v2956_v59  ;;  %v2963_v1 = vld [vmem:[#allocation14 + $0x3b0] sm:$0xff] }
 0x805   :  { %3553 = vmatprep.subr.bf16.mxu1 %v5625_v2  ;;  %3596 = vmatprep.subr.bf16.mxu0 %v5627_v3  ;;  %v2971_v2 = vld [vmem:[#allocation14 + $0x3f0] sm:$0xff]  ;;  %v2964_v3 = vld [vmem:[#allocation14 + $0x3b8] sm:$0xff] }
 0x806   :  { %v5677_v16 = vcombine.high %v2963_v1, %v2971_v2 }
 0x807   :  { %5682 = vmatmul.mubr.msk.bf16.vlgmr.msra.gmra.mrb[44].mxu1 %vm400_vm4, %v7548_v7  ;;  %5683 = vmatmul.mubr.msk.bf16.vlgmr.msra.gmra.mrb[40].mxu0 %vm400_vm4, %v7548_v7 }
 0x808   :  { %3554 = vmatpush1.bf16.msra.mxu1 %v5624_v17  ;;  %3597 = vmatpush1.bf16.msra.mxu0 %v5626_v18  ;;  %v5679_v17 = vcombine.high %v2964_v3, %v2972_v6  ;;  %v5676_v18 = vcombine.low %v2963_v1, %v2971_v2 }
 0x809   :  { %3555 = vmatprep.subr.bf16.mxu1 %v5641_v19  ;;  %3598 = vmatprep.subr.bf16.mxu0 %v5643_v21  ;;  %v5678_v19 = vcombine.low %v2964_v3, %v2972_v6  ;;  %v6444_v21 = vld [vmem:[#allocation17 + $0x440] sm:$0xff]  }
 0x80a   :  { %3585 = vmatprep.mubr.bf16.mxu1 %v7042_v12  ;;  %3628 = vmatprep.mubr.bf16.mxu0 %v7042_v12 }
 0x80c   :  { %3556 = vmatpush1.bf16.msra.mxu1 %v5640_v29  ;;  %3599 = vmatpush1.bf16.msra.mxu0 %v5642_v11  ;;  %v6450_v29 = vld [vmem:[#allocation17 + $0x408] sm:$0xff]  }
 0x80d   :  { %3557 = vmatprep.subr.bf16.mxu1 %v5657_v13  ;;  %3600 = vmatprep.subr.bf16.mxu0 %v5659_v30  ;;  %v6451_v11 = vld [vmem:[#allocation17 + $0x488] sm:$0xff]   ;;  %v6452_v13 = vld [vmem:[#allocation17 + $0x450] sm:$0xff]  }
 0x80e   :  { %v6453_v30 = vld [vmem:[#allocation17 + $0x4d0] sm:$0xff]  }
 0x810   :  { %3558 = vmatpush1.bf16.msra.mxu1 %v5656_v33  ;;  %3601 = vmatpush1.bf16.msra.mxu0 %v5658_v34  ;;  %v6458_v33 = vld [vmem:[#allocation17 + $0x418] sm:$0xff]   ;;  %v6460_v34 = vld [vmem:[#allocation17 + $0x460] sm:$0xff]  }
 0x811   :  { %3559 = vmatprep.subr.bf16.mxu1 %v5673_v35  ;;  %3602 = vmatprep.subr.bf16.mxu0 %v5675_v36  ;;  %v6461_v35 = vld [vmem:[#allocation17 + $0x4e0] sm:$0xff]  }
 0x812   :  { %v6462_v36 = vld [vmem:[#allocation17 + $0x420] sm:$0xff]  }
 0x814   :  { %3560 = vmatpush1.bf16.msra.mxu1 %v5672_v42  ;;  %3603 = vmatpush1.bf16.msra.mxu0 %v5674_v45  ;;  %v6467_v42 = vld [vmem:[#allocation17 + $0x4a8] sm:$0xff]   ;;  %v6468_v45 = vld [vmem:[#allocation17 + $0x470] sm:$0xff]  }
 0x815   :  { %3639 = vmatprep.subr.bf16.mxu1 %v5629_v8  ;;  %3682 = vmatprep.subr.bf16.mxu0 %v5631_v9  ;;  %v6469_v8 = vld [vmem:[#allocation17 + $0x4f0] sm:$0xff]  }
 0x816   :  { %v6470_v9 = vld [vmem:[#allocation17 + $0x430] sm:$0xff]  }
 0x817   :  { %5684 = vmatmul.mubr.msk.bf16.vlgmr.msra.gmra.mrb[48].mxu1 %vm400_vm4, %v7548_v7  ;;  %5685 = vmatmul.mubr.msk.bf16.vlgmr.msra.gmra.mrb[44].mxu0 %vm400_vm4, %v7548_v7 }
 0x818   :  { %3640 = vmatpush1.bf16.msra.mxu1 %v5628_v53  ;;  %3683 = vmatpush1.bf16.msra.mxu0 %v5630_v54  ;;  %v6475_v53 = vld [vmem:[#allocation17 + $0x4b8] sm:$0xff]   ;;  %v6476_v54 = vld [vmem:[#allocation17 + $0x540] sm:$0xff]  }
 0x819   :  { %3641 = vmatprep.subr.bf16.mxu1 %v5645_v55  ;;  %3684 = vmatprep.subr.bf16.mxu0 %v5647_v56  ;;  %v6477_v55 = vld [vmem:[#allocation17 + $0x5c0] sm:$0xff]   ;;  %v2974_v56 = vld [vmem:[#allocation16 + $0x10] sm:$0xff] }
 0x81a   :  { %3671 = vmatprep.mubr.bf16.mxu1 %v7042_v12  ;;  %3714 = vmatprep.mubr.bf16.mxu0 %v7042_v12  ;;  %v6447_v12 = vld [vmem:[#allocation17 + $0x480] sm:$0xff]   ;;  %v2981_v57 = vrot.slane %v2974_v56, %v7451_v46  ;;  %v2989_v47 = vrot.slane %v2974_v56, %v7453_v28  ;;  %v2985_v58 = vrot.slane %v2974_v56, %v7455_v48 }
 0x81b   :  { %v2993_v59 = vrot.slane %v2974_v56, %v7457_v49 }
 0x81c   :  { %3642 = vmatpush1.bf16.msra.mxu1 %v5644_v60  ;;  %3685 = vmatpush1.bf16.msra.mxu0 %v5646_v61 }
 0x81d   :  { %3643 = vmatprep.subr.bf16.mxu1 %v5661_v62  ;;  %3686 = vmatprep.subr.bf16.mxu0 %v5663_v63 }
 0x820   :  { %3644 = vmatpush1.bf16.msra.mxu1 %v5660_v10  ;;  %3687 = vmatpush1.bf16.msra.mxu0 %v5662_v14 }
 0x821   :  { %3645 = vmatprep.subr.bf16.mxu1 %v5677_v16  ;;  %3688 = vmatprep.subr.bf16.mxu0 %v5679_v17 }
 0x824   :  { %3646 = vmatpush1.bf16.msra.mxu1 %v5676_v18  ;;  %3689 = vmatpush1.bf16.msra.mxu0 %v5678_v19 }
 0x825   :  { %6021 = vmatprep.subr.bf16.mxu1 %v6444_v21  ;;  %6043 = vmatprep.subr.bf16.mxu0 %v6445_v4 }
 0x827   :  { %5686 = vmatmul.mubr.msk.bf16.vlgmr.msra.gmra.mrb[52].mxu1 %vm400_vm4, %v7548_v7  ;;  %5687 = vmatmul.mubr.msk.bf16.vlgmr.msra.gmra.mrb[48].mxu0 %vm400_vm4, %v7548_v7  ;;  %v6459_v7 = vld [vmem:[#allocation17 + $0x498] sm:$0xff]  }
 0x828   :  { %6022 = vmatpush3.bf16.msra.mxu1 %v6446_v25  ;;  %6044 = vmatpush3.bf16.msra.mxu0 %v6447_v12 }
 0x829   :  { %6023 = vmatprep.subr.bf16.mxu1 %v6448_v5  ;;  %6045 = vmatprep.subr.bf16.mxu0 %v6449_v22 }
 0x82c   :  { %6024 = vmatpush3.bf16.msra.mxu1 %v6450_v29  ;;  %6046 = vmatpush3.bf16.msra.mxu0 %v6451_v11 }
 0x82d   :  { %6025 = vmatprep.subr.bf16.mxu1 %v6452_v13  ;;  %6047 = vmatprep.subr.bf16.mxu0 %v6453_v30 }
 0x830   :  { %6026 = vmatpush3.bf16.msra.mxu1 %v6454_v31  ;;  %6048 = vmatpush3.bf16.msra.mxu0 %v6455_v32 }
 0x831   :  { %6027 = vmatprep.subr.bf16.mxu1 %v6456_v43  ;;  %6049 = vmatprep.subr.bf16.mxu0 %v6457_v44 }
 0x834   :  { %6028 = vmatpush3.bf16.msra.mxu1 %v6458_v33  ;;  %6050 = vmatpush3.bf16.msra.mxu0 %v6459_v7  ;;  %v6478_v33 = vld [vmem:[#allocation17 + $0x500] sm:$0xff]  }
 0x835   :  { %6029 = vmatprep.subr.bf16.mxu1 %v6460_v34  ;;  %6051 = vmatprep.subr.bf16.mxu0 %v6461_v35  ;;  %v6479_v7 = vld [vmem:[#allocation17 + $0x580] sm:$0xff]   ;;  %v6480_v34 = vld [vmem:[#allocation17 + $0x548] sm:$0xff]  }
 0x836   :  { %v6481_v35 = vld [vmem:[#allocation17 + $0x5c8] sm:$0xff]  }
 0x838   :  { %6030 = vmatpush3.bf16.msra.mxu1 %v6462_v36  ;;  %6052 = vmatpush3.bf16.msra.mxu0 %v6463_v37  ;;  %v6482_v36 = vld [vmem:[#allocation17 + $0x508] sm:$0xff]  }
 0x839   :  { %6031 = vmatprep.subr.bf16.mxu1 %v6464_v40  ;;  %6053 = vmatprep.subr.bf16.mxu0 %v6465_v15  ;;  %v6483_v37 = vld [vmem:[#allocation17 + $0x588] sm:$0xff]   ;;  %v2997_v40 = vrot.slane %v2974_v56, %v7463_v23  ;;  %v3005_v15 = vrot.slane %v2974_v56, %v7465_v24 }
 0x83c   :  { %6032 = vmatpush3.bf16.msra.mxu1 %v6466_v41  ;;  %6054 = vmatpush3.bf16.msra.mxu0 %v6467_v42  ;;  %v6484_v41 = vld [vmem:[#allocation17 + $0x550] sm:$0xff]  }
 0x83d   :  { %6033 = vmatprep.subr.bf16.mxu1 %v6468_v45  ;;  %6055 = vmatprep.subr.bf16.mxu0 %v6469_v8  ;;  %v6485_v42 = vld [vmem:[#allocation17 + $0x5d0] sm:$0xff]   ;;  %v3001_v45 = vrot.slane %v2974_v56, %v7467_v26  ;;  %v3009_v8 = vrot.slane %v2974_v56, %v7469_v27 }
 0x840   :  { %6034 = vmatpush3.bf16.msra.mxu1 %v6470_v9  ;;  %6056 = vmatpush3.bf16.msra.mxu0 %v6471_v50 }
 0x841   :  { %6035 = vmatprep.subr.bf16.mxu1 %v6472_v20  ;;  %6057 = vmatprep.subr.bf16.mxu0 %v6473_v51  ;;  %v6486_v20 = vld [vmem:[#allocation17 + $0x510] sm:$0xff]  }
 0x842   :  { %v6487_v51 = vld [vmem:[#allocation17 + $0x590] sm:$0xff]  }
 0x844   :  { %6036 = vmatpush3.bf16.msra.mxu1 %v6474_v52  ;;  %6058 = vmatpush3.bf16.msra.mxu0 %v6475_v53 }
 0x845   :  { %6065 = vmatprep.subr.bf16.mxu1 %v6476_v54  ;;  %6087 = vmatprep.subr.bf16.mxu0 %v6477_v55 }
 0x8ca   :  { %v3415_v60 = vpop.f32.mrb[40].mxu1  ;;  %v3458_v61 = vpop.f32.mrb[36].mxu0 }
 0x8cb   :  { %v3416_v62 = vadd.f32 %v3415_v60, %v2981_v57  ;;  %v3459_v63 = vadd.f32 %v3458_v61, %v2989_v47  ;;  %v3417_v1 = vpop.f32.mrb[41].mxu1  ;;  %v3460_v2 = vpop.f32.mrb[37].mxu0 }
 0x8cc   :  { %v3418_v3 = vadd.f32 %v3417_v1, %v2985_v58  ;;  %v3461_v6 = vadd.f32 %v3460_v2, %v2993_v59  ;;  %v3419_v10 = vpop.f32.mrb[42].mxu1  ;;  %v3462_v14 = vpop.f32.mrb[38].mxu0 }
 0x8cd   :  { %v3420_v16 = vadd.f32 %v3419_v10, %v2981_v57  ;;  %v3463_v17 = vadd.f32 %v3462_v14, %v2989_v47  ;;  %v3421_v18 = vpop.f32.mrb[43].mxu1  ;;  %v3464_v19 = vpop.f32.mrb[39].mxu0  ;;  %v3725_v25 = vmax.f32 %v3416_v62, 0.0  ;;  %v3727_v12 = vmax.f32 %v3459_v63, 0.0  ;;  %v6488_v57 = vld [vmem:[#allocation17 + $0x558] sm:$0xff]  }
 0x8ce   :  { %v3422_v21 = vadd.f32 %v3421_v18, %v2985_v58  ;;  %v3465_v4 = vadd.f32 %v3464_v19, %v2993_v59  ;;  %v3726_v29 = vmax.f32 %v3418_v3, 0.0  ;;  %v3728_v11 = vmax.f32 %v3461_v6, 0.0  ;;  %v6489_v47 = vld [vmem:[#allocation17 + $0x5d8] sm:$0xff]   ;;  %v6492_v19 = vld [vmem:[#allocation17 + $0x560] sm:$0xff]  }
 0x8cf   :  { %v3741_v5 = vmax.f32 %v3420_v16, 0.0  ;;  %v3743_v22 = vmax.f32 %v3463_v17, 0.0  ;;  %v6490_v6 = vld [vmem:[#allocation17 + $0x518] sm:$0xff]  }
 0x8d0   :  { %v3742_v13 = vmax.f32 %v3422_v21, 0.0  ;;  %v3744_v30 = vmax.f32 %v3465_v4, 0.0  ;;  %v6491_v10 = vld [vmem:[#allocation17 + $0x598] sm:$0xff]   ;;  %v6493_v21 = vld [vmem:[#allocation17 + $0x5e0] sm:$0xff]  }
 0x8d1   :  { %v3757_v31 = vpack.c.bf16 %v3741_v5, %v3725_v25  ;;  %v3759_v32 = vpack.c.bf16 %v3743_v22, %v3727_v12 }
 0x8d2   :  { %v3758_v43 = vpack.c.bf16 %v3742_v13, %v3726_v29  ;;  %v3760_v44 = vpack.c.bf16 %v3744_v30, %v3728_v11  ;;  %v6494_v30 = vld [vmem:[#allocation17 + $0x520] sm:$0xff]  }
 0x8d4   :  { %4838 = vmatprep.mubr.bf16.mxu1 %v3758_v43  ;;  %4879 = vmatprep.mubr.bf16.mxu0 %v3760_v44  ;;  %v6497_v43 = vld [vmem:[#allocation17 + $0x5e8] sm:$0xff]   ;;  %v7584_v44 = vld [vmem:[#allocation16 + $0x18] sm:$0xff] }
 0x8d5   :  { %4839 = vmatmul.mubr.bf16.vlgmr.msra.gmra.mrb[56].mxu1 %v3757_v31  ;;  %4880 = vmatmul.mubr.bf16.vlgmr.msra.gmra.mrb[52].mxu0 %v3759_v32  ;;  %v6495_v31 = vld [vmem:[#allocation17 + $0x5a0] sm:$0xff]   ;;  %v6496_v32 = vld [vmem:[#allocation17 + $0x568] sm:$0xff]  }
 0x8d6   :  { %6066 = vmatpush3.bf16.msra.mxu1 %v6478_v33  ;;  %6088 = vmatpush3.bf16.msra.mxu0 %v6479_v7  ;;  %v6498_v33 = vld [vmem:[#allocation17 + $0x528] sm:$0xff]  }
 0x8d7   :  { %6067 = vmatprep.subr.bf16.mxu1 %v6480_v34  ;;  %6089 = vmatprep.subr.bf16.mxu0 %v6481_v35  ;;  %v6499_v7 = vld [vmem:[#allocation17 + $0x5a8] sm:$0xff]   ;;  %v3013_v34 = vrot.slane %v7584_v44, %v7451_v46  ;;  %v3021_v35 = vrot.slane %v7584_v44, %v7453_v28  ;;  %v6504_v28 = vld [vmem:[#allocation17 + $0x578] sm:$0xff]  }
 0x8da   :  { %v3501_v9 = vpop.f32.mrb[44].mxu1  ;;  %v3544_v50 = vpop.f32.mrb[40].mxu0  ;;  %6068 = vmatpush3.bf16.msra.mxu1 %v6482_v36  ;;  %6090 = vmatpush3.bf16.msra.mxu0 %v6483_v37  ;;  %v6500_v36 = vld [vmem:[#allocation17 + $0x570] sm:$0xff]  }
 0x8db   :  { %v3502_v52 = vadd.f32 %v3501_v9, %v2997_v40  ;;  %v3545_v53 = vadd.f32 %v3544_v50, %v3005_v15  ;;  %v3503_v54 = vpop.f32.mrb[45].mxu1  ;;  %v3546_v55 = vpop.f32.mrb[41].mxu0  ;;  %6069 = vmatprep.subr.bf16.mxu1 %v6484_v41  ;;  %6091 = vmatprep.subr.bf16.mxu0 %v6485_v42  ;;  %v6501_v37 = vld [vmem:[#allocation17 + $0x5f0] sm:$0xff]  }
 0x8dc   :  { %v3504_v58 = vadd.f32 %v3503_v54, %v3001_v45  ;;  %v3547_v59 = vadd.f32 %v3546_v55, %v3009_v8  ;;  %v3505_v60 = vpop.f32.mrb[46].mxu1  ;;  %v3548_v61 = vpop.f32.mrb[42].mxu0 }
 0x8dd   :  { %v3506_v62 = vadd.f32 %v3505_v60, %v2997_v40  ;;  %v3549_v56 = vadd.f32 %v3548_v61, %v3005_v15  ;;  %v3507_v63 = vpop.f32.mrb[47].mxu1  ;;  %v3550_v1 = vpop.f32.mrb[43].mxu0  ;;  %v3729_v14 = vmax.f32 %v3502_v52, 0.0  ;;  %v3731_v16 = vmax.f32 %v3545_v53, 0.0  ;;  %v6506_v60 = vld [vmem:[#allocation17 + $0x538] sm:$0xff]  }
 0x8de   :  { %v3508_v2 = vadd.f32 %v3507_v63, %v3001_v45  ;;  %v3551_v3 = vadd.f32 %v3550_v1, %v3009_v8  ;;  %6070 = vmatpush3.bf16.msra.mxu1 %v6486_v20  ;;  %6092 = vmatpush3.bf16.msra.mxu0 %v6487_v51  ;;  %v3730_v4 = vmax.f32 %v3504_v58, 0.0  ;;  %v3732_v25 = vmax.f32 %v3547_v59, 0.0  ;;  %v6502_v45 = vld [vmem:[#allocation17 + $0x530] sm:$0xff]   ;;  %v6505_v51 = vld [vmem:[#allocation17 + $0x5f8] sm:$0xff]  }
 0x8df   :  { %v3745_v17 = vmax.f32 %v3506_v62, 0.0  ;;  %v3747_v18 = vmax.f32 %v3549_v56, 0.0  ;;  %6071 = vmatprep.subr.bf16.mxu1 %v6488_v57  ;;  %6093 = vmatprep.subr.bf16.mxu0 %v6489_v47  ;;  %v3017_v40 = vrot.slane %v7584_v44, %v7455_v48  ;;  %v3025_v15 = vrot.slane %v7584_v44, %v7457_v49  ;;  %v6503_v8 = vld [vmem:[#allocation17 + $0x5b0] sm:$0xff]   ;;  %v6507_v61 = vld [vmem:[#allocation17 + $0x5b8] sm:$0xff]  }
 0x8e0   :  { %v3746_v12 = vmax.f32 %v3508_v2, 0.0  ;;  %v3748_v5 = vmax.f32 %v3551_v3, 0.0  ;;  %v6508_v2 = vld [vmem:[#allocation17 + $0x640] sm:$0xff]  }
 0x8e1   :  { %v7580_v22 = vpack.c.bf16 %v3745_v17, %v3729_v14  ;;  %v7582_v29 = vpack.c.bf16 %v3747_v18, %v3731_v16  ;;  %v6509_v3 = vld [vmem:[#allocation17 + $0x6c0] sm:$0xff]  }
 0x8e2   :  { %v3762_v11 = vpack.c.bf16 %v3746_v12, %v3730_v4  ;;  %v3764_v13 = vpack.c.bf16 %v3748_v5, %v3732_v25  ;;  %6072 = vmatpush3.bf16.msra.mxu1 %v6490_v6  ;;  %6094 = vmatpush3.bf16.msra.mxu0 %v6491_v10  ;;  %v6510_v4 = vld [vmem:[#allocation17 + $0x600] sm:$0xff]   ;;  %v6512_v12 = vld [vmem:[#allocation17 + $0x648] sm:$0xff]  }
 0x8e3   :  { %6073 = vmatprep.subr.bf16.mxu1 %v6492_v19  ;;  %6095 = vmatprep.subr.bf16.mxu0 %v6493_v21  ;;  %v6511_v25 = vld [vmem:[#allocation17 + $0x680] sm:$0xff]   ;;  %v6513_v5 = vld [vmem:[#allocation17 + $0x6c8] sm:$0xff]  }
 0x8e4   :  { %4920 = vmatprep.mubr.bf16.mxu1 %v3762_v11  ;;  %4961 = vmatprep.mubr.bf16.mxu0 %v3764_v13  ;;  %v6514_v11 = vld [vmem:[#allocation17 + $0x608] sm:$0xff]   ;;  %v3029_v13 = vrot.slane %v7584_v44, %v7463_v23 }
 0x8e6   :  { %6074 = vmatpush3.bf16.msra.mxu1 %v6494_v30  ;;  %6096 = vmatpush3.bf16.msra.mxu0 %v6495_v31  ;;  %v3037_v30 = vrot.slane %v7584_v44, %v7465_v24  ;;  %v6515_v31 = vld [vmem:[#allocation17 + $0x688] sm:$0xff]  }
 0x8e7   :  { %6075 = vmatprep.subr.bf16.mxu1 %v6496_v32  ;;  %6097 = vmatprep.subr.bf16.mxu0 %v6497_v43  ;;  %v6516_v32 = vld [vmem:[#allocation17 + $0x650] sm:$0xff]  }
 0x8e8   :  { %v6517_v43 = vld [vmem:[#allocation17 + $0x6d0] sm:$0xff]  }
 0x8ea   :  { %v3587_v41 = vpop.f32.mrb[48].mxu1  ;;  %v3630_v42 = vpop.f32.mrb[44].mxu0  ;;  %6076 = vmatpush3.bf16.msra.mxu1 %v6498_v33  ;;  %6098 = vmatpush3.bf16.msra.mxu0 %v6499_v7 }
 0x8eb   :  { %v3588_v9 = vadd.f32 %v3587_v41, %v3013_v34  ;;  %v3631_v50 = vadd.f32 %v3630_v42, %v3021_v35  ;;  %v3589_v46 = vpop.f32.mrb[49].mxu1  ;;  %v3632_v20 = vpop.f32.mrb[45].mxu0  ;;  %6077 = vmatprep.subr.bf16.mxu1 %v6500_v36  ;;  %6099 = vmatprep.subr.bf16.mxu0 %v6501_v37  ;;  %v6519_v37 = vld [vmem:[#allocation17 + $0x690] sm:$0xff]  }
 0x8ec   :  { %v3590_v52 = vadd.f32 %v3589_v46, %v3017_v40  ;;  %v3633_v53 = vadd.f32 %v3632_v20, %v3025_v15  ;;  %v3591_v48 = vpop.f32.mrb[50].mxu1  ;;  %v3634_v54 = vpop.f32.mrb[46].mxu0  ;;  %v6522_v20 = vld [vmem:[#allocation17 + $0x618] sm:$0xff]  }
 0x8ed   :  { %v3592_v55 = vadd.f32 %v3591_v48, %v3013_v34  ;;  %v3635_v49 = vadd.f32 %v3634_v54, %v3021_v35  ;;  %v3593_v57 = vpop.f32.mrb[51].mxu1  ;;  %v3636_v47 = vpop.f32.mrb[47].mxu0  ;;  %v3733_v62 = vmax.f32 %v3588_v9, 0.0  ;;  %v3735_v56 = vmax.f32 %v3631_v50, 0.0  ;;  %v6518_v34 = vld [vmem:[#allocation17 + $0x610] sm:$0xff]   ;;  %v6523_v48 = vld [vmem:[#allocation17 + $0x698] sm:$0xff]  }
 0x8ee   :  { %v3594_v58 = vadd.f32 %v3593_v57, %v3017_v40  ;;  %v3637_v59 = vadd.f32 %v3636_v47, %v3025_v15  ;;  %6078 = vmatpush3.bf16.msra.mxu1 %v6502_v45  ;;  %6100 = vmatpush3.bf16.msra.mxu0 %v6503_v8  ;;  %v3734_v6 = vmax.f32 %v3590_v52, 0.0  ;;  %v3736_v10 = vmax.f32 %v3633_v53, 0.0  ;;  %v6520_v40 = vld [vmem:[#allocation17 + $0x658] sm:$0xff]   ;;  %v6524_v54 = vld [vmem:[#allocation17 + $0x660] sm:$0xff]  }
 0x8ef   :  { %v3749_v63 = vmax.f32 %v3592_v55, 0.0  ;;  %v3751_v1 = vmax.f32 %v3635_v49, 0.0  ;;  %6079 = vmatprep.subr.bf16.mxu1 %v6504_v28  ;;  %6101 = vmatprep.subr.bf16.mxu0 %v6505_v51  ;;  %v6521_v45 = vld [vmem:[#allocation17 + $0x6d8] sm:$0xff]  }
 0x8f0   :  { %v3750_v14 = vmax.f32 %v3594_v58, 0.0  ;;  %v3752_v16 = vmax.f32 %v3637_v59, 0.0  ;;  %v6525_v58 = vld [vmem:[#allocation17 + $0x6e0] sm:$0xff]  }
 0x8f1   :  { %v7594_v17 = vpack.c.bf16 %v3749_v63, %v3733_v62  ;;  %v7596_v18 = vpack.c.bf16 %v3751_v1, %v3735_v56  ;;  %v6526_v56 = vld [vmem:[#allocation17 + $0x620] sm:$0xff]   ;;  %v6528_v1 = vld [vmem:[#allocation17 + $0x668] sm:$0xff]  }
 0x8f2   :  { %v3766_v19 = vpack.c.bf16 %v3750_v14, %v3734_v6  ;;  %v3768_v21 = vpack.c.bf16 %v3752_v16, %v3736_v10  ;;  %6080 = vmatpush3.bf16.msra.mxu1 %v6506_v60  ;;  %6102 = vmatpush3.bf16.msra.mxu0 %v6507_v61  ;;  %v6527_v63 = vld [vmem:[#allocation17 + $0x6a0] sm:$0xff]   ;;  %v6531_v6 = vld [vmem:[#allocation17 + $0x6a8] sm:$0xff]   ;;  %v6532_v10 = vld [vmem:[#allocation17 + $0x670] sm:$0xff]  }
 0x8f3   :  { %6109 = vmatprep.subr.bf16.mxu1 %v6508_v2  ;;  %6131 = vmatprep.subr.bf16.mxu0 %v6509_v3  ;;  %v6529_v2 = vld [vmem:[#allocation17 + $0x6e8] sm:$0xff]   ;;  %v6533_v14 = vld [vmem:[#allocation17 + $0x6f0] sm:$0xff]  }
 0x8f4   :  { %v6530_v3 = vld [vmem:[#allocation17 + $0x628] sm:$0xff]   ;;  %v6534_v16 = vld [vmem:[#allocation17 + $0x630] sm:$0xff]  }
 0x8f5   :  { %4921 = vmatmul.mubr.bf16.vlgmr.msra.gmra.mrb[60].mxu1 %v7580_v22  ;;  %4962 = vmatmul.mubr.bf16.vlgmr.msra.gmra.mrb[56].mxu0 %v7582_v29  ;;  %v3033_v22 = vrot.slane %v7584_v44, %v7467_v26  ;;  %v3041_v29 = vrot.slane %v7584_v44, %v7469_v27 }
 0x8f6   :  { %6110 = vmatpush3.bf16.msra.mxu1 %v6510_v4  ;;  %5002 = vmatprep.mubr.bf16.mxu1 %v3766_v19  ;;  %v6535_v19 = vld [vmem:[#allocation17 + $0x6b0] sm:$0xff]   ;;  %v6537_v4 = vld [vmem:[#allocation17 + $0x6f8] sm:$0xff]  }
 0x8f7   :  { %6132 = vmatpush3.bf16.msra.mxu0 %v6511_v25  ;;  %5043 = vmatprep.mubr.bf16.mxu0 %v3768_v21  ;;  %v6536_v21 = vld [vmem:[#allocation17 + $0x678] sm:$0xff]  }
 0x8f8   :  { %6111 = vmatprep.subr.bf16.mxu1 %v6512_v12  ;;  %6133 = vmatprep.subr.bf16.mxu0 %v6513_v5  ;;  %v6538_v25 = vld [vmem:[#allocation17 + $0x638] sm:$0xff]   ;;  %v6540_v5 = vld [vmem:[#allocation17 + $0x740] sm:$0xff]  }
 0x8f9   :  { %v6539_v12 = vld [vmem:[#allocation17 + $0x6b8] sm:$0xff]  }
 0x8fa   :  { %v3673_v33 = vpop.f32.mrb[52].mxu1  ;;  %v3716_v7 = vpop.f32.mrb[48].mxu0  ;;  %6112 = vmatpush3.bf16.msra.mxu1 %v6514_v11  ;;  %v6541_v11 = vld [vmem:[#allocation17 + $0x7c0] sm:$0xff]  }
 0x8fb   :  { %v3674_v35 = vadd.f32 %v3673_v33, %v3029_v13  ;;  %v3717_v23 = vadd.f32 %v3716_v7, %v3037_v30  ;;  %6134 = vmatpush3.bf16.msra.mxu0 %v6515_v31  ;;  %v3675_v36 = vpop.f32.mrb[53].mxu1  ;;  %v3718_v24 = vpop.f32.mrb[49].mxu0  ;;  %6113 = vmatprep.subr.bf16.mxu1 %v6516_v32  ;;  %v6544_v31 = vld [vmem:[#allocation17 + $0x748] sm:$0xff]   ;;  %v6549_v33 = vld [vmem:[#allocation17 + $0x7d0] sm:$0xff]  }
 0x8fc   :  { %v3676_v15 = vadd.f32 %v3675_v36, %v3033_v22  ;;  %v3719_v41 = vadd.f32 %v3718_v24, %v3041_v29  ;;  %v3677_v42 = vpop.f32.mrb[54].mxu1  ;;  %v3720_v26 = vpop.f32.mrb[50].mxu0  ;;  %6135 = vmatprep.subr.bf16.mxu0 %v6517_v43  ;;  %v6545_v32 = vld [vmem:[#allocation17 + $0x7c8] sm:$0xff]   ;;  %v6548_v43 = vld [vmem:[#allocation17 + $0x750] sm:$0xff]   ;;  %v6556_v36 = vld [vmem:[#allocation17 + $0x760] sm:$0xff]  }
 0x8fd   :  { %v3678_v27 = vadd.f32 %v3677_v42, %v3029_v13  ;;  %v3721_v44 = vadd.f32 %v3720_v26, %v3037_v30  ;;  %v3679_v8 = vpop.f32.mrb[55].mxu1  ;;  %v3722_v9 = vpop.f32.mrb[51].mxu0  ;;  %v3737_v28 = vmax.f32 %v3674_v35, 0.0  ;;  %v3739_v51 = vmax.f32 %v3717_v23, 0.0  ;;  %v6542_v13 = vld [vmem:[#allocation17 + $0x700] sm:$0xff]   ;;  %v6550_v7 = vld [vmem:[#allocation17 + $0x710] sm:$0xff]  }
 0x8fe   :  { %v3680_v50 = vadd.f32 %v3679_v8, %v3033_v22  ;;  %v3723_v46 = vadd.f32 %v3722_v9, %v3041_v29  ;;  %6114 = vmatpush3.bf16.msra.mxu1 %v6518_v34  ;;  %v3738_v55 = vmax.f32 %v3676_v15, 0.0  ;;  %v3740_v49 = vmax.f32 %v3719_v41, 0.0  ;;  %v6543_v30 = vld [vmem:[#allocation17 + $0x780] sm:$0xff]   ;;  %v6546_v22 = vld [vmem:[#allocation17 + $0x708] sm:$0xff]   ;;  %v6551_v34 = vld [vmem:[#allocation17 + $0x790] sm:$0xff]  }
 0x8ff   :  { %v3753_v52 = vmax.f32 %v3678_v27, 0.0  ;;  %v3755_v53 = vmax.f32 %v3721_v44, 0.0  ;;  %6136 = vmatpush3.bf16.msra.mxu0 %v6519_v37  ;;  %6115 = vmatprep.subr.bf16.mxu1 %v6520_v40  ;;  %v6547_v29 = vld [vmem:[#allocation17 + $0x788] sm:$0xff]   ;;  %v6552_v35 = vld [vmem:[#allocation17 + $0x758] sm:$0xff]   ;;  %v6557_v24 = vld [vmem:[#allocation17 + $0x7e0] sm:$0xff]  }
 0x900   :  { %v3754_v57 = vmax.f32 %v3680_v50, 0.0  ;;  %v3756_v47 = vmax.f32 %v3723_v46, 0.0  ;;  %6137 = vmatprep.subr.bf16.mxu0 %v6521_v45  ;;  %v6555_v23 = vld [vmem:[#allocation17 + $0x798] sm:$0xff]   ;;  %v6558_v37 = vld [vmem:[#allocation17 + $0x720] sm:$0xff]   ;;  %v6560_v15 = vld [vmem:[#allocation17 + $0x768] sm:$0xff]  }
 0x901   :  { %v7608_v59 = vpack.c.bf16 %v3753_v52, %v3737_v28  ;;  %v7610_v60 = vpack.c.bf16 %v3755_v53, %v3739_v51  ;;  %v6559_v40 = vld [vmem:[#allocation17 + $0x7a0] sm:$0xff]   ;;  %v6561_v41 = vld [vmem:[#allocation17 + $0x7e8] sm:$0xff]   ;;  %v6564_v45 = vld [vmem:[#allocation17 + $0x770] sm:$0xff]  }
 0x902   :  { %v3770_v61 = vpack.c.bf16 %v3754_v57, %v3738_v55  ;;  %v3772_v62 = vpack.c.bf16 %v3756_v47, %v3740_v49  ;;  %6116 = vmatpush3.bf16.msra.mxu1 %v6522_v20  ;;  %v6562_v42 = vld [vmem:[#allocation17 + $0x728] sm:$0xff]   ;;  %v6565_v27 = vld [vmem:[#allocation17 + $0x7f0] sm:$0xff]   ;;  %v6568_v9 = vld [vmem:[#allocation17 + $0x778] sm:$0xff]  }
 0x903   :  { %6138 = vmatpush3.bf16.msra.mxu0 %v6523_v48  ;;  %6117 = vmatprep.subr.bf16.mxu1 %v6524_v54  ;;  %v6563_v26 = vld [vmem:[#allocation17 + $0x7a8] sm:$0xff]   ;;  %v6566_v44 = vld [vmem:[#allocation17 + $0x730] sm:$0xff]   ;;  %v6569_v50 = vld [vmem:[#allocation17 + $0x7f8] sm:$0xff]  }
 0x904   :  { %6139 = vmatprep.subr.bf16.mxu0 %v6525_v58  ;;  %v6567_v8 = vld [vmem:[#allocation17 + $0x7b0] sm:$0xff]   ;;  %v6570_v46 = vld [vmem:[#allocation17 + $0x738] sm:$0xff]   ;;  %v5688_v52 = vld [vmem:[#allocation19 + $0x1] ss:$0 sm:$0xff] }
 0x905   :  { %v6571_v20 = vld [vmem:[#allocation17 + $0x7b8] sm:$0xff]  }
 0x906   :  { %6118 = vmatpush3.bf16.msra.mxu1 %v6526_v56 }
 0x907   :  { %6140 = vmatpush3.bf16.msra.mxu0 %v6527_v63  ;;  %6119 = vmatprep.subr.bf16.mxu1 %v6528_v1 }
 0x908   :  { %6141 = vmatprep.subr.bf16.mxu0 %v6529_v2 }
 0x90a   :  { %6120 = vmatpush3.bf16.msra.mxu1 %v6530_v3 }
 0x90b   :  { %6142 = vmatpush3.bf16.msra.mxu0 %v6531_v6  ;;  %6121 = vmatprep.subr.bf16.mxu1 %v6532_v10 }
 0x90c   :  { %6143 = vmatprep.subr.bf16.mxu0 %v6533_v14 }
 0x90e   :  { %6122 = vmatpush3.bf16.msra.mxu1 %v6534_v16 }
 0x90f   :  { %6144 = vmatpush3.bf16.msra.mxu0 %v6535_v19  ;;  %6123 = vmatprep.subr.bf16.mxu1 %v6536_v21 }
 0x910   :  { %6145 = vmatprep.subr.bf16.mxu0 %v6537_v4 }
 0x912   :  { %6124 = vmatpush3.bf16.msra.mxu1 %v6538_v25 }
 0x913   :  { %6146 = vmatpush3.bf16.msra.mxu0 %v6539_v12  ;;  %6153 = vmatprep.subr.bf16.mxu1 %v6540_v5 }
 0x914   :  { %6175 = vmatprep.subr.bf16.mxu0 %v6541_v11 }
 0x915   :  { %5003 = vmatmul.mubr.bf16.vlgmr.msra.gmra.mrb[64].mxu1 %v7594_v17  ;;  %v6553_v17 = vld [vmem:[#allocation17 + $0x7d8] sm:$0xff]  }
 0x916   :  { %5044 = vmatmul.mubr.bf16.vlgmr.msra.gmra.mrb[60].mxu0 %v7596_v18  ;;  %6154 = vmatpush3.bf16.msra.mxu1 %v6542_v13  ;;  %v6554_v18 = vld [vmem:[#allocation17 + $0x718] sm:$0xff]  }
 0x917   :  { %5084 = vmatprep.mubr.bf16.mxu1 %v3770_v61  ;;  %6176 = vmatpush3.bf16.msra.mxu0 %v6543_v30 }
 0x918   :  { %5125 = vmatprep.mubr.bf16.mxu0 %v3772_v62  ;;  %6155 = vmatprep.subr.bf16.mxu1 %v6544_v31 }
 0x919   :  { %6177 = vmatprep.subr.bf16.mxu0 %v6545_v32 }
 0x91a   :  { %6156 = vmatpush3.bf16.msra.mxu1 %v6546_v22 }
 0x91b   :  { %6178 = vmatpush3.bf16.msra.mxu0 %v6547_v29  ;;  %6157 = vmatprep.subr.bf16.mxu1 %v6548_v43 }
 0x91c   :  { %6179 = vmatprep.subr.bf16.mxu0 %v6549_v33 }
 0x91e   :  { %6158 = vmatpush3.bf16.msra.mxu1 %v6550_v7 }
 0x91f   :  { %6180 = vmatpush3.bf16.msra.mxu0 %v6551_v34  ;;  %6159 = vmatprep.subr.bf16.mxu1 %v6552_v35 }
 0x920   :  { %6181 = vmatprep.subr.bf16.mxu0 %v6553_v17 }
 0x922   :  { %6160 = vmatpush3.bf16.msra.mxu1 %v6554_v18 }
 0x923   :  { %6182 = vmatpush3.bf16.msra.mxu0 %v6555_v23  ;;  %6161 = vmatprep.subr.bf16.mxu1 %v6556_v36 }
 0x924   :  { %6183 = vmatprep.subr.bf16.mxu0 %v6557_v24 }
 0x926   :  { %6162 = vmatpush3.bf16.msra.mxu1 %v6558_v37 }
 0x927   :  { %6184 = vmatpush3.bf16.msra.mxu0 %v6559_v40  ;;  %6163 = vmatprep.subr.bf16.mxu1 %v6560_v15 }
 0x928   :  { %6185 = vmatprep.subr.bf16.mxu0 %v6561_v41 }
 0x92a   :  { %6164 = vmatpush3.bf16.msra.mxu1 %v6562_v42 }
 0x92b   :  { %6186 = vmatpush3.bf16.msra.mxu0 %v6563_v26  ;;  %6165 = vmatprep.subr.bf16.mxu1 %v6564_v45 }
 0x92c   :  { %6187 = vmatprep.subr.bf16.mxu0 %v6565_v27 }
 0x92e   :  { %6166 = vmatpush3.bf16.msra.mxu1 %v6566_v44 }
 0x92f   :  { %6188 = vmatpush3.bf16.msra.mxu0 %v6567_v8  ;;  %6167 = vmatprep.subr.bf16.mxu1 %v6568_v9 }
 0x930   :  { %6189 = vmatprep.subr.bf16.mxu0 %v6569_v50 }
 0x932   :  { %6168 = vmatpush3.bf16.msra.mxu1 %v6570_v46 }
 0x933   :  { %6190 = vmatpush3.bf16.msra.mxu0 %v6571_v20  ;;  %6243 = vmatprep.subr.bf16.mxu1 %v7039_v0 }
 0x934   :  { %6255 = vmatprep.subr.bf16.mxu0 %v7039_v0 }
 0x935   :  { %5085 = vmatmul.mubr.bf16.vlgmr.msra.gmra.mrb[68].mxu1 %v7608_v59 }
 0x936   :  { %5126 = vmatmul.mubr.bf16.vlgmr.msra.gmra.mrb[64].mxu0 %v7610_v60  ;;  %6251 = vmatprep.mubr.msk.bf16.mxu1 %vm7040_vm1, %v7039_v0 }
 0x937   :  { %6271 = vmatprep.mubr.msk.bf16.mxu0 %vm7040_vm1, %v7039_v0 }
 0x9a8   :  { %v6037_v28 = vpop.f32.mrb[56].mxu1  ;;  %v6059_v51 = vpop.f32.mrb[52].mxu0 }
 0x9a9   :  { %v6038_v53 = vpop.f32.mrb[57].mxu1  ;;  %v6060_v48 = vpop.f32.mrb[53].mxu0 }
 0x9aa   :  { %v6039_v54 = vadd.f32 %v6038_v53, %v6037_v28  ;;  %v6061_v55 = vadd.f32 %v6060_v48, %v6059_v51  ;;  %v6040_v49 = vpop.f32.mrb[58].mxu1  ;;  %v6062_v57 = vpop.f32.mrb[54].mxu0 }
 0x9ab   :  { %v6041_v47 = vpop.f32.mrb[59].mxu1  ;;  %v6063_v58 = vpop.f32.mrb[55].mxu0 }
 0x9ac   :  { %v4841_v59 = vadd.f32 %v6039_v54, %v5688_v52  ;;  %v6042_v61 = vadd.f32 %v6041_v47, %v6040_v49  ;;  %v6064_v60 = vadd.f32 %v6063_v58, %v6062_v57 }
 0x9ae   :  { %v4882_v62 = vadd.f32 %v6061_v55, %v4841_v59  ;;  %v4844_v56 = vadd.f32 %v6042_v61, %v5688_v52  ;;  %v6572_v59 = vld [vmem:[#allocation23] sm:$0xff]   ;;  %v6574_v61 = vld [vmem:[#allocation23 + $0x10] sm:$0xff]  }
 0x9af   :  { %6244 = vmatpush3.bf16.msra.mxu1 %v6572_v59 }
 0x9b0   :  { %v4885_v63 = vadd.f32 %v6064_v60, %v4844_v56  ;;  %6245 = vmatprep.subr.bf16.mxu1 %v7039_v0  ;;  %v6575_v60 = vld [vmem:[#allocation23 + $0x18] sm:$0xff]   ;;  %v6577_v56 = vld [vmem:[#allocation26 + $0x8] sm:$0xff]  }
 0x9c8   :  { %v6081_v1 = vpop.f32.mrb[60].mxu1  ;;  %v6103_v2 = vpop.f32.mrb[56].mxu0 }
 0x9c9   :  { %v6082_v3 = vpop.f32.mrb[61].mxu1  ;;  %v6104_v6 = vpop.f32.mrb[57].mxu0 }
 0x9ca   :  { %v6083_v10 = vadd.f32 %v6082_v3, %v6081_v1  ;;  %v6105_v14 = vadd.f32 %v6104_v6, %v6103_v2  ;;  %v6084_v16 = vpop.f32.mrb[62].mxu1  ;;  %v6106_v19 = vpop.f32.mrb[58].mxu0  ;;  %v6579_v1 = vld [vmem:[#allocation26 + $0x18] sm:$0xff]   ;;  %v6580_v2 = vld [vmem:[#allocation26 + $0x20] sm:$0xff]   ;;  %v6581_v3 = vld [vmem:[#allocation26 + $0x28] sm:$0xff]  }
 0x9cb   :  { %v6085_v21 = vpop.f32.mrb[63].mxu1  ;;  %v6107_v4 = vpop.f32.mrb[59].mxu0 }
 0x9cc   :  { %v4923_v25 = vadd.f32 %v6083_v10, %v4882_v62  ;;  %v6086_v12 = vadd.f32 %v6085_v21, %v6084_v16  ;;  %v6108_v5 = vadd.f32 %v6107_v4, %v6106_v19  ;;  %v6576_v62 = vld [vmem:[#allocation26] sm:$0xff]  }
 0x9cd   :  { %6256 = vmatpush3.bf16.msra.mxu0 %v6576_v62 }
 0x9ce   :  { %v4964_v11 = vadd.f32 %v6105_v14, %v4923_v25  ;;  %v4926_v13 = vadd.f32 %v6086_v12, %v4885_v63  ;;  %6257 = vmatprep.subr.bf16.mxu0 %v7039_v0  ;;  %v6578_v63 = vld [vmem:[#allocation26 + $0x10] sm:$0xff]  }
 0x9d0   :  { %v4967_v30 = vadd.f32 %v6108_v5, %v4926_v13 }
 0x9d1   :  { %6258 = vmatpush3.bf16.msra.mxu0 %v6577_v56 }
 0x9d2   :  { %6259 = vmatprep.subr.bf16.mxu0 %v7039_v0 }
 0x9d5   :  { %6260 = vmatpush3.bf16.msra.mxu0 %v6578_v63 }
 0x9d6   :  { %6261 = vmatprep.subr.bf16.mxu0 %v7039_v0 }
 0x9d9   :  { %6262 = vmatpush3.bf16.msra.mxu0 %v6579_v1 }
 0x9da   :  { %6263 = vmatprep.subr.bf16.mxu0 %v7039_v0 }
 0x9dd   :  { %6264 = vmatpush3.bf16.msra.mxu0 %v6580_v2 }
 0x9de   :  { %6265 = vmatprep.subr.bf16.mxu0 %v7039_v0 }
 0x9e1   :  { %6266 = vmatpush3.bf16.msra.mxu0 %v6581_v3 }
 0x9e2   :  { %6267 = vmatprep.subr.bf16.mxu0 %v7039_v0 }
 0x9e8   :  { %v6125_v31 = vpop.f32.mrb[64].mxu1 }
 0x9e9   :  { %v6147_v32 = vpop.f32.mrb[60].mxu0  ;;  %v6126_v22 = vpop.f32.mrb[65].mxu1 }
 0x9ea   :  { %v6127_v29 = vadd.f32 %v6126_v22, %v6125_v31  ;;  %v6148_v43 = vpop.f32.mrb[61].mxu0  ;;  %v6128_v33 = vpop.f32.mrb[66].mxu1 }
 0x9eb   :  { %v6149_v7 = vadd.f32 %v6148_v43, %v6147_v32  ;;  %v6150_v34 = vpop.f32.mrb[62].mxu0  ;;  %v6129_v35 = vpop.f32.mrb[67].mxu1 }
 0x9ec   :  { %v5005_v17 = vadd.f32 %v6127_v29, %v4964_v11  ;;  %v6130_v18 = vadd.f32 %v6129_v35, %v6128_v33  ;;  %v6151_v23 = vpop.f32.mrb[63].mxu0  ;;  %v6582_v35 = vld [vmem:[#allocation26 + $0x30] sm:$0xff]  }
 0x9ed   :  { %v6152_v36 = vadd.f32 %v6151_v23, %v6150_v34  ;;  %6268 = vmatpush3.bf16.msra.mxu0 %v6582_v35 }
 0x9ee   :  { %v5046_v24 = vadd.f32 %v6149_v7, %v5005_v17  ;;  %v5008_v37 = vadd.f32 %v6130_v18, %v4967_v30  ;;  %6269 = vmatprep.subr.bf16.mxu0 %v7039_v0  ;;  %v6583_v17 = vld [vmem:[#allocation26 + $0x38] sm:$0xff]  }
 0x9ef   :  { %v5817_v18 = vld [vmem:[#allocation25] ss:$0 sm:$0xff] }
 0x9f0   :  { %v5049_v40 = vadd.f32 %v6152_v36, %v5008_v37 }
 0x9f1   :  { %6270 = vmatpush3.bf16.msra.mxu0 %v6583_v17 }
 0xa08   :  { %v6169_v15 = vpop.f32.mrb[68].mxu1 }
 0xa09   :  { %v6191_v41 = vpop.f32.mrb[64].mxu0  ;;  %v6170_v42 = vpop.f32.mrb[69].mxu1 }
 0xa0a   :  { %v6171_v26 = vadd.f32 %v6170_v42, %v6169_v15  ;;  %v6192_v45 = vpop.f32.mrb[65].mxu0  ;;  %v6172_v27 = vpop.f32.mrb[70].mxu1 }
 0xa0b   :  { %v6193_v44 = vadd.f32 %v6192_v45, %v6191_v41  ;;  %v6194_v8 = vpop.f32.mrb[66].mxu0  ;;  %v6173_v9 = vpop.f32.mrb[71].mxu1  ;;  %v5823_v45 = vld [vmem:[#allocation28] ss:$0 sm:$0xff] }
 0xa0c   :  { %v5087_v50 = vadd.f32 %v6171_v26, %v5046_v24  ;;  %v6174_v46 = vadd.f32 %v6173_v9, %v6172_v27  ;;  %v6195_v20 = vpop.f32.mrb[67].mxu0 }
 0xa0d   :  { %v6196_v28 = vadd.f32 %v6195_v20, %v6194_v8 }
 0xa0e   :  { %v5128_v51 = vadd.f32 %v6193_v44, %v5087_v50  ;;  %v5090_v52 = vadd.f32 %v6174_v46, %v5049_v40 }
 0xa10   :  { %v7623_v53 = vadd.f32 %v5128_v51, %v7542_v38  ;;  %v5131_v48 = vadd.f32 %v6196_v28, %v5090_v52 }
 0xa12   :  { %v5135_v54 = vadd.f32 %v5131_v48, %v7544_v39  ;;  %v5136_v55 = vsel %vm400_vm4, %v7623_v53, 0.0  ;;  %v5144_v49 = vmul.f32 %v7623_v53, %v7623_v53  ;;  %v6573_v39 = vld [vmem:[#allocation23 + $0x8] sm:$0xff]  }
 0xa13   :  { %5137 = vadd.xlane.f32.xlu0 %v5136_v55  ;;  %6246 = vmatpush3.bf16.msra.mxu1 %v6573_v39 }
 0xa14   :  { %v5139_v57 = vsel %vm400_vm4, %v5135_v54, 0.0  ;;  %v5145_v47 = vmul.f32 %v5135_v54, %v5135_v54  ;;  %v5146_v58 = vsel %vm400_vm4, %v5144_v49, 0.0  ;;  %6247 = vmatprep.subr.bf16.mxu1 %v7039_v0 }
 0xa15   :  { %5140 = vadd.xlane.f32.xlu1 %v5139_v57 }
 0xa16   :  { %v5149_v38 = vsel %vm400_vm4, %v5145_v47, 0.0 }
 0xa17   :  { %5147 = vadd.xlane.f32.xlu0 %v5146_v58  ;;  %6248 = vmatpush3.bf16.msra.mxu1 %v6574_v61 }
 0xa18   :  { %6249 = vmatprep.subr.bf16.mxu1 %v7039_v0 }
 0xa19   :  { %5150 = vadd.xlane.f32.xlu1 %v5149_v38 }
 0xa1b   :  { %6250 = vmatpush3.bf16.msra.mxu1 %v6575_v60 }
 0xaa0   :  { %v5138_v6 = vpop.xlane.xlu0 %5137 }
 0xaa1   :  { %v5142_v10 = vmul.f32 0.015625, %v5138_v6 }
 0xaa2   :  { %v5141_v14 = vpop.xlane.xlu1 %5140 }
 0xaa3   :  { %v5143_v16 = vmul.f32 0.015625, %v5141_v14  ;;  %v5154_v21 = vmul.f32 %v5142_v10, %v5142_v10  ;;  %v5158_v22 = vsub.f32 %v7623_v53, %v5142_v10 }
 0xaa4   :  { %v5148_v19 = vpop.xlane.xlu0 %5147 }
 0xaa5   :  { %v5152_v4 = vmul.f32 0.015625, %v5148_v19  ;;  %v5155_v12 = vmul.f32 %v5143_v16, %v5143_v16  ;;  %v5159_v29 = vsub.f32 %v5135_v54, %v5143_v16 }
 0xaa6   :  { %v5151_v25 = vpop.xlane.xlu1 %5150 }
 0xaa7   :  { %v5156_v5 = vsub.f32 %v5152_v4, %v5154_v21  ;;  %v5153_v11 = vmul.f32 0.015625, %v5151_v25 }
 0xaa9   :  { %v5160_v13 = vadd.f32 1e-05, %v5156_v5  ;;  %v5157_v30 = vsub.f32 %v5153_v11, %v5155_v12 }
 0xaab   :  { %6596 = vrsqrt.f32 %v5160_v13  ;;  %v5161_v31 = vadd.f32 1e-05, %v5157_v30 }
 0xaad   :  { %6598 = vrsqrt.f32 %v5161_v31 }
 0xab5   :  { %v6597_v32 = vpop.eup %6596 }
 0xab6   :  { %v5164_v33 = vmul.f32 %v6597_v32, %v5158_v22 }
 0xab7   :  { %v6599_v43 = vpop.eup %6598 }
 0xab8   :  { %v5165_v7 = vmul.f32 %v6599_v43, %v5159_v29 }
 0xaba   :  { %v5166_v34 = vpack.c.bf16 %v5165_v7, %v5164_v33 }
 0xabc   :  { %6252 = vmatmul.mubr.msk.bf16.vlgmr.msra.gmra.mrb[72].mxu1 %vm400_vm4, %v5166_v34 }
 0xb8f   :  { %v5243_v23 = vpop.f32.mrb[72].mxu1 }
 0xb90   :  { %v5244_v36 = vadd.f32 %v5817_v18, %v5243_v23  ;;  %v6253_v24 = vpop.f32.mrb[73].mxu1 }
 0xb91   :  { %v5246_v37 = vpop.f32.mrb[74].mxu1 }
 0xb92   :  { %v5247_v40 = vadd.f32 %v5817_v18, %v5246_v37  ;;  %v6254_v15 = vpop.f32.mrb[75].mxu1  ;;  %v5250_v41 = vmax.f32 %v5244_v36, 0.0 }
 0xb94   :  { %v5251_v42 = vmax.f32 %v5247_v40, 0.0 }
 0xb96   :  { %v5252_v26 = vpack.c.bf16 %v5251_v42, %v5250_v41 }
 0xb98   :  { %6272 = vmatmul.mubr.bf16.vlgmr.msra.gmra.mrb[68].mxu0 %v5252_v26 }
 0xc6b   :  { %v5358_v27 = vpop.f32.mrb[68].mxu0 }
 0xc6c   :  { %v5359_v44 = vadd.f32 %v5823_v45, %v5358_v27  ;;  %v6273_v8 = vpop.f32.mrb[69].mxu0 }
 0xc6d   :  { %v5361_v0 = vpop.f32.mrb[70].mxu0 }
 0xc6e   :  { %5365 = vst [vmem:[#allocation29] sm:$0xff] %v5359_v44  ;;  %v5362_v9 = vadd.f32 %v5823_v45, %v5361_v0  ;;  %v6274_v50 = vpop.f32.mrb[71].mxu0 }
 0xc70   :  { %5366 = vst [vmem:[#allocation29 + $0x8] sm:$0xff] %v5362_v9 }
 0xc71   :  { %6985 = shalt.err (!%p6982_p0)
}
 0xc72   :  { %s7686_s1 = sld [smem:[#allocation42_spill]] }
 0xc78   :  { %s6986_s30 = scalar_lea.hbm %s7686_s1, 256 }
 0xc79   :  { %p6987_p1 = scmp.ne.s32.totalorder %s7686_s1, %s6986_s30  ;;  %p6990_p2 = scmp.lt.u32.totalorder %s6986_s30, %s7686_s1 }
 0xc7b   :  { %p6992_p3 = pnand %p6990_p2, %p6987_p1 }
 0xc7d   :  { %6995 = shalt.err (!%p6992_p3)
}
 0xc7e   :  { %s7044_s28 = smov 128   ;;  %s7045_s19 = smov 8  }
 0xc7f   :  { %5378 = dma.vmem_to_hbm [thread:$0]  %s5373_s27, 256, %s7686_s1, [#allocation4], %s7044_s28, %s7044_s28, %s7045_s19  }
 0xc80   :  { %7014 = dma.done.wait [#allocation4], 256  }
 0xc81   :  { %7015 = vsyncadd [#allocation4], 4294967040 }
 0xc82   :  { %5382 = vsyncpa [#allocation3], 1 }
 0xc83   :  { %5383 = vsyncpa [#allocation6], 1 }
 0xc84   :  { %5384 = vsyncpa [#allocation9], 1 }
 0xc85   :  { %5385 = vsyncpa [#allocation12], 1 }
 0xc86   :  { %5386 = vsyncpa [#allocation15], 1 }
 0xc87   :  { %5387 = vsyncpa [#allocation18], 1 }
 0xc88   :  { %5388 = vsyncpa [#allocation21], 1 }
 0xc89   :  { %5389 = vsyncpa [#allocation24], 1 }
 0xc8a   :  { %5390 = vsyncpa [#allocation27], 1 }
 0xc8b   :  { %5391 = vsyncpa [#allocation4], 1 }

</bundles_post_ra>
